<compile_context>
chip_gen: v7x
topology: tpu7x:2x2x1
jax: 0.10.0
libtpu: 0.0.40
codegen_flags: <defaults>
</compile_context>

<pallas_src>
import functools

import jax
import jax.numpy as jnp
from jax import lax
from jax.experimental import pallas as pl
from jax.experimental.pallas import tpu as pltpu


def _cross_attn_kernel(tq_ref, skv_ref, vpos_ref, cpos_ref,
                       wq_ref, wk_ref, wv_ref, wp_ref,
                       bq_ref, bk_ref, bv_ref, bp_ref,
                       out_ref,
                       *, num_heads: int, head_dim: int, n_valid: int):
    # tq_ref:  (1, D, Np) bf16  query-source tokens, channel-major (transposed)
    # skv_ref: (1, D, Np) bf16  key/value-source tokens, channel-major
    # vpos_ref/cpos_ref: (D, Np) bf16  positional embeddings (transposed, padded)
    # wq/wk/wv_ref: (D, D) bf16  torch [out, in] layout (wq pre-scaled)
    # wp_ref: (D, D) bf16  w_proj^T, i.e. [in(h d), out]
    # bq/bk/bv_ref: (D, 1) f32 (bq pre-scaled) ; bp_ref: (1, D) f32
    # out_ref: (1, N, D) f32
    xq_t = tq_ref[0] + vpos_ref[...]                      # (D, Np) bf16
    xkv_t = skv_ref[0] + cpos_ref[...]                    # (D, Np) bf16
    Np = xq_t.shape[1]

    # Hoisted full-width projections (f32 accumulation, bf16 results for MXU).
    q_all = (jnp.dot(wq_ref[...], xq_t, preferred_element_type=jnp.float32)
             + bq_ref[...]).astype(jnp.bfloat16)          # (D, Np)
    k_all = (jnp.dot(wk_ref[...], xkv_t, preferred_element_type=jnp.float32)
             + bk_ref[...]).astype(jnp.bfloat16)          # (D, Np)
    v_all = (jnp.dot(wv_ref[...], xkv_t, preferred_element_type=jnp.float32)
             + bv_ref[...]).astype(jnp.bfloat16)          # (D, Np)

    # key-padding mask: keys live on the sublane axis of the transposed logits.
    key_valid = lax.broadcasted_iota(jnp.int32, (Np, 1), 0) < n_valid

    d = head_dim
    ctx_slabs = []
    for h in range(num_heads):            # fully unrolled; H is small & static
        lo = h * d
        q_h = q_all[lo:lo + d, :]         # (d, Nq) bf16 aligned sublane slab
        k_h = k_all[lo:lo + d, :]         # (d, Nk)
        v_h = v_all[lo:lo + d, :]         # (d, Nk)

        # logits^T[k, q] = sum_c k_h[c, k] * q_h[c, q]   (scale already folded)
        logits_t = lax.dot_general(
            k_h, q_h, dimension_numbers=(((0,), (0,)), ((), ())),
            preferred_element_type=jnp.float32)           # (Nk, Nq) f32
        logits_t = jnp.where(key_valid, logits_t, -1e30)

        # softmax over keys (sublane axis): f32 max-subtract, bf16 exp,
        # f32 row-sum.
        m = jnp.max(logits_t, axis=0, keepdims=True)      # (1, Nq) f32
        p = jnp.exp((logits_t - m).astype(jnp.bfloat16))  # (Nk, Nq) bf16
        denom = jnp.sum(p, axis=0, keepdims=True, dtype=jnp.float32)

        # PV matmul first (K = Nk deep), then normalize the small (d, Nq) slab.
        ctx_t = jnp.dot(v_h, p, preferred_element_type=jnp.float32)   # (d, Nq)
        ctx_slabs.append(ctx_t * pl.reciprocal(denom, approx=True))

    # Merge heads on the sublane axis and do ONE deferred output projection
    # with a K=D contraction.
    ctx_all = jnp.concatenate(ctx_slabs, axis=0).astype(jnp.bfloat16)  # (D, Nq)
    out = lax.dot_general(
        ctx_all, wp_ref[...], dimension_numbers=(((0,), (0,)), ((), ())),
        preferred_element_type=jnp.float32)                # (Nq, D_out) f32

    # store only the valid (non-padded) query rows
    out_ref[0] = (out[:n_valid] + bp_ref[...]).astype(out_ref.dtype)


def cross_attention_s2t(s_x, t_x, clip_space_pos, vmae_space_pos,
                        w_q, b_q, w_kv, b_kv, w_proj, b_proj, *, num_heads):
    """Pallas implementation of CrossAttentionS2T.forward.

    s_x: [1+N, B*t, D] ; t_x: [B, t*N, D]
    clip_space_pos / vmae_space_pos: [N, D]
    w_q: [D, D] (torch [out, in]) ; b_q: [D]
    w_kv: [2D, D] ; b_kv: [2D]
    w_proj: [D, D] ; b_proj: [D]
    returns [B, t*N, D]
    """
    Np1, BT, D = s_x.shape
    N = Np1 - 1
    B, TN, _ = t_x.shape
    t = BT // B
    n = TN // t
    assert n == N == clip_space_pos.shape[0] == vmae_space_pos.shape[0]
    assert D % num_heads == 0
    H = num_heads
    d = D // H
    assert d % 8 == 0, "head_dim must be a multiple of 8 for sublane slabs"
    scale = d ** (-0.5)

    # pad the token (lane) axis up to a multiple of 128 for dense tiles
    Np = ((N + 127) // 128) * 128
    pad = Np - N

    # --- wrapper-side layout plumbing (transpose / pad / dtype) ---
    # token-transposed layout: (frame, channel, token)
    s_pat_t = jnp.transpose(s_x[1:], (1, 2, 0))                    # (BT, D, N)
    t_q_t = jnp.transpose(t_x.reshape(BT, N, D), (0, 2, 1))        # (BT, D, N)
    s_pat_p = jnp.pad(s_pat_t, ((0, 0), (0, 0), (0, pad))).astype(jnp.bfloat16)
    t_q_p = jnp.pad(t_q_t, ((0, 0), (0, 0), (0, pad))).astype(jnp.bfloat16)
    cpos_p = jnp.pad(clip_space_pos.T, ((0, 0), (0, pad))).astype(jnp.bfloat16)
    vpos_p = jnp.pad(vmae_space_pos.T, ((0, 0), (0, pad))).astype(jnp.bfloat16)

    # weights stay in torch [out, in] layout (that is what the transposed
    # matmuls need); fold the softmax scale into Wq / bq.
    wq_s = (scale * w_q).astype(jnp.bfloat16)                      # (D, D)
    wk = w_kv[:D].astype(jnp.bfloat16)                             # (D, D)
    wv = w_kv[D:].astype(jnp.bfloat16)                             # (D, D)
    wp_t = w_proj.T.astype(jnp.bfloat16)                           # (D_in(h d), D_out)

    bq_s = (scale * b_q).reshape(D, 1).astype(jnp.float32)
    bk = b_kv[:D].reshape(D, 1).astype(jnp.float32)
    bv = b_kv[D:].reshape(D, 1).astype(jnp.float32)
    bp = b_proj.reshape(1, D).astype(jnp.float32)

    kernel = functools.partial(_cross_attn_kernel,
                               num_heads=H, head_dim=d, n_valid=N)

    out = pl.pallas_call(
        kernel,
        out_shape=jax.ShapeDtypeStruct((BT, N, D), jnp.float32),
        grid_spec=pltpu.PrefetchScalarGridSpec(
            num_scalar_prefetch=0,
            grid=(BT,),
            in_specs=[
                pl.BlockSpec((1, D, Np), lambda b: (b, 0, 0)),   # queries (transposed)
                pl.BlockSpec((1, D, Np), lambda b: (b, 0, 0)),   # keys/values (transposed)
                pl.BlockSpec((D, Np), lambda b: (0, 0)),         # vmae_space_pos^T
                pl.BlockSpec((D, Np), lambda b: (0, 0)),         # clip_space_pos^T
                pl.BlockSpec((D, D), lambda b: (0, 0)),          # Wq (pre-scaled)
                pl.BlockSpec((D, D), lambda b: (0, 0)),          # Wk
                pl.BlockSpec((D, D), lambda b: (0, 0)),          # Wv
                pl.BlockSpec((D, D), lambda b: (0, 0)),          # Wproj^T
                pl.BlockSpec((D, 1), lambda b: (0, 0)),          # bq (pre-scaled)
                pl.BlockSpec((D, 1), lambda b: (0, 0)),          # bk
                pl.BlockSpec((D, 1), lambda b: (0, 0)),          # bv
                pl.BlockSpec((1, D), lambda b: (0, 0)),          # bproj
            ],
            out_specs=pl.BlockSpec((1, N, D), lambda b: (b, 0, 0)),
        ),
        compiler_params=pltpu.CompilerParams(
            dimension_semantics=("parallel",)),
    )(t_q_p, s_pat_p, vpos_p, cpos_p, wq_s, wk, wv, wp_t, bq_s, bk, bv, bp)

    return out.reshape(B, t * N, D)


def _reference(s_x, t_x, clip_pos, vmae_pos, w_q, b_q, w_kv, b_kv,
               w_proj, b_proj, num_heads):
    """Plain-JAX f32 reference matching the PyTorch forward."""
    Np1, BT, D = s_x.shape
    N = Np1 - 1
    B, TN, _ = t_x.shape
    t = BT // B
    H = num_heads
    d = D // H
    scale = d ** (-0.5)

    s_pat = jnp.transpose(s_x[1:], (1, 0, 2)) + clip_pos            # (BT, N, D)
    t_q = t_x.reshape(BT, TN // t, D) + vmae_pos                    # (BT, N, D)

    q = jnp.einsum("bnc,oc->bno", t_q, w_q) + b_q                   # (BT, N, D)
    kv = jnp.einsum("bnc,oc->bno", s_pat, w_kv) + b_kv              # (BT, N, 2D)

    q = q.reshape(BT, N, H, d).transpose(0, 2, 1, 3)                # (BT, H, N, d)
    kv = kv.reshape(BT, N, 2, H, d).transpose(2, 0, 3, 1, 4)        # (2, BT, H, N, d)
    k, v = kv[0], kv[1]

    attn = jnp.einsum("bhnd,bhmd->bhnm", q * scale, k)
    attn = jax.nn.softmax(attn, axis=-1)
    ctx = jnp.einsum("bhnm,bhmd->bhnd", attn, v)
    ctx = ctx.transpose(0, 2, 1, 3).reshape(BT, N, D)
    out = jnp.einsum("bnc,oc->bno", ctx, w_proj) + b_proj           # (BT, N, D)
    return out.reshape(B, t * N, D)


if __name__ == "__main__":
    # Small shapes consistent with the module: the pos embeddings hard-code 196
    # spatial tokens per frame; keep dim / heads / batch small.
    dim = 32
    n_head = 4
    N = 196            # spatial tokens per frame (module hard-codes 196)
    B = 1              # temporal batch
    t = 2              # frames: s_x batch = B * t, t_x has t*N tokens
    BT = B * t
    head_dim = dim // n_head
    scale = head_dim ** (-0.5)

    key = jax.random.PRNGKey(0)
    ks = jax.random.split(key, 10)

    s_x = jax.random.normal(ks[0], (N + 1, BT, dim), dtype=jnp.float32)
    t_x = jax.random.normal(ks[1], (B, t * N, dim), dtype=jnp.float32)
    clip_space_pos = scale * jax.random.normal(ks[2], (N, dim), dtype=jnp.float32)
    vmae_space_pos = scale * jax.random.normal(ks[3], (N, dim), dtype=jnp.float32)
    # torch nn.Linear weight layout: [out_features, in_features]
    w_q = 0.05 * jax.random.normal(ks[4], (dim, dim), dtype=jnp.float32)
    b_q = 0.05 * jax.random.normal(ks[5], (dim,), dtype=jnp.float32)
    w_kv = 0.05 * jax.random.normal(ks[6], (2 * dim, dim), dtype=jnp.float32)
    b_kv = 0.05 * jax.random.normal(ks[7], (2 * dim,), dtype=jnp.float32)
    w_proj = 0.05 * jax.random.normal(ks[8], (dim, dim), dtype=jnp.float32)
    b_proj = 0.05 * jax.random.normal(ks[9], (dim,), dtype=jnp.float32)

    out = cross_attention_s2t(s_x, t_x, clip_space_pos, vmae_space_pos,
                              w_q, b_q, w_kv, b_kv, w_proj, b_proj,
                              num_heads=n_head)
    out = jax.block_until_ready(out)

    ref = _reference(s_x, t_x, clip_space_pos, vmae_space_pos,
                     w_q, b_q, w_kv, b_kv, w_proj, b_proj, n_head)
    assert out.shape == ref.shape, (out.shape, ref.shape)
    err = float(jnp.max(jnp.abs(out - ref)))
    # bf16 MXU inputs / bf16 exp with f32 accumulation -> loose-but-meaningful tol
    assert err < 3e-2, err

    print("KERNEL_OK")
</pallas_src>

<mosaic_0001>
module attributes {stable_mosaic.version = 11 : i64} {
  func.func @_cross_attn_kernel(%arg0: i32, %arg1: memref<1x32x256xbf16, #tpu.memory_space<vmem>>, %arg2: memref<1x32x256xbf16, #tpu.memory_space<vmem>>, %arg3: memref<32x256xbf16, #tpu.memory_space<vmem>>, %arg4: memref<32x256xbf16, #tpu.memory_space<vmem>>, %arg5: memref<32x32xbf16, #tpu.memory_space<vmem>>, %arg6: memref<32x32xbf16, #tpu.memory_space<vmem>>, %arg7: memref<32x32xbf16, #tpu.memory_space<vmem>>, %arg8: memref<32x32xbf16, #tpu.memory_space<vmem>>, %arg9: memref<32x1xf32, #tpu.memory_space<vmem>>, %arg10: memref<32x1xf32, #tpu.memory_space<vmem>>, %arg11: memref<32x1xf32, #tpu.memory_space<vmem>>, %arg12: memref<1x32xf32, #tpu.memory_space<vmem>>, %arg13: memref<1x196x32xf32, #tpu.memory_space<vmem>>) attributes {dimension_semantics = [#tpu.dimension_semantics<parallel>], iteration_bounds = array<i64: 2>, scalar_prefetch = 0 : i64, scratch_operands = 0 : i64, tpu.core_type = #tpu.core_type<tc>, window_params = [{transform_indices = @transform_0, window_bounds = array<i64: 1, 32, 256>}, {transform_indices = @transform_1, window_bounds = array<i64: 1, 32, 256>}, {pipeline_mode = #tpu.pipeline_mode<synchronous>, transform_indices = @transform_2, window_bounds = array<i64: 32, 256>}, {pipeline_mode = #tpu.pipeline_mode<synchronous>, transform_indices = @transform_3, window_bounds = array<i64: 32, 256>}, {pipeline_mode = #tpu.pipeline_mode<synchronous>, transform_indices = @transform_4, window_bounds = array<i64: 32, 32>}, {pipeline_mode = #tpu.pipeline_mode<synchronous>, transform_indices = @transform_5, window_bounds = array<i64: 32, 32>}, {pipeline_mode = #tpu.pipeline_mode<synchronous>, transform_indices = @transform_6, window_bounds = array<i64: 32, 32>}, {pipeline_mode = #tpu.pipeline_mode<synchronous>, transform_indices = @transform_7, window_bounds = array<i64: 32, 32>}, {pipeline_mode = #tpu.pipeline_mode<synchronous>, transform_indices = @transform_8, window_bounds = array<i64: 32, 1>}, {pipeline_mode = #tpu.pipeline_mode<synchronous>, transform_indices = @transform_9, window_bounds = array<i64: 32, 1>}, {pipeline_mode = #tpu.pipeline_mode<synchronous>, transform_indices = @transform_10, window_bounds = array<i64: 32, 1>}, {pipeline_mode = #tpu.pipeline_mode<synchronous>, transform_indices = @transform_11, window_bounds = array<i64: 1, 32>}, {transform_indices = @transform_12, window_bounds = array<i64: 1, 196, 32>}]} {
    %c0 = arith.constant 0 : index
    %c0_0 = arith.constant 0 : index
    %c0_1 = arith.constant 0 : index
    %0 = vector.load %arg1[%c0, %c0_0, %c0_1] : memref<1x32x256xbf16, #tpu.memory_space<vmem>>, vector<1x32x256xbf16>
    %1 = vector.shape_cast %0 : vector<1x32x256xbf16> to vector<32x256xbf16>
    %c0_2 = arith.constant 0 : index
    %c0_3 = arith.constant 0 : index
    %2 = vector.load %arg3[%c0_2, %c0_3] : memref<32x256xbf16, #tpu.memory_space<vmem>>, vector<32x256xbf16>
    %3 = arith.addf %1, %2 : vector<32x256xbf16>
    %c0_4 = arith.constant 0 : index
    %c0_5 = arith.constant 0 : index
    %c0_6 = arith.constant 0 : index
    %4 = vector.load %arg2[%c0_4, %c0_5, %c0_6] : memref<1x32x256xbf16, #tpu.memory_space<vmem>>, vector<1x32x256xbf16>
    %5 = vector.shape_cast %4 : vector<1x32x256xbf16> to vector<32x256xbf16>
    %c0_7 = arith.constant 0 : index
    %c0_8 = arith.constant 0 : index
    %6 = vector.load %arg4[%c0_7, %c0_8] : memref<32x256xbf16, #tpu.memory_space<vmem>>, vector<32x256xbf16>
    %7 = arith.addf %5, %6 : vector<32x256xbf16>
    %c0_9 = arith.constant 0 : index
    %c0_10 = arith.constant 0 : index
    %8 = vector.load %arg5[%c0_9, %c0_10] : memref<32x32xbf16, #tpu.memory_space<vmem>>, vector<32x32xbf16>
    %cst = arith.constant dense<0.000000e+00> : vector<32x256xf32>
    %9 = tpu.matmul %8, %3, %cst {dimension_numbers = #tpu.dot_dimension_numbers<[1], [0], [0], [1], [0, 0, 1, 1], [], []>} : vector<32x32xbf16>, vector<32x256xbf16>, vector<32x256xf32> -> vector<32x256xf32>
    %c0_11 = arith.constant 0 : index
    %c0_12 = arith.constant 0 : index
    %10 = vector.load %arg9[%c0_11, %c0_12] : memref<32x1xf32, #tpu.memory_space<vmem>>, vector<32x1xf32>
    %11 = vector.broadcast %10 : vector<32x1xf32> to vector<32x256xf32>
    %12 = arith.addf %9, %11 : vector<32x256xf32>
    %13 = arith.truncf %12 : vector<32x256xf32> to vector<32x256xbf16>
    %c0_13 = arith.constant 0 : index
    %c0_14 = arith.constant 0 : index
    %14 = vector.load %arg6[%c0_13, %c0_14] : memref<32x32xbf16, #tpu.memory_space<vmem>>, vector<32x32xbf16>
    %cst_15 = arith.constant dense<0.000000e+00> : vector<32x256xf32>
    %15 = tpu.matmul %14, %7, %cst_15 {dimension_numbers = #tpu.dot_dimension_numbers<[1], [0], [0], [1], [0, 0, 1, 1], [], []>} : vector<32x32xbf16>, vector<32x256xbf16>, vector<32x256xf32> -> vector<32x256xf32>
    %c0_16 = arith.constant 0 : index
    %c0_17 = arith.constant 0 : index
    %16 = vector.load %arg10[%c0_16, %c0_17] : memref<32x1xf32, #tpu.memory_space<vmem>>, vector<32x1xf32>
    %17 = vector.broadcast %16 : vector<32x1xf32> to vector<32x256xf32>
    %18 = arith.addf %15, %17 : vector<32x256xf32>
    %19 = arith.truncf %18 : vector<32x256xf32> to vector<32x256xbf16>
    %c0_18 = arith.constant 0 : index
    %c0_19 = arith.constant 0 : index
    %20 = vector.load %arg7[%c0_18, %c0_19] : memref<32x32xbf16, #tpu.memory_space<vmem>>, vector<32x32xbf16>
    %cst_20 = arith.constant dense<0.000000e+00> : vector<32x256xf32>
    %21 = tpu.matmul %20, %7, %cst_20 {dimension_numbers = #tpu.dot_dimension_numbers<[1], [0], [0], [1], [0, 0, 1, 1], [], []>} : vector<32x32xbf16>, vector<32x256xbf16>, vector<32x256xf32> -> vector<32x256xf32>
    %c0_21 = arith.constant 0 : index
    %c0_22 = arith.constant 0 : index
    %22 = vector.load %arg11[%c0_21, %c0_22] : memref<32x1xf32, #tpu.memory_space<vmem>>, vector<32x1xf32>
    %23 = vector.broadcast %22 : vector<32x1xf32> to vector<32x256xf32>
    %24 = arith.addf %21, %23 : vector<32x256xf32>
    %25 = arith.truncf %24 : vector<32x256xf32> to vector<32x256xbf16>
    %26 = tpu.iota {dimensions = array<i32: 0>} : vector<256x1xi32>
    %c196_i32 = arith.constant 196 : i32
    %27 = vector.broadcast %c196_i32 : i32 to vector<256x1xi32>
    %28 = arith.cmpi slt, %26, %27 : vector<256x1xi32>
    %29 = vector.extract_strided_slice %13 {offsets = [0, 0], sizes = [8, 256], strides = [1, 1]} : vector<32x256xbf16> to vector<8x256xbf16>
    %30 = vector.extract_strided_slice %19 {offsets = [0, 0], sizes = [8, 256], strides = [1, 1]} : vector<32x256xbf16> to vector<8x256xbf16>
    %31 = vector.extract_strided_slice %25 {offsets = [0, 0], sizes = [8, 256], strides = [1, 1]} : vector<32x256xbf16> to vector<8x256xbf16>
    %cst_23 = arith.constant dense<0.000000e+00> : vector<256x256xf32>
    %32 = tpu.matmul %30, %29, %cst_23 {dimension_numbers = #tpu.dot_dimension_numbers<[0], [0], [1], [1], [0, 1, 1, 1], [], []>} : vector<8x256xbf16>, vector<8x256xbf16>, vector<256x256xf32> -> vector<256x256xf32>
    %cst_24 = arith.constant -1.000000e+30 : f32
    %33 = vector.shape_cast %28 : vector<256x1xi1> to vector<256x1xi1>
    %34 = vector.broadcast %33 : vector<256x1xi1> to vector<256x256xi1>
    %35 = vector.broadcast %cst_24 : f32 to vector<256x256xf32>
    %36 = arith.select %34, %32, %35 : vector<256x256xi1>, vector<256x256xf32>
    %cst_25 = arith.constant dense<0xFF800000> : vector<256xf32>
    %37 = vector.multi_reduction <maximumf>, %36, %cst_25 [0] : vector<256x256xf32> to vector<256xf32>
    %38 = vector.shape_cast %37 : vector<256xf32> to vector<1x256xf32>
    %39 = vector.broadcast %38 : vector<1x256xf32> to vector<256x256xf32>
    %40 = arith.subf %36, %39 : vector<256x256xf32>
    %41 = arith.truncf %40 : vector<256x256xf32> to vector<256x256xbf16>
    %42 = math.exp %41 : vector<256x256xbf16>
    %43 = arith.extf %42 : vector<256x256xbf16> to vector<256x256xf32>
    %cst_26 = arith.constant dense<0.000000e+00> : vector<256xf32>
    %44 = vector.multi_reduction <add>, %43, %cst_26 [0] : vector<256x256xf32> to vector<256xf32>
    %45 = vector.shape_cast %44 : vector<256xf32> to vector<1x256xf32>
    %cst_27 = arith.constant dense<0.000000e+00> : vector<8x256xf32>
    %46 = tpu.matmul %31, %42, %cst_27 {dimension_numbers = #tpu.dot_dimension_numbers<[1], [0], [0], [1], [0, 0, 1, 1], [], []>} : vector<8x256xbf16>, vector<256x256xbf16>, vector<8x256xf32> -> vector<8x256xf32>
    %47 = tpu.reciprocal %45 {approx = true} : vector<1x256xf32> -> vector<1x256xf32>
    %48 = vector.broadcast %47 : vector<1x256xf32> to vector<8x256xf32>
    %49 = arith.mulf %46, %48 : vector<8x256xf32>
    %50 = vector.extract_strided_slice %13 {offsets = [8, 0], sizes = [8, 256], strides = [1, 1]} : vector<32x256xbf16> to vector<8x256xbf16>
    %51 = vector.extract_strided_slice %19 {offsets = [8, 0], sizes = [8, 256], strides = [1, 1]} : vector<32x256xbf16> to vector<8x256xbf16>
    %52 = vector.extract_strided_slice %25 {offsets = [8, 0], sizes = [8, 256], strides = [1, 1]} : vector<32x256xbf16> to vector<8x256xbf16>
    %cst_28 = arith.constant dense<0.000000e+00> : vector<256x256xf32>
    %53 = tpu.matmul %51, %50, %cst_28 {dimension_numbers = #tpu.dot_dimension_numbers<[0], [0], [1], [1], [0, 1, 1, 1], [], []>} : vector<8x256xbf16>, vector<8x256xbf16>, vector<256x256xf32> -> vector<256x256xf32>
    %cst_29 = arith.constant -1.000000e+30 : f32
    %54 = vector.shape_cast %28 : vector<256x1xi1> to vector<256x1xi1>
    %55 = vector.broadcast %54 : vector<256x1xi1> to vector<256x256xi1>
    %56 = vector.broadcast %cst_29 : f32 to vector<256x256xf32>
    %57 = arith.select %55, %53, %56 : vector<256x256xi1>, vector<256x256xf32>
    %cst_30 = arith.constant dense<0xFF800000> : vector<256xf32>
    %58 = vector.multi_reduction <maximumf>, %57, %cst_30 [0] : vector<256x256xf32> to vector<256xf32>
    %59 = vector.shape_cast %58 : vector<256xf32> to vector<1x256xf32>
    %60 = vector.broadcast %59 : vector<1x256xf32> to vector<256x256xf32>
    %61 = arith.subf %57, %60 : vector<256x256xf32>
    %62 = arith.truncf %61 : vector<256x256xf32> to vector<256x256xbf16>
    %63 = math.exp %62 : vector<256x256xbf16>
    %64 = arith.extf %63 : vector<256x256xbf16> to vector<256x256xf32>
    %cst_31 = arith.constant dense<0.000000e+00> : vector<256xf32>
    %65 = vector.multi_reduction <add>, %64, %cst_31 [0] : vector<256x256xf32> to vector<256xf32>
    %66 = vector.shape_cast %65 : vector<256xf32> to vector<1x256xf32>
    %cst_32 = arith.constant dense<0.000000e+00> : vector<8x256xf32>
    %67 = tpu.matmul %52, %63, %cst_32 {dimension_numbers = #tpu.dot_dimension_numbers<[1], [0], [0], [1], [0, 0, 1, 1], [], []>} : vector<8x256xbf16>, vector<256x256xbf16>, vector<8x256xf32> -> vector<8x256xf32>
    %68 = tpu.reciprocal %66 {approx = true} : vector<1x256xf32> -> vector<1x256xf32>
    %69 = vector.broadcast %68 : vector<1x256xf32> to vector<8x256xf32>
    %70 = arith.mulf %67, %69 : vector<8x256xf32>
    %71 = vector.extract_strided_slice %13 {offsets = [16, 0], sizes = [8, 256], strides = [1, 1]} : vector<32x256xbf16> to vector<8x256xbf16>
    %72 = vector.extract_strided_slice %19 {offsets = [16, 0], sizes = [8, 256], strides = [1, 1]} : vector<32x256xbf16> to vector<8x256xbf16>
    %73 = vector.extract_strided_slice %25 {offsets = [16, 0], sizes = [8, 256], strides = [1, 1]} : vector<32x256xbf16> to vector<8x256xbf16>
    %cst_33 = arith.constant dense<0.000000e+00> : vector<256x256xf32>
    %74 = tpu.matmul %72, %71, %cst_33 {dimension_numbers = #tpu.dot_dimension_numbers<[0], [0], [1], [1], [0, 1, 1, 1], [], []>} : vector<8x256xbf16>, vector<8x256xbf16>, vector<256x256xf32> -> vector<256x256xf32>
    %cst_34 = arith.constant -1.000000e+30 : f32
    %75 = vector.shape_cast %28 : vector<256x1xi1> to vector<256x1xi1>
    %76 = vector.broadcast %75 : vector<256x1xi1> to vector<256x256xi1>
    %77 = vector.broadcast %cst_34 : f32 to vector<256x256xf32>
    %78 = arith.select %76, %74, %77 : vector<256x256xi1>, vector<256x256xf32>
    %cst_35 = arith.constant dense<0xFF800000> : vector<256xf32>
    %79 = vector.multi_reduction <maximumf>, %78, %cst_35 [0] : vector<256x256xf32> to vector<256xf32>
    %80 = vector.shape_cast %79 : vector<256xf32> to vector<1x256xf32>
    %81 = vector.broadcast %80 : vector<1x256xf32> to vector<256x256xf32>
    %82 = arith.subf %78, %81 : vector<256x256xf32>
    %83 = arith.truncf %82 : vector<256x256xf32> to vector<256x256xbf16>
    %84 = math.exp %83 : vector<256x256xbf16>
    %85 = arith.extf %84 : vector<256x256xbf16> to vector<256x256xf32>
    %cst_36 = arith.constant dense<0.000000e+00> : vector<256xf32>
    %86 = vector.multi_reduction <add>, %85, %cst_36 [0] : vector<256x256xf32> to vector<256xf32>
    %87 = vector.shape_cast %86 : vector<256xf32> to vector<1x256xf32>
    %cst_37 = arith.constant dense<0.000000e+00> : vector<8x256xf32>
    %88 = tpu.matmul %73, %84, %cst_37 {dimension_numbers = #tpu.dot_dimension_numbers<[1], [0], [0], [1], [0, 0, 1, 1], [], []>} : vector<8x256xbf16>, vector<256x256xbf16>, vector<8x256xf32> -> vector<8x256xf32>
    %89 = tpu.reciprocal %87 {approx = true} : vector<1x256xf32> -> vector<1x256xf32>
    %90 = vector.broadcast %89 : vector<1x256xf32> to vector<8x256xf32>
    %91 = arith.mulf %88, %90 : vector<8x256xf32>
    %92 = vector.extract_strided_slice %13 {offsets = [24, 0], sizes = [8, 256], strides = [1, 1]} : vector<32x256xbf16> to vector<8x256xbf16>
    %93 = vector.extract_strided_slice %19 {offsets = [24, 0], sizes = [8, 256], strides = [1, 1]} : vector<32x256xbf16> to vector<8x256xbf16>
    %94 = vector.extract_strided_slice %25 {offsets = [24, 0], sizes = [8, 256], strides = [1, 1]} : vector<32x256xbf16> to vector<8x256xbf16>
    %cst_38 = arith.constant dense<0.000000e+00> : vector<256x256xf32>
    %95 = tpu.matmul %93, %92, %cst_38 {dimension_numbers = #tpu.dot_dimension_numbers<[0], [0], [1], [1], [0, 1, 1, 1], [], []>} : vector<8x256xbf16>, vector<8x256xbf16>, vector<256x256xf32> -> vector<256x256xf32>
    %cst_39 = arith.constant -1.000000e+30 : f32
    %96 = vector.shape_cast %28 : vector<256x1xi1> to vector<256x1xi1>
    %97 = vector.broadcast %96 : vector<256x1xi1> to vector<256x256xi1>
    %98 = vector.broadcast %cst_39 : f32 to vector<256x256xf32>
    %99 = arith.select %97, %95, %98 : vector<256x256xi1>, vector<256x256xf32>
    %cst_40 = arith.constant dense<0xFF800000> : vector<256xf32>
    %100 = vector.multi_reduction <maximumf>, %99, %cst_40 [0] : vector<256x256xf32> to vector<256xf32>
    %101 = vector.shape_cast %100 : vector<256xf32> to vector<1x256xf32>
    %102 = vector.broadcast %101 : vector<1x256xf32> to vector<256x256xf32>
    %103 = arith.subf %99, %102 : vector<256x256xf32>
    %104 = arith.truncf %103 : vector<256x256xf32> to vector<256x256xbf16>
    %105 = math.exp %104 : vector<256x256xbf16>
    %106 = arith.extf %105 : vector<256x256xbf16> to vector<256x256xf32>
    %cst_41 = arith.constant dense<0.000000e+00> : vector<256xf32>
    %107 = vector.multi_reduction <add>, %106, %cst_41 [0] : vector<256x256xf32> to vector<256xf32>
    %108 = vector.shape_cast %107 : vector<256xf32> to vector<1x256xf32>
    %cst_42 = arith.constant dense<0.000000e+00> : vector<8x256xf32>
    %109 = tpu.matmul %94, %105, %cst_42 {dimension_numbers = #tpu.dot_dimension_numbers<[1], [0], [0], [1], [0, 0, 1, 1], [], []>} : vector<8x256xbf16>, vector<256x256xbf16>, vector<8x256xf32> -> vector<8x256xf32>
    %110 = tpu.reciprocal %108 {approx = true} : vector<1x256xf32> -> vector<1x256xf32>
    %111 = vector.broadcast %110 : vector<1x256xf32> to vector<8x256xf32>
    %112 = arith.mulf %109, %111 : vector<8x256xf32>
    %113 = tpu.concatenate %49, %70, %91, %112 in 0 : vector<8x256xf32>, vector<8x256xf32>, vector<8x256xf32>, vector<8x256xf32> -> vector<32x256xf32>
    %114 = arith.truncf %113 : vector<32x256xf32> to vector<32x256xbf16>
    %c0_43 = arith.constant 0 : index
    %c0_44 = arith.constant 0 : index
    %115 = vector.load %arg8[%c0_43, %c0_44] : memref<32x32xbf16, #tpu.memory_space<vmem>>, vector<32x32xbf16>
    %cst_45 = arith.constant dense<0.000000e+00> : vector<256x32xf32>
    %116 = tpu.matmul %114, %115, %cst_45 {dimension_numbers = #tpu.dot_dimension_numbers<[0], [0], [1], [1], [0, 1, 1, 1], [], []>} : vector<32x256xbf16>, vector<32x32xbf16>, vector<256x32xf32> -> vector<256x32xf32>
    %117 = vector.extract_strided_slice %116 {offsets = [0, 0], sizes = [196, 32], strides = [1, 1]} : vector<256x32xf32> to vector<196x32xf32>
    %c0_46 = arith.constant 0 : index
    %c0_47 = arith.constant 0 : index
    %118 = vector.load %arg12[%c0_46, %c0_47] : memref<1x32xf32, #tpu.memory_space<vmem>>, vector<1x32xf32>
    %119 = vector.broadcast %118 : vector<1x32xf32> to vector<196x32xf32>
    %120 = arith.addf %117, %119 : vector<196x32xf32>
    %c0_48 = arith.constant 0 : index
    %c0_49 = arith.constant 0 : index
    %c0_50 = arith.constant 0 : index
    %121 = vector.load %arg13[%c0_48, %c0_49, %c0_50] : memref<1x196x32xf32, #tpu.memory_space<vmem>>, vector<1x196x32xf32>
    %122 = vector.shape_cast %121 : vector<1x196x32xf32> to vector<196x32xf32>
    %123 = vector.shape_cast %120 : vector<196x32xf32> to vector<1x196x32xf32>
    tpu.vector_store %arg13[%c0_48, %c0_49, %c0_50], %123 {strides = array<i32>} : memref<1x196x32xf32, #tpu.memory_space<vmem>>, vector<1x196x32xf32>,
    return
  }
  func.func @transform_0(%arg0: i32) -> (i32, i32, i32) {
    %c0_i32 = arith.constant 0 : i32
    %c0_i32_0 = arith.constant 0 : i32
    %c0_i32_1 = arith.constant 0 : i32
    return %arg0, %c0_i32, %c0_i32_0 : i32, i32, i32
  }
  func.func @transform_1(%arg0: i32) -> (i32, i32, i32) {
    %c0_i32 = arith.constant 0 : i32
    %c0_i32_0 = arith.constant 0 : i32
    %c0_i32_1 = arith.constant 0 : i32
    return %arg0, %c0_i32, %c0_i32_0 : i32, i32, i32
  }
  func.func @transform_2(%arg0: i32) -> (i32, i32) {
    %c0_i32 = arith.constant 0 : i32
    %c0_i32_0 = arith.constant 0 : i32
    %c0_i32_1 = arith.constant 0 : i32
    return %c0_i32, %c0_i32_0 : i32, i32
  }
  func.func @transform_3(%arg0: i32) -> (i32, i32) {
    %c0_i32 = arith.constant 0 : i32
    %c0_i32_0 = arith.constant 0 : i32
    %c0_i32_1 = arith.constant 0 : i32
    return %c0_i32, %c0_i32_0 : i32, i32
  }
  func.func @transform_4(%arg0: i32) -> (i32, i32) {
    %c0_i32 = arith.constant 0 : i32
    %c0_i32_0 = arith.constant 0 : i32
    %c0_i32_1 = arith.constant 0 : i32
    return %c0_i32, %c0_i32_0 : i32, i32
  }
  func.func @transform_5(%arg0: i32) -> (i32, i32) {
    %c0_i32 = arith.constant 0 : i32
    %c0_i32_0 = arith.constant 0 : i32
    %c0_i32_1 = arith.constant 0 : i32
    return %c0_i32, %c0_i32_0 : i32, i32
  }
  func.func @transform_6(%arg0: i32) -> (i32, i32) {
    %c0_i32 = arith.constant 0 : i32
    %c0_i32_0 = arith.constant 0 : i32
    %c0_i32_1 = arith.constant 0 : i32
    return %c0_i32, %c0_i32_0 : i32, i32
  }
  func.func @transform_7(%arg0: i32) -> (i32, i32) {
    %c0_i32 = arith.constant 0 : i32
    %c0_i32_0 = arith.constant 0 : i32
    %c0_i32_1 = arith.constant 0 : i32
    return %c0_i32, %c0_i32_0 : i32, i32
  }
  func.func @transform_8(%arg0: i32) -> (i32, i32) {
    %c0_i32 = arith.constant 0 : i32
    %c0_i32_0 = arith.constant 0 : i32
    %c0_i32_1 = arith.constant 0 : i32
    return %c0_i32, %c0_i32_0 : i32, i32
  }
  func.func @transform_9(%arg0: i32) -> (i32, i32) {
    %c0_i32 = arith.constant 0 : i32
    %c0_i32_0 = arith.constant 0 : i32
    %c0_i32_1 = arith.constant 0 : i32
    return %c0_i32, %c0_i32_0 : i32, i32
  }
  func.func @transform_10(%arg0: i32) -> (i32, i32) {
    %c0_i32 = arith.constant 0 : i32
    %c0_i32_0 = arith.constant 0 : i32
    %c0_i32_1 = arith.constant 0 : i32
    return %c0_i32, %c0_i32_0 : i32, i32
  }
  func.func @transform_11(%arg0: i32) -> (i32, i32) {
    %c0_i32 = arith.constant 0 : i32
    %c0_i32_0 = arith.constant 0 : i32
    %c0_i32_1 = arith.constant 0 : i32
    return %c0_i32, %c0_i32_0 : i32, i32
  }
  func.func @transform_12(%arg0: i32) -> (i32, i32, i32) {
    %c0_i32 = arith.constant 0 : i32
    %c0_i32_0 = arith.constant 0 : i32
    %c0_i32_1 = arith.constant 0 : i32
    return %arg0, %c0_i32, %c0_i32_0 : i32, i32, i32
  }
}

</mosaic_0001>

<bundles_post_ra>
// kernel: tpu_custom_call.1
= control target key start
LH: loop header
LB: loop body
LE: loop exit
PB: predicated region body
PF: predicated region fallthrough
CT: control target
= control target key end

     0   :  { %s7426_s0 = inlined_call_operand.vmem [shape: bf16[2,32,256], index: 0, kind: input, shape index: {}]   ;;  %s7427_s1 = inlined_call_operand.hbm [shape: bf16[2,32,256], index: 1, kind: input, shape index: {}]   ;;  %s7428_s2 = inlined_call_operand.vmem [shape: bf16[32,256], index: 2, kind: input, shape index: {}]   ;;  %s7429_s3 = inlined_call_operand.hbm [shape: bf16[32,256], index: 3, kind: input, shape index: {}]   ;;  %s7430_s4 = inlined_call_operand.vmem [shape: bf16[32,32], index: 4, kind: input, shape index: {}]   ;;  %s7431_s5 = inlined_call_operand.hbm [shape: bf16[32,32], index: 5, kind: input, shape index: {}]   ;;  %s7432_s6 = inlined_call_operand.hbm [shape: bf16[32,32], index: 6, kind: input, shape index: {}]   ;;  %s7433_s7 = inlined_call_operand.hbm [shape: bf16[32,32], index: 7, kind: input, shape index: {}]   ;;  %s7434_s8 = inlined_call_operand.vmem [shape: f32[32,1], index: 8, kind: input, shape index: {}]   ;;  %s7435_s9 = inlined_call_operand.vmem [shape: f32[32,1], index: 9, kind: input, shape index: {}]   ;;  %s7436_s10 = inlined_call_operand.vmem [shape: f32[32,1], index: 10, kind: input, shape index: {}]   ;;  %s7437_s11 = inlined_call_operand.vmem [shape: f32[1,32], index: 11, kind: input, shape index: {}]   ;;  %s7438_s12 = inlined_call_operand.vmem [shape: f32[2,196,32], index: 12, kind: output, shape index: {}]  }
   0x1   :  { %7502 = sst [smem:[#allocation63_spill]] %s7430_s4 }
   0x2   :  { %7503 = sst [smem:[#allocation64_spill]] %s7434_s8 }
   0x3   :  { %7504 = sst [smem:[#allocation65_spill]] %s7436_s10 }
   0x4   :  { %7505 = sst [smem:[#allocation66_spill]] %s7437_s11 }
   0x5   :  { %7506 = sst [smem:[#allocation67_spill]] %s7438_s12 }
   0x6   :  { %17 = vsyncpa [#allocation3], 0 }
   0x7   :  { %19 = vsyncpa [#allocation3 + $0x1], 0 }
   0x8   :  { %20 = vsyncpa [#allocation5], 0 }
   0x9   :  { %21 = vsyncpa [#allocation8], 0  ;;  %s5422_s21 = smov 0   ;;  %s5424_s22 = smov 0  }
   0xa   :  { %s5426_s23 = smov 0   ;;  %s5428_s24 = smov 0  }
   0xb LB: > { %s5441_s25 = sadd.s32 4294967295, %s5345_s24   ;;  %p73_p0 = scmp.ne.s32.totalorder %s5337_s22, %s5333_s21  ;;  %s5345_s24 = sphi %s5428_s24, %s7706_s24   ;;  %s5341_s23 = sphi %s5426_s23, %s7705_s23   ;;  %s5337_s22 = sphi %s5424_s22, %s7704_s22   ;;  %s5333_s21 = sphi %s5422_s21, %s7703_s21  }
   0xc   : > { %p7439_p1 = scmp.eq.s32.totalorder %s5441_s25, 0  ;;  %p4642_p2 = scmp.ge.s32.totalorder %s5345_s24, 1 }
   0xd   : > { %p320_p3 = scmp.lt.s32.totalorder %s5345_s24, 3  ;;  %s5347_s28 = smov [#allocation4]  }
   0xe   : > { %p5449_p4 = por %p7439_p1, %p73_p0  ;;  %s335_s29 = sshll.u32 %s5347_s28, 4  ;;  %s336_s29 = int_to_ptr.vmem [resolvable:$true] %s335_s29 }
   0xf   : > { %p5453_p5 = pnand %p4642_p2, %p320_p3  ;;  %s5348_s13 = smov [#allocation7]  }
  0x10   : > { %s7507_s26 = scalar_select %p5449_p4, 1, 0 }
  0x11   : > { %s7508_s27 = scalar_select %p5453_p5, 1, 0 }
  0x12   : > { %p4844_p6 = pneg %p5453_p5  ;;  %s364_s14 = sshll.u32 %s5348_s13, 4  ;;  %s365_s14 = int_to_ptr.vmem [resolvable:$true] %s364_s14 }
  0x13   : > { %s5161_s17 = scalar_lea.hbm %s7429_s3, 512 }
  0x14   : > { %p5461_p7 = pnand %p4844_p6, %p7439_p1  ;;  %p5162_p8 = scmp.ne.s32.totalorder %s7429_s3, %s5161_s17 }
  0x15   : > { %p5168_p12 = scmp.lt.u32.totalorder %s5161_s17, %s7429_s3 }
  0x16   : > { %p5473_p9 = pneg %p5461_p7 }
  0x18   : > { %p5164_p10 = pnand %p5473_p9, %p5162_p8 }
  0x1a   : > { %p5165_p11 = pneg %p5164_p10 }
  0x1c   : > { %p5170_p13 = pnand %p5168_p12, %p5165_p11 }
  0x1e   : > { %5173 = shalt.err (!%p5170_p13)
}
  0x1f   : > { %s5174_s13 = scalar_lea.vmem %s336_s29, 512  ;;  %p5182_p6 = scmp.lt.s32.totalorder %s336_s29, %s336_s29 }
  0x20   : > { %p5175_p0 = scmp.ne.s32.totalorder %s336_s29, %s5174_s13  ;;  %p5183_p1 = scmp.lt.s32.totalorder %s5174_s13, %s5174_s13 }
  0x22   : > { %p5177_p2 = pnand %p5175_p0, %p5473_p9  ;;  %p5184_p4 = por %p5183_p1, %p5182_p6 }
  0x24   : > { %p5178_p3 = pneg %p5177_p2 }
  0x26   : > { %p5185_p5 = pnand %p5184_p4, %p5178_p3 }
  0x28   : > { %5188 = shalt.err (!%p5185_p5)
}
  0x29   : > { %s7445_s15 = smov 128   ;;  %s5350_s16 = smov 8  }
  0x2a   : > { %4847 = dma.hbm_to_vmem [thread:$0]  (!%p5461_p7), %s7429_s3, 512, %s336_s29, [#allocation5], %s7445_s15, %s7445_s15, %s5350_s16  }
  0x2b   : > { %s5351_s19 = smov [#allocation6]   ;;  %s5189_s12 = scalar_lea.hbm %s7432_s6, 256 }
  0x2c   : > { %s351_s21 = sshll.u32 %s5351_s19, 4  ;;  %p5190_p1 = scmp.ne.s32.totalorder %s7432_s6, %s5189_s12  ;;  %s352_s21 = int_to_ptr.vmem [resolvable:$true] %s351_s21 }
  0x2d   : > { %p5196_p8 = scmp.lt.u32.totalorder %s5189_s12, %s7432_s6 }
  0x2e   : > { %p5192_p4 = pnand %p5190_p1, %p5473_p9 }
  0x30   : > { %p5193_p5 = pneg %p5192_p4 }
  0x32   : > { %p5198_p10 = pnand %p5196_p8, %p5193_p5 }
  0x34   : > { %5201 = shalt.err (!%p5198_p10)
}
  0x35   : > { %s5202_s29 = scalar_lea.vmem %s365_s14, 256  ;;  %p5210_p0 = scmp.lt.s32.totalorder %s365_s14, %s365_s14 }
  0x36   : > { %p5203_p11 = scmp.ne.s32.totalorder %s365_s14, %s5202_s29  ;;  %p5211_p2 = scmp.lt.s32.totalorder %s5202_s29, %s5202_s29 }
  0x38   : > { %p5205_p12 = pnand %p5203_p11, %p5473_p9  ;;  %p5212_p3 = por %p5211_p2, %p5210_p0 }
  0x3a   : > { %p5206_p13 = pneg %p5205_p12 }
  0x3c   : > { %p5213_p6 = pnand %p5212_p3, %p5206_p13 }
  0x3e   : > { %5216 = shalt.err (!%p5213_p6)
}
  0x3f   : > { %s5352_s10 = smov 64   ;;  %s5353_s11 = smov 4  }
  0x40   : > { %4853 = dma.hbm_to_vmem [thread:$0]  (!%p5461_p7), %s7432_s6, 256, %s365_s14, [#allocation8], %s5352_s10, %s5352_s10, %s5353_s11  }
  0x41   : > { %s5217_s18 = scalar_lea.hbm %s7431_s5, 256 }
  0x42   : > { %p5218_p1 = scmp.ne.s32.totalorder %s7431_s5, %s5217_s18  ;;  %p5224_p8 = scmp.lt.u32.totalorder %s5217_s18, %s7431_s5 }
  0x44   : > { %p5220_p4 = pnand %p5218_p1, %p5473_p9 }
  0x46   : > { %p5221_p5 = pneg %p5220_p4 }
  0x48   : > { %p5226_p10 = pnand %p5224_p8, %p5221_p5 }
  0x4a   : > { %5229 = shalt.err (!%p5226_p10)
}
  0x4b   : > { %s5230_s4 = scalar_lea.vmem %s352_s21, 256  ;;  %p5238_p0 = scmp.lt.s32.totalorder %s352_s21, %s352_s21 }
  0x4c   : > { %p5231_p11 = scmp.ne.s32.totalorder %s352_s21, %s5230_s4  ;;  %p5239_p2 = scmp.lt.s32.totalorder %s5230_s4, %s5230_s4 }
  0x4e   : > { %p5233_p12 = pnand %p5231_p11, %p5473_p9  ;;  %p5240_p3 = por %p5239_p2, %p5238_p0 }
  0x50   : > { %p5234_p13 = pneg %p5233_p12 }
  0x52   : > { %p5241_p6 = pnand %p5240_p3, %p5234_p13 }
  0x54   : > { %5244 = shalt.err (!%p5241_p6)
}
  0x55   : > { %4850 = dma.hbm_to_vmem [thread:$0]  (!%p5461_p7), %s7431_s5, 256, %s352_s21, [#allocation5], %s5352_s10, %s5352_s10, %s5353_s11  }
  0x56   : > { %s5354_s12 = smov [#allocation9]   ;;  %s5245_s28 = scalar_lea.hbm %s7433_s7, 256 }
  0x57   : > { %s377_s17 = sshll.u32 %s5354_s12, 4  ;;  %p5246_p1 = scmp.ne.s32.totalorder %s7433_s7, %s5245_s28  ;;  %s378_s17 = int_to_ptr.vmem [resolvable:$true] %s377_s17 }
  0x58   : > { %p5252_p8 = scmp.lt.u32.totalorder %s5245_s28, %s7433_s7 }
  0x59   : > { %p5248_p4 = pnand %p5246_p1, %p5473_p9 }
  0x5b   : > { %p5249_p5 = pneg %p5248_p4 }
  0x5d   : > { %p5254_p10 = pnand %p5252_p8, %p5249_p5 }
  0x5f   : > { %5257 = shalt.err (!%p5254_p10)
}
  0x60   : > { %s5258_s21 = scalar_lea.vmem %s378_s17, 256  ;;  %p5266_p0 = scmp.lt.s32.totalorder %s378_s17, %s378_s17 }
  0x61   : > { %p5259_p11 = scmp.ne.s32.totalorder %s378_s17, %s5258_s21  ;;  %p5267_p2 = scmp.lt.s32.totalorder %s5258_s21, %s5258_s21 }
  0x63   : > { %p5261_p12 = pnand %p5259_p11, %p5473_p9  ;;  %p5268_p3 = por %p5267_p2, %p5266_p0 }
  0x65   : > { %p5262_p13 = pneg %p5261_p12 }
  0x67   : > { %p5269_p6 = pnand %p5268_p3, %p5262_p13 }
  0x69   : > { %5272 = shalt.err (!%p5269_p6)
}
  0x6a   : > { %4856 = dma.hbm_to_vmem [thread:$0]  (!%p5461_p7), %s7433_s7, 256, %s378_s17, [#allocation8], %s5352_s10, %s5352_s10, %s5353_s11  }
  0x6b   : > { %s5556_s20 = sadd.s32 1, %s5345_s24   ;;  %s60_s30 = sadd.s32 1, %s5341_s23 }
  0x6c   : > { %s57_s8 = ssub.s32 %s5345_s24, %s5556_s20  ;;  %p67_p9 = scmp.ne.s32.totalorder %s5341_s23, %s5337_s22 }
  0x6d   : > { %p58_p1 = scmp.eq.s32.totalorder %s57_s8, 0  ;;  %p68_p4 = scmp.eq.s32.totalorder %s5345_s24, 0 }
  0x6e   : > { %p4865_p5 = scmp.lt.s32.totalorder %s5345_s24, 2  ;;  %s411_s12 = sand.u32 1, %s5341_s23  }
  0x6f   : > { %s5567_s18 = scalar_select %p58_p1, %s5341_s23, %s60_s30  }
  0x70   : > { %p69_p8 = por %p68_p4, %p67_p9  ;;  %s4648_s19 = sshll.u32 %s411_s12, 5 }
  0x71   : > { %s4769_s28 = sshll.u32 %s5345_s24, 9  ;;  %s415_s10 = scalar_lea.vmem [#allocation2], %s4648_s19 }
  0x72   : > { %s5573_s4 = scalar_lea.hbm %s7427_s1, %s4769_s28  ;;  %s422_s11 = sshll.u32 %s415_s10, 4  ;;  %s5579_s11 = int_to_ptr.vmem [resolvable:$true] %s422_s11 }
  0x73   : > { %p5575_p7 = pnand %p4865_p5, %p69_p8  ;;  %s5581_s24 = scalar_lea.sflag [#allocation3], %s411_s12 }
  0x74   : > { %s5273_s21 = scalar_lea.hbm %s5573_s4, 512  ;;  %s5278_s30 = scalar_lea.hbm %s7427_s1, 1024 }
  0x75   : > { %p5274_p10 = scmp.ne.s32.totalorder %s5573_s4, %s5273_s21  ;;  %p5275_p11 = pneg %p5575_p7 }
  0x76   : > { %p5279_p0 = scmp.lt.u32.totalorder %s5573_s4, %s7427_s1  ;;  %p5280_p2 = scmp.lt.u32.totalorder %s5278_s30, %s5273_s21 }
  0x77   : > { %p5276_p12 = pnand %p5275_p11, %p5274_p10  ;;  %p5282_p6 = scmp.lt.u32.totalorder %s5273_s21, %s5573_s4 }
  0x78   : > { %p5281_p3 = por %p5280_p2, %p5279_p0 }
  0x79   : > { %p5277_p13 = pneg %p5276_p12 }
  0x7a   : > { %p5283_p9 = por %p5282_p6, %p5281_p3 }
  0x7c   : > { %p5284_p1 = pnand %p5283_p9, %p5277_p13 }
  0x7e   : > { %5287 = shalt.err (!%p5284_p1)
}
  0x7f   : > { %s5288_s12 = scalar_lea.vmem %s5579_s11, 512  ;;  %s5355_s28 = smov [#allocation2]  }
  0x80   : > { %p5289_p4 = scmp.ne.s32.totalorder %s5579_s11, %s5288_s12  ;;  %s5293_s13 = sshll.u32 %s5355_s28, 4  ;;  %s5294_s13 = int_to_ptr.vmem [resolvable:$false] %s5293_s13 }
  0x81   : > { %s5295_s29 = scalar_lea.vmem %s5294_s13, 1024  ;;  %p5296_p10 = scmp.lt.s32.totalorder %s5579_s11, %s5294_s13 }
  0x82   : > { %p5291_p5 = pnand %p5289_p4, %p5275_p11  ;;  %p5297_p12 = scmp.lt.s32.totalorder %s5295_s29, %s5288_s12 }
  0x84   : > { %p5292_p8 = pneg %p5291_p5  ;;  %p5298_p0 = por %p5297_p12, %p5296_p10 }
  0x86   : > { %p5299_p2 = pnand %p5298_p0, %p5292_p8 }
  0x88   : > { %5302 = shalt.err (!%p5299_p2)
}
  0x89   : > { %s7512_s10 = smov 128   ;;  %p7513_p11 = scmp.ne.s32.totalorder %s7508_s27, 0 }
  0x8a   : > { %4860 = dma.hbm_to_vmem [thread:$0]  (!%p5575_p7), %s5573_s4, 512, %s5579_s11, %s5581_s24, %s7512_s10, %s7512_s10, %s5350_s16  }
  0x8b   : > { %434 = sbr.rel (%p7513_p11) target bundleno = 2761 (0xac9), region = 68 }
  0x92   : > { %s436_s21 = sand.u32 1, %s5337_s22   ;;  %p7514_p13 = scmp.ne.s32.totalorder %s7507_s26, 0 }
  0x93   : > { %s4652_s15 = sshll.u32 %s436_s21, 5  ;;  %s437_s14 = scalar_lea.sflag [#allocation3], %s436_s21 }
  0x94   : > { %s440_s30 = scalar_lea.vmem [#allocation2], %s4652_s15 }
  0x95   : > { %5320 = dma.done.wait (%p7514_p13), %s437_s14, 512  }
  0x96   : > { %5322 = vsyncadd (%p7514_p13), %s437_s14, 4294966784  ;;  %p7515_p3 = scmp.eq.s32.totalorder %s5441_s25, 0 }
  0x98   : > { %5324 = dma.done.wait (%p7515_p3), [#allocation5], 768   ;;  %p7516_p6 = pmov %p7515_p3 }
  0x99   : > { %p7517_p7 = pmov %p7515_p3 }
  0x9a   : > { %5326 = vsyncadd (%p7516_p6), [#allocation5], 4294966528 }
  0x9b   : > { %5328 = dma.done.wait (%p7517_p7), [#allocation8], 512   ;;  %p7518_p9 = pmov %p7515_p3 }
  0x9c   : > { %p502_p1 = scmp.lt.s32.totalorder %s5441_s25, 1  ;;  %v7446_v0 = vmov 0   ;;  %v525_v1 = vld [vmem:[%s440_s30] sm:$0xff]  ;;  %v526_v2 = vld [vmem:[%s440_s30 + $0x8] sm:$0xff]  ;;  %v527_v6 = vld [vmem:[%s440_s30 + $0x10] sm:$0xff]  ;;  %vm595_vm0 = vcmask 261120  }
  0x9d   : > { %5330 = vsyncadd (%p7518_p9), [#allocation8], 4294966784  ;;  %755 = vmatprep.mubr.bf16.mxu1 %v7446_v0  ;;  %4911 = vset.pattern.permute.xlu0 %v7446_v0  ;;  %v529_v3 = vld [vmem:[#allocation4] sm:$0xff]  ;;  %v530_v4 = vld [vmem:[#allocation4 + $0x8] sm:$0xff]  ;;  %s7520_s17 = sld [smem:[#allocation63_spill]]  ;;  %vm1027_vm1 = vcmask 1043456  }
  0x9e   : > { %s7708_s25 = smov (!%p502_p1, %s5441_s25), 1  ;;  %634 = vmatprep.mubr.bf16.mxu0 %v7446_v0  ;;  %4912 = vset.pattern.permute.xlu1 %v7446_v0  ;;  %v533_v5 = vadd.bf16 %v529_v3, %v525_v1  ;;  %v528_v7 = vld [vmem:[%s440_s30 + $0x18] sm:$0xff]  ;;  %v534_v8 = vadd.bf16 %v530_v4, %v526_v2  ;;  %v531_v9 = vld [vmem:[#allocation4 + $0x10] sm:$0xff]  ;;  %v663_v13 = vld [vmem:[%s7435_s9] sm:$0xff]  ;;  %s7523_s28 = sld [smem:[#allocation65_spill]]  ;;  %vm978_vm2 = vcmask 64512  }
  0x9f   : > { %s4770_s26 = sshll.u32 %s7708_s25, 5  ;;  %v532_v10 = vld [vmem:[#allocation4 + $0x18] sm:$0xff]  ;;  %v535_v11 = vadd.bf16 %v531_v9, %v527_v6  ;;  %669 = vperm.xlu0 %4911, %v663_v13   ;;  %v664_v16 = vld [vmem:[%s7435_s9 + $0x8] sm:$0xff]  ;;  %v517_v20 = vld [vmem:[%s7428_s2] sm:$0xff]  ;;  %s4825_s12 = smul.u32 200, %s7708_s25  ;;  %vm4522_vm4 = vcmask 257024  }
  0xa0   : > { %s506_s4 = scalar_lea.vmem %s7426_s0, %s4770_s26  ;;  %v536_v12 = vadd.bf16 %v532_v10, %v528_v7  ;;  %v4671_v14 = vcombine.high %v533_v5, %v534_v8  ;;  %v4670_v15 = vcombine.low %v533_v5, %v534_v8  ;;  %v518_v21 = vld [vmem:[%s7428_s2 + $0x8] sm:$0xff]  ;;  %v519_v26 = vld [vmem:[%s7428_s2 + $0x10] sm:$0xff]  ;;  %v520_v27 = vld [vmem:[%s7428_s2 + $0x18] sm:$0xff]  ;;  %s7519_s26 = sld [smem:[#allocation64_spill]] }
  0xa1   : > { %v513_v17 = vld [vmem:[%s506_s4] sm:$0xff]  ;;  %v514_v18 = vld [vmem:[%s506_s4 + $0x8] sm:$0xff]  ;;  %v515_v22 = vld [vmem:[%s506_s4 + $0x10] sm:$0xff]  ;;  %s7701_s10 = sld [smem:[#allocation66_spill]]  ;;  %s7702_s14 = sld [smem:[#allocation67_spill]] }
  0xa2   : > { %v4673_v19 = vcombine.high %v535_v11, %v536_v12  ;;  %723 = vmatprep.subr.bf16.mxu1 %v4671_v14  ;;  %v521_v23 = vadd.bf16 %v517_v20, %v513_v17  ;;  %v522_v24 = vadd.bf16 %v518_v21, %v514_v18  ;;  %v516_v25 = vld [vmem:[%s506_s4 + $0x18] sm:$0xff]  ;;  %v4672_v28 = vcombine.low %v535_v11, %v536_v12  ;;  %v4913_v34 = vld [vmem:[#allocation6] sm:$0xff]   ;;  %v4916_v40 = vld [vmem:[#allocation7] sm:$0xff]  }
  0xa3   : > { %724 = vmatpush1.bf16.msra.mxu1 %v4670_v15  ;;  %v523_v29 = vadd.bf16 %v519_v26, %v515_v22  ;;  %v524_v30 = vadd.bf16 %v520_v27, %v516_v25  ;;  %674 = vperm.xlu0 %4911, %v664_v16   ;;  %v4914_v38 = vld [vmem:[%s7520_s17] sm:$0xff]   ;;  %v4915_v39 = vld [vmem:[%s7520_s17 + $0x8] sm:$0xff]  }
  0xa4   : > { %725 = vmatprep.subr.bf16.mxu1 %v4673_v19  ;;  %v4663_v31 = vcombine.high %v521_v23, %v522_v24  ;;  %v4662_v32 = vcombine.low %v521_v23, %v522_v24  ;;  %v4917_v41 = vld [vmem:[#allocation6 + $0x8] sm:$0xff]   ;;  %v784_v13 = vld [vmem:[%s7523_s28] sm:$0xff]  ;;  %v665_v23 = vld [vmem:[%s7435_s9 + $0x10] sm:$0xff] }
  0xa5   : > { %v4665_v33 = vcombine.high %v523_v29, %v524_v30  ;;  %v4664_v36 = vcombine.low %v523_v29, %v524_v30  ;;  %v785_v11 = vld [vmem:[%s7523_s28 + $0x8] sm:$0xff] }
  0xa6   : > { %602 = vmatprep.subr.bf16.mxu0 %v4663_v31  ;;  %v541_v35 = vld [vmem:[%s7519_s26] sm:$0xff]  ;;  %v542_v37 = vld [vmem:[%s7519_s26 + $0x8] sm:$0xff]  ;;  %v544_v22 = vld [vmem:[%s7519_s26 + $0x18] sm:$0xff] }
  0xa7   : > { %726 = vmatpush1.bf16.msra.mxu1 %v4672_v28  ;;  %603 = vmatpush1.bf16.msra.mxu0 %v4662_v32  ;;  %v543_v25 = vld [vmem:[%s7519_s26 + $0x10] sm:$0xff]  ;;  %s7337_s30 = scalar_lea.vmem %s7702_s14, %s4825_s12 }
  0xa8   : > { %604 = vmatprep.subr.bf16.mxu0 %v4665_v33  ;;  %547 = vperm.xlu1 %4912, %v541_v35  }
  0xaa   : > { %4674 = vmatmul.mubr.msk.bf16.vlgmr.msra.gmra.mrb[0].mxu1 %vm595_vm0, %v4913_v34 }
  0xab   : > { %605 = vmatpush1.bf16.msra.mxu0 %v4664_v36  ;;  %765 = vmatprep.mubr.bf16.mxu1 %v7446_v0 }
  0xac   : > { %824 = vmatprep.subr.bf16.mxu0 %v4671_v14  ;;  %552 = vperm.xlu1 %4912, %v542_v37   ;;  %v4918_v14 = vld [vmem:[#allocation7 + $0x8] sm:$0xff]  }
  0xae   : > { %4666 = vmatmul.mubr.msk.bf16.vlgmr.msra.gmra.mrb[0].mxu0 %vm595_vm0, %v4914_v38 }
  0xaf   : > { %644 = vmatprep.mubr.bf16.mxu0 %v7446_v0  ;;  %825 = vmatpush1.bf16.msra.mxu0 %v4670_v15 }
  0xb0   : > { %826 = vmatprep.subr.bf16.mxu0 %v4673_v19  ;;  %v666_v19 = vld [vmem:[%s7435_s9 + $0x18] sm:$0xff] }
  0xb2   : > { %4675 = vmatmul.mubr.msk.bf16.gmra.mrb[4].mxu1 %vm595_vm0, %v4917_v41 }
  0xb3   : > { %827 = vmatpush1.bf16.msra.mxu0 %v4672_v28  ;;  %1066 = vmatprep.mubr.bf16.mxu1 %v7446_v0 }
  0xb6   : > { %4667 = vmatmul.mubr.msk.bf16.gmra.mrb[4].mxu0 %vm595_vm0, %v4915_v39 }
  0xb7   : > { %856 = vmatprep.mubr.bf16.mxu0 %v7446_v0 }
  0xbe   : > { %4678 = vmatmul.mubr.msk.bf16.vlgmr.msra.gmra.mrb[8].mxu0 %vm595_vm0, %v4916_v40 }
  0xbf   : > { %866 = vmatprep.mubr.bf16.mxu0 %v7446_v0 }
  0xc6   : > { %4679 = vmatmul.mubr.msk.bf16.gmra.mrb[12].mxu0 %vm595_vm0, %v4918_v14 }
 0x11e   : > { %v670_v42 = vpop.permute.xlu0 %669 }
 0x122   : > { %v675_v46 = vpop.permute.xlu0 %674 }
 0x127   : > { %v548_v43 = vpop.permute.xlu1 %547 }
 0x12b   : > { %v553_v54 = vpop.permute.xlu1 %552 }
 0x17d   : > { %v757_v44 = vpop.f32.mrb[0].mxu1 }
 0x17e   : > { %v759_v45 = vpop.f32.mrb[1].mxu1  ;;  %v758_v48 = vadd.f32 %v757_v44, %v670_v42 }
 0x17f   : > { %v761_v47 = vpop.f32.mrb[2].mxu1  ;;  %v760_v51 = vadd.f32 %v759_v45, %v670_v42 }
 0x180   : > { %v762_v49 = vadd.f32 %v761_v47, %v675_v46  ;;  %v763_v50 = vpop.f32.mrb[3].mxu1 }
 0x181   : > { %v764_v52 = vadd.f32 %v763_v50, %v675_v46  ;;  %v636_v53 = vpop.f32.mrb[0].mxu0 }
 0x182   : > { %v776_v55 = vpack.c.bf16 %v762_v49, %v758_v48  ;;  %v637_v56 = vadd.f32 %v636_v53, %v548_v43  ;;  %v638_v57 = vpop.f32.mrb[1].mxu0 }
 0x183   : > { %v777_v58 = vpack.c.bf16 %v764_v52, %v760_v51  ;;  %v639_v59 = vadd.f32 %v638_v57, %v548_v43  ;;  %v640_v60 = vpop.f32.mrb[2].mxu0 }
 0x184   : > { %946 = vxpose.xlu0.c.b16.start.end [1/1] (short) %v776_v55, 128  ;;  %v641_v61 = vadd.f32 %v640_v60, %v553_v54  ;;  %v642_v62 = vpop.f32.mrb[3].mxu0  ;;  %v1806_v15 = vrot.slane %v776_v55, 4 }
 0x185   : > { %962 = vxpose.xlu1.c.b16.start.end [1/1] (short) %v777_v58, 128  ;;  %v643_v63 = vadd.f32 %v642_v62, %v553_v54  ;;  %v1807_v16 = vrot.slane %v777_v58, 4  ;;  %v5706_v17 = vpop.f32.mrb[4].mxu1 }
 0x186   : > { %v5679_v1 = vpack.c.bf16 %v641_v61, %v637_v56  ;;  %v5708_v18 = vpop.f32.mrb[5].mxu1 }
 0x187   : > { %v5681_v2 = vpack.c.bf16 %v643_v63, %v639_v59  ;;  %v5713_v20 = vpop.f32.mrb[6].mxu1 }
 0x188   : > { %7521 = vst [vmem:[#allocation13_spill] sm:$0xff] %v5679_v1  ;;  %v1029_v3 = vsel %vm1027_vm1, %v5679_v1, 0  ;;  %v5715_v21 = vpop.f32.mrb[7].mxu1 }
 0x189   : > { %7522 = vst [vmem:[#allocation14_spill] sm:$0xff] %v5681_v2  ;;  %4680 = vmatprep.subr.msk.bf16.mxu1 %vm1027_vm1, %v5681_v2  ;;  %v5687_v4 = vpop.f32.mrb[4].mxu0 }
 0x18a   : > { %1035 = vmatpush1.bf16.msra.mxu1 %v1029_v3  ;;  %v5689_v5 = vpop.f32.mrb[5].mxu0 }
 0x18b   : > { %v5691_v6 = vpop.f32.mrb[6].mxu0 }
 0x18c   : > { %v5693_v7 = vpop.f32.mrb[7].mxu0 }
 0x191   : > { %v5695_v8 = vpop.f32.mrb[8].mxu0 }
 0x192   : > { %v5697_v9 = vpop.f32.mrb[9].mxu0 }
 0x193   : > { %v862_v10 = vpop.f32.mrb[10].mxu0 }
 0x194   : > { %v864_v12 = vpop.f32.mrb[11].mxu0 }
 0x1a5   : > { %795 = vperm.xlu1 %4912, %v785_v11  }
 0x1a9   : > { %790 = vperm.xlu0 %4911, %v784_v13  }
 0x1c7   : > { %1810 = vxpose.xlu0.c.b16.start.end [1/1] (short) %v1806_v15, 128 }
 0x1c8   : > { %1826 = vxpose.xlu1.c.b16.start.end [1/1] (short) %v1807_v16, 128 }
 0x1e8   : > { %684 = vperm.xlu1 %4912, %v666_v19  }
 0x1ea   : > { %v954_v24 = vpop.trf.xlu0 }
 0x1eb   : > { %4681 = vmatmul.mubr.msk.bf16.vlgmr.msra.gmra.mrb[8].mxu1 %vm978_vm2, %v954_v24  ;;  %v970_v27 = vpop.trf.xlu1 }
 0x1ec   : > { %562 = vperm.xlu1 %4912, %v544_v22   ;;  %679 = vperm.xlu0 %4911, %v665_v23  }
 0x1ed   : > { %1076 = vmatprep.mubr.bf16.mxu1 %v7446_v0 }
 0x1ee   : > { %v955_v26 = vpop.trf.xlu0 }
 0x1ef   : > { %v971_v29 = vpop.trf.xlu1 }
 0x1f0   : > { %557 = vperm.xlu0 %4911, %v543_v25  }
 0x1f2   : > { %v956_v28 = vpop.trf.xlu0 }
 0x1f3   : > { %4682 = vmatmul.mubr.msk.bf16.gmra.mrb[12].mxu1 %vm978_vm2, %v955_v26  ;;  %v972_v31 = vpop.trf.xlu1 }
 0x1f4   : > { %1086 = vmatprep.mubr.bf16.mxu1 %v7446_v0 }
 0x1f6   : > { %v957_v30 = vpop.trf.xlu0 }
 0x1f7   : > { %v973_v32 = vpop.trf.xlu1 }
 0x1fa   : > { %v958_v33 = vpop.trf.xlu0 }
 0x1fb   : > { %4683 = vmatmul.mubr.msk.bf16.gmra.mrb[16].mxu1 %vm978_vm2, %v956_v28  ;;  %v974_v34 = vpop.trf.xlu1 }
 0x1fc   : > { %1096 = vmatprep.mubr.bf16.mxu1 %v7446_v0 }
 0x1fe   : > { %v959_v35 = vpop.trf.xlu0 }
 0x1ff   : > { %v975_v36 = vpop.trf.xlu1 }
 0x202   : > { %v960_v37 = vpop.trf.xlu0 }
 0x203   : > { %4684 = vmatmul.mubr.msk.bf16.gmra.mrb[20].mxu1 %vm978_vm2, %v957_v30  ;;  %v976_v38 = vpop.trf.xlu1 }
 0x204   : > { %1106 = vmatprep.mubr.bf16.mxu1 %v7446_v0 }
 0x206   : > { %v961_v40 = vpop.trf.xlu0 }
 0x207   : > { %v977_v39 = vpop.trf.xlu1 }
 0x20b   : > { %4685 = vmatmul.mubr.msk.bf16.gmra.mrb[24].mxu1 %vm978_vm2, %v958_v33 }
 0x20c   : > { %1116 = vmatprep.mubr.bf16.mxu1 %v7446_v0 }
 0x213   : > { %4686 = vmatmul.mubr.msk.bf16.gmra.mrb[28].mxu1 %vm978_vm2, %v959_v35 }
 0x214   : > { %1126 = vmatprep.mubr.bf16.mxu1 %v7446_v0 }
 0x21b   : > { %4687 = vmatmul.mubr.msk.bf16.gmra.mrb[32].mxu1 %vm978_vm2, %v960_v37 }
 0x21c   : > { %1136 = vmatprep.mubr.bf16.mxu1 %v7446_v0 }
 0x223   : > { %4688 = vmatmul.mubr.msk.bf16.gmra.mrb[36].mxu1 %vm978_vm2, %v961_v40 }
 0x224   : > { %v796_v41 = vpop.permute.xlu1 %795  ;;  %1146 = vmatprep.mubr.bf16.mxu1 %v7446_v0 }
 0x225   : > { %v863_v42 = vadd.f32 %v862_v10, %v796_v41  ;;  %v865_v44 = vadd.f32 %v864_v12, %v796_v41 }
 0x228   : > { %v791_v43 = vpop.permute.xlu0 %790 }
 0x229   : > { %v859_v45 = vadd.f32 %v5695_v8, %v791_v43  ;;  %v861_v46 = vadd.f32 %v5697_v9, %v791_v43 }
 0x22b   : > { %v5744_v47 = vpack.c.bf16 %v863_v42, %v859_v45  ;;  %v878_v48 = vpack.c.bf16 %v865_v44, %v861_v46  ;;  %4689 = vmatmul.mubr.msk.bf16.gmra.mrb[40].mxu1 %vm978_vm2, %v970_v27 }
 0x22c   : > { %1156 = vmatprep.mubr.bf16.mxu1 %v7446_v0 }
 0x22d   : > { %7524 = vst [vmem:[#allocation15_spill] sm:$0xff] %v5744_v47  ;;  %1791 = vmatprep.mubr.bf16.mxu0 %v878_v48  ;;  %v5753_v50 = vpop.trf.xlu0  ;;  %v2564_v3 = vrot.slane %v878_v48, 4 }
 0x22e   : > { %v5750_v49 = vpop.trf.xlu1  ;;  %7526 = vst [vmem:[#allocation17_spill] sm:$0xff] %v5753_v50 }
 0x22f   : > { %7525 = vst [vmem:[#allocation16_spill] sm:$0xff] %v5750_v49 }
 0x231   : > { %v5758_v52 = vpop.trf.xlu0 }
 0x232   : > { %v5756_v51 = vpop.trf.xlu1  ;;  %7528 = vst [vmem:[#allocation19_spill] sm:$0xff] %v5758_v52 }
 0x233   : > { %4690 = vmatmul.mubr.msk.bf16.gmra.mrb[44].mxu1 %vm978_vm2, %v971_v29  ;;  %7527 = vst [vmem:[#allocation18_spill] sm:$0xff] %v5756_v51 }
 0x234   : > { %1166 = vmatprep.mubr.bf16.mxu1 %v7446_v0 }
 0x235   : > { %v5764_v54 = vpop.trf.xlu0 }
 0x236   : > { %v5761_v53 = vpop.trf.xlu1  ;;  %7530 = vst [vmem:[#allocation21_spill] sm:$0xff] %v5764_v54 }
 0x237   : > { %7529 = vst [vmem:[#allocation20_spill] sm:$0xff] %v5761_v53 }
 0x239   : > { %v5770_v56 = vpop.trf.xlu0 }
 0x23a   : > { %v5766_v55 = vpop.trf.xlu1  ;;  %7532 = vst [vmem:[#allocation23_spill] sm:$0xff] %v5770_v56 }
 0x23b   : > { %4691 = vmatmul.mubr.msk.bf16.gmra.mrb[48].mxu1 %vm978_vm2, %v972_v31  ;;  %7531 = vst [vmem:[#allocation22_spill] sm:$0xff] %v5766_v55 }
 0x23c   : > { %1176 = vmatprep.mubr.bf16.mxu1 %v7446_v0 }
 0x23d   : > { %v5775_v58 = vpop.trf.xlu0 }
 0x23e   : > { %v5772_v57 = vpop.trf.xlu1  ;;  %7534 = vst [vmem:[#allocation25_spill] sm:$0xff] %v5775_v58 }
 0x23f   : > { %7533 = vst [vmem:[#allocation24_spill] sm:$0xff] %v5772_v57 }
 0x241   : > { %v5780_v60 = vpop.trf.xlu0 }
 0x242   : > { %v5778_v59 = vpop.trf.xlu1  ;;  %7536 = vst [vmem:[#allocation27_spill] sm:$0xff] %v5780_v60 }
 0x243   : > { %4692 = vmatmul.mubr.msk.bf16.gmra.mrb[52].mxu1 %vm978_vm2, %v973_v32  ;;  %7535 = vst [vmem:[#allocation26_spill] sm:$0xff] %v5778_v59 }
 0x244   : > { %1186 = vmatprep.mubr.bf16.mxu1 %v7446_v0 }
 0x245   : > { %v5786_v62 = vpop.trf.xlu0 }
 0x246   : > { %v5783_v61 = vpop.trf.xlu1  ;;  %7538 = vst [vmem:[#allocation29_spill] sm:$0xff] %v5786_v62 }
 0x247   : > { %7537 = vst [vmem:[#allocation28_spill] sm:$0xff] %v5783_v61 }
 0x249   : > { %v5791_v8 = vpop.trf.xlu0 }
 0x24a   : > { %v5788_v63 = vpop.trf.xlu1  ;;  %7540 = vst [vmem:[#allocation31_spill] sm:$0xff] %v5791_v8 }
 0x24b   : > { %4693 = vmatmul.mubr.msk.bf16.gmra.mrb[56].mxu1 %vm978_vm2, %v974_v34  ;;  %7539 = vst [vmem:[#allocation30_spill] sm:$0xff] %v5788_v63 }
 0x24c   : > { %1196 = vmatprep.mubr.bf16.mxu1 %v7446_v0 }
 0x253   : > { %4694 = vmatmul.mubr.msk.bf16.gmra.mrb[60].mxu1 %vm978_vm2, %v975_v36 }
 0x254   : > { %1206 = vmatprep.mubr.bf16.mxu1 %v7446_v0 }
 0x25b   : > { %4695 = vmatmul.mubr.msk.bf16.gmra.mrb[64].mxu1 %vm978_vm2, %v976_v38 }
 0x25c   : > { %1216 = vmatprep.mubr.bf16.mxu1 %v7446_v0 }
 0x263   : > { %4696 = vmatmul.mubr.msk.bf16.gmra.mrb[68].mxu1 %vm978_vm2, %v977_v39 }
 0x264   : > { %2599 = vmatprep.mubr.bf16.mxu1 %v2564_v3 }
 0x267   : > { %v685_v9 = vpop.permute.xlu1 %684 }
 0x268   : > { %v772_v11 = vadd.f32 %v5713_v20, %v685_v9  ;;  %v774_v12 = vadd.f32 %v5715_v21, %v685_v9 }
 0x26b   : > { %v680_v10 = vpop.permute.xlu0 %679  ;;  %v563_v13 = vpop.permute.xlu1 %562 }
 0x26c   : > { %v768_v14 = vadd.f32 %v5706_v17, %v680_v10  ;;  %v770_v15 = vadd.f32 %v5708_v18, %v680_v10  ;;  %v651_v22 = vadd.f32 %v5691_v6, %v563_v13  ;;  %v653_v24 = vadd.f32 %v5693_v7, %v563_v13  ;;  %v5805_v17 = vpop.f32.mrb[12].mxu0  ;;  %v787_v6 = vld [vmem:[%s7523_s28 + $0x18] sm:$0xff] }
 0x26d   : > { %v5807_v18 = vpop.f32.mrb[13].mxu0 }
 0x26e   : > { %v778_v16 = vpack.c.bf16 %v772_v11, %v768_v14  ;;  %v779_v19 = vpack.c.bf16 %v774_v12, %v770_v15  ;;  %v5809_v27 = vpop.f32.mrb[14].mxu0 }
 0x26f   : > { %v558_v23 = vpop.permute.xlu0 %557  ;;  %v5814_v7 = vpop.f32.mrb[15].mxu0 }
 0x270   : > { %v647_v25 = vadd.f32 %v5687_v4, %v558_v23  ;;  %v649_v26 = vadd.f32 %v5689_v5, %v558_v23  ;;  %2628 = vxpose.xlu1.c.b16.start.end [1/1] (short) %v779_v19, 128  ;;  %2612 = vxpose.xlu0.c.b16.start.end [1/1] (short) %v778_v16, 128  ;;  %v786_v4 = vld [vmem:[%s7523_s28 + $0x10] sm:$0xff]  ;;  %v3406_v5 = vrot.slane %v778_v16, 4  ;;  %v3407_v28 = vrot.slane %v779_v19, 4 }
 0x272   : > { %v5801_v20 = vpack.c.bf16 %v651_v22, %v647_v25  ;;  %v5803_v21 = vpack.c.bf16 %v653_v24, %v649_v26 }
 0x274   : > { %7541 = vst [vmem:[#allocation32_spill] sm:$0xff] %v5801_v20  ;;  %7542 = vst [vmem:[#allocation33_spill] sm:$0xff] %v5803_v21 }
 0x290   : > { %805 = vperm.xlu1 %4912, %v787_v6  }
 0x295   : > { %800 = vperm.xlu0 %4911, %v786_v4  }
 0x2b3   : > { %3426 = vxpose.xlu1.c.b16.start.end [1/1] (short) %v3407_v28, 128  ;;  %3410 = vxpose.xlu0.c.b16.start.end [1/1] (short) %v3406_v5, 128 }
 0x2be   : > { %v5819_v29 = vpop.f32.mrb[8].mxu1 }
 0x2bf   : > { %v5821_v30 = vpop.f32.mrb[9].mxu1 }
 0x2c0   : > { %v5823_v31 = vpop.f32.mrb[10].mxu1 }
 0x2c1   : > { %v5825_v32 = vpop.f32.mrb[11].mxu1 }
 0x2c6   : > { %v5827_v33 = vpop.f32.mrb[12].mxu1 }
 0x2c7   : > { %v1355_v34 = vmax.f32 %v5819_v29, %v5827_v33  ;;  %v5831_v35 = vpop.f32.mrb[13].mxu1 }
 0x2c8   : > { %v1392_v36 = vmax.f32 %v5821_v30, %v5831_v35  ;;  %v5835_v37 = vpop.f32.mrb[14].mxu1 }
 0x2c9   : > { %v1356_v38 = vmax.f32 %v5823_v31, %v5835_v37  ;;  %v5839_v39 = vpop.f32.mrb[15].mxu1 }
 0x2ca   : > { %v1393_v40 = vmax.f32 %v5825_v32, %v5839_v39 }
 0x2ce   : > { %v5843_v41 = vpop.f32.mrb[16].mxu1 }
 0x2cf   : > { %v1357_v42 = vmax.f32 %v1355_v34, %v5843_v41  ;;  %v5846_v43 = vpop.f32.mrb[17].mxu1 }
 0x2d0   : > { %v1394_v44 = vmax.f32 %v1392_v36, %v5846_v43  ;;  %v5849_v45 = vpop.f32.mrb[18].mxu1 }
 0x2d1   : > { %v1358_v46 = vmax.f32 %v1356_v38, %v5849_v45  ;;  %v5852_v48 = vpop.f32.mrb[19].mxu1 }
 0x2d2   : > { %v1395_v3 = vmax.f32 %v1393_v40, %v5852_v48 }
 0x2d6   : > { %v5855_v9 = vpop.f32.mrb[20].mxu1  ;;  %v5879_v5 = vpop.trf.xlu1 }
 0x2d7   : > { %v1359_v10 = vmax.f32 %v1357_v42, %v5855_v9  ;;  %v5858_v11 = vpop.f32.mrb[21].mxu1  ;;  %7543 = vst [vmem:[#allocation34_spill] sm:$0xff] %v5879_v5  ;;  %v5881_v28 = vpop.trf.xlu0 }
 0x2d8   : > { %v1396_v12 = vmax.f32 %v1394_v44, %v5858_v11  ;;  %v5861_v13 = vpop.f32.mrb[22].mxu1  ;;  %7544 = vst [vmem:[#allocation35_spill] sm:$0xff] %v5881_v28 }
 0x2d9   : > { %v1360_v14 = vmax.f32 %v1358_v46, %v5861_v13  ;;  %v5864_v15 = vpop.f32.mrb[23].mxu1 }
 0x2da   : > { %v1397_v16 = vmax.f32 %v1395_v3, %v5864_v15  ;;  %v5891_v44 = vpop.trf.xlu1 }
 0x2db   : > { %7545 = vst [vmem:[#allocation36_spill] sm:$0xff] %v5891_v44 }
 0x2de   : > { %v5867_v19 = vpop.f32.mrb[24].mxu1 }
 0x2df   : > { %v1361_v22 = vmax.f32 %v1359_v10, %v5867_v19  ;;  %v5870_v23 = vpop.f32.mrb[25].mxu1 }
 0x2e0   : > { %v1398_v24 = vmax.f32 %v1396_v12, %v5870_v23  ;;  %v5873_v25 = vpop.f32.mrb[26].mxu1  ;;  %v5897_v12 = vpop.trf.xlu0 }
 0x2e1   : > { %v1362_v26 = vmax.f32 %v1360_v14, %v5873_v25  ;;  %v5876_v6 = vpop.f32.mrb[27].mxu1  ;;  %7546 = vst [vmem:[#allocation37_spill] sm:$0xff] %v5897_v12 }
 0x2e2   : > { %v1399_v4 = vmax.f32 %v1397_v16, %v5876_v6  ;;  %v5901_v16 = vpop.trf.xlu1 }
 0x2e3   : > { %7547 = vst [vmem:[#allocation38_spill] sm:$0xff] %v5901_v16 }
 0x2e4   : > { %v5909_v44 = vpop.trf.xlu0 }
 0x2e5   : > { %7548 = vst [vmem:[#allocation39_spill] sm:$0xff] %v5909_v44 }
 0x2e6   : > { %v5883_v34 = vpop.f32.mrb[28].mxu1  ;;  %v5915_v12 = vpop.trf.xlu1 }
 0x2e7   : > { %v1363_v36 = vmax.f32 %v1361_v22, %v5883_v34  ;;  %v5886_v38 = vpop.f32.mrb[29].mxu1  ;;  %7549 = vst [vmem:[#allocation40_spill] sm:$0xff] %v5915_v12 }
 0x2e8   : > { %v1400_v40 = vmax.f32 %v1398_v24, %v5886_v38  ;;  %v5889_v42 = vpop.f32.mrb[30].mxu1  ;;  %v5919_v16 = vpop.trf.xlu0 }
 0x2e9   : > { %v1364_v46 = vmax.f32 %v1362_v26, %v5889_v42  ;;  %v5894_v3 = vpop.f32.mrb[31].mxu1  ;;  %7550 = vst [vmem:[#allocation41_spill] sm:$0xff] %v5919_v16 }
 0x2ea   : > { %v1401_v10 = vmax.f32 %v1399_v4, %v5894_v3  ;;  %v5931_v61 = vpop.trf.xlu1 }
 0x2eb   : > { %7551 = vst [vmem:[#allocation42_spill] sm:$0xff] %v5931_v61 }
 0x2ec   : > { %v5933_v12 = vpop.trf.xlu0 }
 0x2ed   : > { %7552 = vst [vmem:[#allocation43_spill] sm:$0xff] %v5933_v12 }
 0x2ee   : > { %v5899_v14 = vpop.f32.mrb[32].mxu1  ;;  %v5943_v55 = vpop.trf.xlu1 }
 0x2ef   : > { %v1365_v22 = vmax.f32 %v1363_v36, %v5899_v14  ;;  %v5904_v0 = vpop.f32.mrb[33].mxu1  ;;  %7553 = vst [vmem:[#allocation44_spill] sm:$0xff] %v5943_v55 }
 0x2f0   : > { %v1402_v24 = vmax.f32 %v1400_v40, %v5904_v0  ;;  %v5907_v5 = vpop.f32.mrb[34].mxu1  ;;  %v5949_v61 = vpop.trf.xlu0 }
 0x2f1   : > { %v1366_v26 = vmax.f32 %v1364_v46, %v5907_v5  ;;  %v5912_v28 = vpop.f32.mrb[35].mxu1  ;;  %7554 = vst [vmem:[#allocation45_spill] sm:$0xff] %v5949_v61 }
 0x2f2   : > { %v1403_v4 = vmax.f32 %v1401_v10, %v5912_v28  ;;  %v5953_v51 = vpop.trf.xlu1 }
 0x2f3   : > { %7556 = vst [vmem:[#allocation47_spill] sm:$0xff] %v5953_v51 }
 0x2f4   : > { %v5961_v55 = vpop.trf.xlu0 }
 0x2f5   : > { %7558 = vst [vmem:[#allocation49_spill] sm:$0xff] %v5961_v55  ;;  %v881_v55 = vlaneseq }
 0x2f6   : > { %v5917_v20 = vpop.f32.mrb[36].mxu1  ;;  %v5967_v61 = vpop.trf.xlu1 }
 0x2f7   : > { %v1367_v36 = vmax.f32 %v1365_v22, %v5917_v20  ;;  %v5922_v21 = vpop.f32.mrb[37].mxu1  ;;  %7559 = vst [vmem:[#allocation50_spill] sm:$0xff] %v5967_v61  ;;  %v882_v50 = vshrl.u32 %v881_v55, 7 }
 0x2f8   : > { %v1404_v40 = vmax.f32 %v1402_v24, %v5922_v21  ;;  %v5925_v63 = vpop.f32.mrb[38].mxu1  ;;  %v5971_v51 = vpop.trf.xlu0 }
 0x2f9   : > { %v1368_v46 = vmax.f32 %v1366_v26, %v5925_v63  ;;  %v5928_v44 = vpop.f32.mrb[39].mxu1  ;;  %7561 = vst [vmem:[#allocation52_spill] sm:$0xff] %v5971_v51 }
 0x2fa   : > { %v1405_v10 = vmax.f32 %v1403_v4, %v5928_v44 }
 0x2fe   : > { %v5935_v59 = vpop.f32.mrb[40].mxu1 }
 0x2ff   : > { %v1369_v22 = vmax.f32 %v1367_v36, %v5935_v59  ;;  %v5938_v16 = vpop.f32.mrb[41].mxu1 }
 0x300   : > { %v1406_v24 = vmax.f32 %v1404_v40, %v5938_v16  ;;  %v5941_v57 = vpop.f32.mrb[42].mxu1 }
 0x301   : > { %v1370_v26 = vmax.f32 %v1368_v46, %v5941_v57  ;;  %v5946_v53 = vpop.f32.mrb[43].mxu1 }
 0x302   : > { %v1407_v4 = vmax.f32 %v1405_v10, %v5946_v53 }
 0x306   : > { %v5951_v12 = vpop.f32.mrb[44].mxu1 }
 0x307   : > { %7555 = vst [vmem:[#allocation46_spill] sm:$0xff] %v5951_v12  ;;  %v1371_v36 = vmax.f32 %v1369_v22, %v5951_v12  ;;  %v5956_v49 = vpop.f32.mrb[45].mxu1 }
 0x308   : > { %v1408_v40 = vmax.f32 %v1406_v24, %v5956_v49  ;;  %v5959_v8 = vpop.f32.mrb[46].mxu1 }
 0x309   : > { %7557 = vst [vmem:[#allocation48_spill] sm:$0xff] %v5959_v8  ;;  %v1372_v46 = vmax.f32 %v1370_v26, %v5959_v8  ;;  %v5964_v62 = vpop.f32.mrb[47].mxu1 }
 0x30a   : > { %v1409_v10 = vmax.f32 %v1407_v4, %v5964_v62 }
 0x30e   : > { %v5969_v60 = vpop.f32.mrb[48].mxu1 }
 0x30f   : > { %7560 = vst [vmem:[#allocation51_spill] sm:$0xff] %v5969_v60  ;;  %v1373_v22 = vmax.f32 %v1371_v36, %v5969_v60  ;;  %v5974_v58 = vpop.f32.mrb[49].mxu1  ;;  %v806_v4 = vpop.permute.xlu1 %805 }
 0x310   : > { %7562 = vst [vmem:[#allocation53_spill] sm:$0xff] %v5974_v58  ;;  %v1410_v24 = vmax.f32 %v1408_v40, %v5974_v58  ;;  %v5977_v56 = vpop.f32.mrb[50].mxu1  ;;  %v873_v51 = vadd.f32 %v5809_v27, %v806_v4  ;;  %v875_v36 = vadd.f32 %v5814_v7, %v806_v4  ;;  %v5999_v27 = vadd.s32 192, %v882_v50 }
 0x311   : > { %7563 = vst [vmem:[#allocation54_spill] sm:$0xff] %v5977_v56  ;;  %v1374_v26 = vmax.f32 %v1372_v46, %v5977_v56  ;;  %v5980_v54 = vpop.f32.mrb[51].mxu1 }
 0x312   : > { %7564 = vst [vmem:[#allocation55_spill] sm:$0xff] %v5980_v54  ;;  %v1411_v61 = vmax.f32 %v1409_v10, %v5980_v54  ;;  %7570 = vst [vmem:[#allocation61_spill] sm:$0xff] %v5999_v27  ;;  %vm938_vm3 = vcmp.lt.s32.totalorder %v5999_v27, 196 }
 0x314   : > { %v801_v52 = vpop.permute.xlu0 %800 }
 0x315   : > { %v869_v47 = vadd.f32 %v5805_v17, %v801_v52  ;;  %v871_v40 = vadd.f32 %v5807_v18, %v801_v52 }
 0x316   : > { %v5987_v1 = vpop.f32.mrb[52].mxu1 }
 0x317   : > { %7565 = vst [vmem:[#allocation56_spill] sm:$0xff] %v5987_v1  ;;  %v5989_v2 = vpack.c.bf16 %v873_v51, %v869_v47  ;;  %v5991_v46 = vpack.c.bf16 %v875_v36, %v871_v40  ;;  %v1375_v56 = vmax.f32 %v1373_v22, %v5987_v1  ;;  %v5994_v60 = vpop.f32.mrb[53].mxu1 }
 0x318   : > { %7568 = vst [vmem:[#allocation59_spill] sm:$0xff] %v5994_v60  ;;  %v1412_v55 = vmax.f32 %v1410_v24, %v5994_v60  ;;  %v5997_v10 = vpop.f32.mrb[54].mxu1 }
 0x319   : > { %7566 = vst [vmem:[#allocation57_spill] sm:$0xff] %v5989_v2  ;;  %7567 = vst [vmem:[#allocation58_spill] sm:$0xff] %v5991_v46  ;;  %v1376_v17 = vmax.f32 %v1374_v26, %v5997_v10  ;;  %v6002_v7 = vpop.f32.mrb[55].mxu1 }
 0x31a   : > { %7569 = vst [vmem:[#allocation60_spill] sm:$0xff] %v5997_v10  ;;  %7571 = vst [vmem:[#allocation62_spill] sm:$0xff] %v6002_v7  ;;  %v1413_v52 = vmax.f32 %v1411_v61, %v6002_v7 }
 0x31b   : > { %v1378_v47 = vmax.f32 %v1376_v17, -1e+30 }
 0x31c   : > { %v1415_v51 = vmax.f32 %v1413_v52, -1e+30 }
 0x31d   : > { %v1380_v18 = vmax.f32 %v1378_v47, -1e+30 }
 0x31e   : > { %v1188_v22 = vpop.f32.mrb[56].mxu1  ;;  %v1417_v4 = vmax.f32 %v1415_v51, -1e+30 }
 0x31f   : > { %v1339_v24 = vsel %vm938_vm3, %v1188_v22, -1e+30  ;;  %v1190_v36 = vpop.f32.mrb[57].mxu1  ;;  %v1382_v10 = vmax.f32 %v1380_v18, -1e+30 }
 0x320   : > { %v1377_v40 = vmax.f32 %v1375_v56, %v1339_v24  ;;  %v1340_v50 = vsel %vm938_vm3, %v1190_v36, -1e+30  ;;  %v1192_v26 = vpop.f32.mrb[58].mxu1  ;;  %v1419_v17 = vmax.f32 %v1417_v4, -1e+30 }
 0x321   : > { %v1414_v2 = vmax.f32 %v1412_v55, %v1340_v50  ;;  %v1194_v46 = vpop.f32.mrb[59].mxu1  ;;  %v1384_v47 = vmax.f32 %v1382_v10, -1e+30 }
 0x322   : > { %v1379_v61 = vmax.f32 %v1377_v40, -1e+30  ;;  %v1421_v54 = vmax.f32 %v1419_v17, -1e+30 }
 0x323   : > { %v1416_v52 = vmax.f32 %v1414_v2, -1e+30 }
 0x324   : > { %v1381_v1 = vmax.f32 %v1379_v61, -1e+30 }
 0x325   : > { %v1418_v7 = vmax.f32 %v1416_v52, -1e+30 }
 0x326   : > { %v1383_v60 = vmax.f32 %v1381_v1, -1e+30  ;;  %v1198_v51 = vpop.f32.mrb[60].mxu1 }
 0x327   : > { %v1420_v58 = vmax.f32 %v1418_v7, -1e+30  ;;  %v1200_v22 = vpop.f32.mrb[61].mxu1 }
 0x328   : > { %v1385_v8 = vmax.f32 %v1383_v60, %v1384_v47  ;;  %v1202_v56 = vpop.f32.mrb[62].mxu1 }
 0x329   : > { %v1422_v12 = vmax.f32 %v1420_v58, %v1421_v54  ;;  %v1204_v27 = vpop.f32.mrb[63].mxu1 }
 0x32a   : > { %v1386_v36 = vrot.slane %v1385_v8, 4 }
 0x32b   : > { %v1423_v26 = vrot.slane %v1422_v12, 4 }
 0x32c   : > { %v1387_v55 = vmax.f32 %v1385_v8, %v1386_v36 }
 0x32d   : > { %v1424_v46 = vmax.f32 %v1422_v12, %v1423_v26 }
 0x32e   : > { %v1388_v18 = vrot.slane %v1387_v55, 2  ;;  %v1208_v40 = vpop.f32.mrb[64].mxu1 }
 0x32f   : > { %v1425_v4 = vrot.slane %v1424_v46, 2  ;;  %v1210_v2 = vpop.f32.mrb[65].mxu1 }
 0x330   : > { %v1389_v61 = vmax.f32 %v1387_v55, %v1388_v18  ;;  %v1212_v52 = vpop.f32.mrb[66].mxu1 }
 0x331   : > { %v1426_v10 = vmax.f32 %v1424_v46, %v1425_v4  ;;  %v1214_v1 = vpop.f32.mrb[67].mxu1 }
 0x332   : > { %v1390_v51 = vrot.slane %v1389_v61, 1 }
 0x333   : > { %v1427_v17 = vrot.slane %v1426_v10, 1 }
 0x334   : > { %v6010_v7 = vmax.f32 %v1389_v61, %v1390_v51 }
 0x335   : > { %v6012_v60 = vmax.f32 %v1426_v10, %v1427_v17 }
 0x336   : > { %v1477_v54 = vsub.f32 %v1339_v24, %v6010_v7  ;;  %v6016_v58 = vsub.f32 -1e+30, %v6010_v7  ;;  %v1429_v8 = vsub.f32 %v5819_v29, %v6010_v7  ;;  %v1431_v12 = vsub.f32 %v5823_v31, %v6010_v7  ;;  %v1218_v27 = vpop.f32.mrb[68].mxu1 }
 0x337   : > { %v1478_v47 = vsub.f32 %v1340_v50, %v6012_v60  ;;  %v6024_v22 = vsub.f32 -1e+30, %v6012_v60  ;;  %v1430_v56 = vsub.f32 %v5821_v30, %v6012_v60  ;;  %v1432_v24 = vsub.f32 %v5825_v32, %v6012_v60  ;;  %v1220_v36 = vpop.f32.mrb[69].mxu1 }
 0x338   : > { %v6031_v26 = vpack.c.bf16 %v6016_v58, %v1477_v54  ;;  %v1493_v29 = vpack.c.bf16 %v1431_v12, %v1429_v8  ;;  %v1434_v31 = vsub.f32 %v5831_v35, %v6012_v60  ;;  %v1222_v55 = vpop.f32.mrb[70].mxu1  ;;  %v1436_v18 = vsub.f32 %v5839_v39, %v6012_v60 }
 0x339   : > { %v6036_v50 = vpack.c.bf16 %v6024_v22, %v1478_v47  ;;  %v1494_v46 = vpack.c.bf16 %v1432_v24, %v1430_v56  ;;  %v1224_v30 = vpop.f32.mrb[71].mxu1  ;;  %v1433_v32 = vsub.f32 %v5827_v33, %v6010_v7  ;;  %v1435_v2 = vsub.f32 %v5835_v37, %v6010_v7 }
 0x33a   : > { %v1496_v40 = vpack.c.bf16 %v1436_v18, %v1434_v31  ;;  %v1438_v35 = vsub.f32 %v5846_v43, %v6012_v60  ;;  %v1440_v61 = vsub.f32 %v5852_v48, %v6012_v60  ;;  %v1526_v52 = vmul.bf16 1069105081, %v1493_v29 }
 0x33b   : > { %v1529_v4 = vmul.bf16 1069105081, %v1494_v46  ;;  %v1437_v10 = vsub.f32 %v5843_v41, %v6010_v7  ;;  %v1439_v39 = vsub.f32 %v5849_v45, %v6010_v7  ;;  %v1495_v33 = vpack.c.bf16 %v1435_v2, %v1433_v32 }
 0x33c   : > { %v1535_v1 = vmul.bf16 1069105081, %v1496_v40  ;;  %v1498_v51 = vpack.c.bf16 %v1440_v61, %v1438_v35  ;;  %v1442_v17 = vsub.f32 %v5858_v11, %v6012_v60  ;;  %v1444_v43 = vsub.f32 %v5864_v15, %v6012_v60 }
 0x33d   : > { %v1497_v37 = vpack.c.bf16 %v1439_v39, %v1437_v10  ;;  %v1441_v48 = vsub.f32 %v5855_v9, %v6010_v7  ;;  %4921 = vpow.bf16 %v1529_v4  ;;  %v1443_v41 = vsub.f32 %v5861_v13, %v6010_v7 }
 0x33e   : > { %v1541_v54 = vmul.bf16 1069105081, %v1498_v51  ;;  %4923 = vpow.bf16 %v1526_v52  ;;  %v1532_v45 = vmul.bf16 1069105081, %v1495_v33  ;;  %v1500_v8 = vpack.c.bf16 %v1444_v43, %v1442_v17 }
 0x33f   : > { %v1446_v12 = vsub.f32 %v5870_v23, %v6012_v60  ;;  %4925 = vpow.bf16 %v1535_v1  ;;  %v1499_v11 = vpack.c.bf16 %v1443_v41, %v1441_v48  ;;  %v1448_v27 = vsub.f32 %v5876_v6, %v6012_v60 }
 0x340   : > { %v1445_v15 = vsub.f32 %v5867_v19, %v6010_v7  ;;  %v1538_v9 = vmul.bf16 1069105081, %v1497_v37  ;;  %v1447_v47 = vsub.f32 %v5873_v25, %v6010_v7  ;;  %v1450_v13 = vsub.f32 %v5886_v38, %v6012_v60 }
 0x341   : > { %4927 = vpow.bf16 %v1541_v54  ;;  %v1547_v56 = vmul.bf16 1069105081, %v1500_v8  ;;  %v1502_v24 = vpack.c.bf16 %v1448_v27, %v1446_v12  ;;  %v1452_v23 = vsub.f32 %v5894_v3, %v6012_v60 }
 0x342   : > { %4929 = vpow.bf16 %v1532_v45  ;;  %v1501_v36 = vpack.c.bf16 %v1447_v47, %v1445_v15  ;;  %v1449_v6 = vsub.f32 %v5883_v34, %v6010_v7  ;;  %v1451_v19 = vsub.f32 %v5889_v42, %v6010_v7  ;;  %v7572_v47 = vld [vmem:[#allocation46_spill] sm:$0xff] }
 0x343   : > { %v1504_v29 = vpack.c.bf16 %v1452_v23, %v1450_v13  ;;  %v1454_v25 = vsub.f32 %v5904_v0, %v6012_v60  ;;  %v1553_v31 = vmul.bf16 1069105081, %v1502_v24  ;;  %v1456_v55 = vsub.f32 %v5912_v28, %v6012_v60 }
 0x344   : > { %v1503_v38 = vpack.c.bf16 %v1451_v19, %v1449_v6  ;;  %4931 = vpow.bf16 %v1547_v56  ;;  %v1544_v3 = vmul.bf16 1069105081, %v1499_v11  ;;  %v1453_v18 = vsub.f32 %v5899_v14, %v6010_v7 }
 0x345   : > { %4933 = vpow.bf16 %v1538_v9  ;;  %v1506_v46 = vpack.c.bf16 %v1456_v55, %v1454_v25  ;;  %v1550_v34 = vmul.bf16 1069105081, %v1501_v36  ;;  %v1455_v42 = vsub.f32 %v5907_v5, %v6010_v7 }
 0x346   : > { %4935 = vpow.bf16 %v1553_v31  ;;  %v1559_v32 = vmul.bf16 1069105081, %v1504_v29  ;;  %v1458_v0 = vsub.f32 %v5922_v21, %v6012_v60  ;;  %v1460_v28 = vsub.f32 %v5928_v44, %v6012_v60  ;;  %v7574_v29 = vld [vmem:[#allocation53_spill] sm:$0xff] }
 0x347   : > { %v1505_v35 = vpack.c.bf16 %v1455_v42, %v1453_v18  ;;  %v1457_v14 = vsub.f32 %v5917_v20, %v6010_v7  ;;  %4937 = vpow.bf16 %v1544_v3  ;;  %v1565_v21 = vmul.bf16 1069105081, %v1506_v46  ;;  %v7575_v3 = vld [vmem:[#allocation55_spill] sm:$0xff] }
 0x348   : > { %v4922_v30 = vpop.eup %4921  ;;  %v1508_v5 = vpack.c.bf16 %v1460_v28, %v1458_v0  ;;  %4939 = vpow.bf16 %v1550_v34  ;;  %v1556_v51 = vmul.bf16 1069105081, %v1503_v38  ;;  %v1459_v20 = vsub.f32 %v5925_v63, %v6010_v7 }
 0x349   : > { %v6088_v40 = vpop.eup %4923  ;;  %v1622_v4 = vunpack.c.l.bf16 %v4922_v30  ;;  %v1624_v2 = vunpack.c.h.bf16 %v4922_v30  ;;  %1759 = vmatprep.subr.bf16.mxu0 %v4922_v30  ;;  %4941 = vpow.bf16 %v1559_v32  ;;  %v1462_v17 = vsub.f32 %v5938_v16, %v6012_v60 }
 0x34a   : > { %v4926_v61 = vpop.eup %4925  ;;  %1760 = vmatpush1.bf16.msra.mxu0 %v6088_v40  ;;  %v1464_v37 = vsub.f32 %v5946_v53, %v6012_v60  ;;  %4943 = vpow.bf16 %v1565_v21  ;;  %v1461_v54 = vsub.f32 %v5935_v59, %v6010_v7  ;;  %v1507_v45 = vpack.c.bf16 %v1459_v20, %v1457_v14 }
 0x34b   : > { %v1722_v52 = vadd.f32 %v1624_v2, %v1622_v4  ;;  %v1626_v10 = vunpack.c.l.bf16 %v4926_v61  ;;  %1761 = vmatprep.subr.bf16.mxu0 %v4926_v61  ;;  %v1628_v1 = vunpack.c.h.bf16 %v4926_v61  ;;  %v1463_v12 = vsub.f32 %v5941_v57, %v6010_v7  ;;  %v7578_v61 = vld [vmem:[#allocation59_spill] sm:$0xff] }
 0x34c   : > { %v4928_v39 = vpop.eup %4927  ;;  %v1510_v8 = vpack.c.bf16 %v1464_v37, %v1462_v17  ;;  %v1466_v63 = vsub.f32 %v5956_v49, %v6012_v60  ;;  %v1562_v27 = vmul.bf16 1069105081, %v1505_v35  ;;  %v1468_v15 = vsub.f32 %v5964_v62, %v6012_v60  ;;  %v7573_v62 = vld [vmem:[#allocation48_spill] sm:$0xff]  ;;  %v7577_v35 = vld [vmem:[#allocation54_spill] sm:$0xff] }
 0x34d   : > { %v6093_v44 = vpop.eup %4929  ;;  %v1723_v33 = vadd.f32 %v1722_v52, %v1626_v10  ;;  %v1630_v48 = vunpack.c.l.bf16 %v4928_v39  ;;  %v1632_v11 = vunpack.c.h.bf16 %v4928_v39  ;;  %4945 = vpow.bf16 %v1556_v51  ;;  %v7579_v52 = vld [vmem:[#allocation62_spill] sm:$0xff]  ;;  %v7581_v51 = vld [vmem:[#allocation60_spill] sm:$0xff] }
 0x34e   : > { %1762 = vmatpush1.bf16.msra.mxu0 %v6093_v44  ;;  %v1571_v59 = vmul.bf16 1069105081, %v1508_v5  ;;  %v1509_v9 = vpack.c.bf16 %v1463_v12, %v1461_v54  ;;  %v1465_v13 = vsub.f32 %v7572_v47, %v6010_v7  ;;  %v1621_v56 = vunpack.c.l.bf16 %v6088_v40 }
 0x34f   : > { %v1724_v43 = vadd.f32 %v1723_v33, %v1628_v1  ;;  %1763 = vmatprep.subr.bf16.mxu0 %v4928_v39  ;;  %v4932_v41 = vpop.eup %4931  ;;  %v1512_v23 = vpack.c.bf16 %v1468_v15, %v1466_v63  ;;  %v1623_v36 = vunpack.c.h.bf16 %v6088_v40  ;;  %v1568_v6 = vmul.bf16 1069105081, %v1507_v45  ;;  %v7576_v40 = vld [vmem:[#allocation51_spill] sm:$0xff]  ;;  %v7580_v1 = vld [vmem:[#allocation56_spill] sm:$0xff] }
 0x350   : > { %v6108_v16 = vpop.eup %4933  ;;  %v1634_v24 = vunpack.c.l.bf16 %v4932_v41  ;;  %v1467_v19 = vsub.f32 %v7573_v62, %v6010_v7  ;;  %v1470_v25 = vsub.f32 %v7574_v29, %v6012_v60  ;;  %v1636_v38 = vunpack.c.h.bf16 %v4932_v41 }
 0x351   : > { %v1725_v53 = vadd.f32 %v1724_v43, %v1630_v48  ;;  %v4936_v57 = vpop.eup %4935  ;;  %4947 = vpow.bf16 %v1562_v27  ;;  %v1472_v46 = vsub.f32 %v7575_v3, %v6012_v60  ;;  %v1577_v34 = vmul.bf16 1069105081, %v1510_v8 }
 0x352   : > { %1764 = vmatpush1.bf16.msra.mxu0 %v6108_v16  ;;  %v6121_v31 = vpop.eup %4937  ;;  %v1638_v18 = vunpack.c.l.bf16 %v4936_v57  ;;  %4949 = vpow.bf16 %v1571_v59  ;;  %v1511_v42 = vpack.c.bf16 %v1467_v19, %v1465_v13  ;;  %v1640_v0 = vunpack.c.h.bf16 %v4936_v57 }
 0x353   : > { %v1726_v49 = vadd.f32 %v1725_v53, %v1632_v11  ;;  %1765 = vmatprep.subr.bf16.mxu0 %v4932_v41  ;;  %v6126_v30 = vpop.eup %4939  ;;  %v1514_v28 = vpack.c.bf16 %v1472_v46, %v1470_v25  ;;  %v1469_v4 = vsub.f32 %v7576_v40, %v6010_v7  ;;  %4951 = vpow.bf16 %v1568_v6 }
 0x354   : > { %v4942_v2 = vpop.eup %4941  ;;  %v1471_v14 = vsub.f32 %v7577_v35, %v6010_v7  ;;  %v1474_v5 = vsub.f32 %v7578_v61, %v6012_v60  ;;  %v1476_v10 = vsub.f32 %v7579_v52, %v6012_v60  ;;  %v1574_v39 = vmul.bf16 1069105081, %v1509_v9 }
 0x355   : > { %v1727_v55 = vadd.f32 %v1726_v49, %v1634_v24  ;;  %v1473_v33 = vsub.f32 %v7580_v1, %v6010_v7  ;;  %v1475_v20 = vsub.f32 %v7581_v51, %v6010_v7  ;;  %v4944_v17 = vpop.eup %4943  ;;  %4953 = vpow.bf16 %v1577_v34 }
 0x356   : > { %1766 = vmatpush1.bf16.msra.mxu0 %v6121_v31  ;;  %v1583_v37 = vmul.bf16 1069105081, %v1512_v23  ;;  %v1513_v43 = vpack.c.bf16 %v1471_v14, %v1469_v4  ;;  %v1516_v48 = vpack.c.bf16 %v1476_v10, %v1474_v5  ;;  %v1642_v41 = vunpack.c.l.bf16 %v4942_v2 }
 0x357   : > { %v1728_v32 = vadd.f32 %v1727_v55, %v1636_v38  ;;  %1767 = vmatprep.subr.bf16.mxu0 %v4936_v57  ;;  %v1515_v45 = vpack.c.bf16 %v1475_v20, %v1473_v33  ;;  %v1685_v60 = vadd.f32 %v1623_v36, %v1621_v56  ;;  %v1644_v12 = vunpack.c.h.bf16 %v4942_v2 }
 0x358   : > { %v6141_v8 = vpop.eup %4945  ;;  %4955 = vpow.bf16 %v1574_v39  ;;  %v1580_v11 = vmul.bf16 1069105081, %v1511_v42  ;;  %v1589_v7 = vmul.bf16 1069105081, %v1514_v28  ;;  %v1625_v53 = vunpack.c.l.bf16 %v6093_v44 }
 0x359   : > { %v1729_v21 = vadd.f32 %v1728_v32, %v1638_v18  ;;  %4957 = vpow.bf16 %v1583_v37  ;;  %v1646_v15 = vunpack.c.l.bf16 %v4944_v17  ;;  %v1627_v9 = vunpack.c.h.bf16 %v6093_v44 }
 0x35a   : > { %1768 = vmatpush1.bf16.msra.mxu0 %v6126_v30  ;;  %4959 = vpow.bf16 %v1580_v11  ;;  %v1586_v57 = vmul.bf16 1069105081, %v1513_v43  ;;  %v1686_v56 = vadd.f32 %v1685_v60, %v1625_v53  ;;  %v1648_v49 = vunpack.c.h.bf16 %v4944_v17 }
 0x35b   : > { %v1730_v54 = vadd.f32 %v1729_v21, %v1640_v0  ;;  %1769 = vmatprep.subr.bf16.mxu0 %v4942_v2  ;;  %4961 = vpow.bf16 %v1589_v7  ;;  %v1595_v24 = vmul.bf16 1069105081, %v1516_v48  ;;  %v1629_v36 = vunpack.c.l.bf16 %v6108_v16 }
 0x35c   : > { %v6145_v59 = vpop.eup %4947  ;;  %v1687_v6 = vadd.f32 %v1686_v56, %v1627_v9  ;;  %v1520_v62 = vpack.c.bf16 %v6024_v22, %v6024_v22  ;;  %v1601_v25 = vmul.bf16 1069105081, %v6036_v50  ;;  %4963 = vpow.bf16 %v1586_v57 }
 0x35d   : > { %v1731_v63 = vadd.f32 %v1730_v54, %v1642_v41  ;;  %v4950_v47 = vpop.eup %4949  ;;  %v1631_v38 = vunpack.c.h.bf16 %v6108_v16  ;;  %4965 = vpow.bf16 %v1595_v24  ;;  %v1592_v3 = vmul.bf16 1069105081, %v1515_v45 }
 0x35e   : > { %1770 = vmatpush1.bf16.msra.mxu0 %v6141_v8  ;;  %v6149_v23 = vpop.eup %4951  ;;  %v1650_v44 = vunpack.c.l.bf16 %v4950_v47  ;;  %v1688_v55 = vadd.f32 %v1687_v6, %v1629_v36  ;;  %v1652_v46 = vunpack.c.h.bf16 %v4950_v47  ;;  %v1633_v34 = vunpack.c.l.bf16 %v6121_v31 }
 0x35f   : > { %v1732_v27 = vadd.f32 %v1731_v63, %v1644_v12  ;;  %1771 = vmatprep.subr.bf16.mxu0 %v4944_v17  ;;  %v1519_v32 = vpack.c.bf16 %v6016_v58, %v6016_v58  ;;  %v1598_v16 = vmul.bf16 1069105081, %v6031_v26  ;;  %4967 = vpow.bf16 %v1601_v25 }
 0x360   : > { %v4954_v29 = vpop.eup %4953  ;;  %v1689_v42 = vadd.f32 %v1688_v55, %v1631_v38  ;;  %v1635_v40 = vunpack.c.h.bf16 %v6121_v31  ;;  %v1607_v2 = vmul.bf16 1069105081, %v1520_v62  ;;  %4969 = vpow.bf16 %v1592_v3 }
 0x361   : > { %v1733_v13 = vadd.f32 %v1732_v27, %v1646_v15  ;;  %v1654_v50 = vunpack.c.l.bf16 %v4954_v29  ;;  %v1656_v35 = vunpack.c.h.bf16 %v4954_v29  ;;  %v1637_v61 = vunpack.c.l.bf16 %v6126_v30 }
 0x362   : > { %1772 = vmatpush1.bf16.msra.mxu0 %v6145_v59  ;;  %v1690_v4 = vadd.f32 %v1689_v42, %v1633_v34  ;;  %4971 = vpow.bf16 %v1598_v16  ;;  %v1639_v26 = vunpack.c.h.bf16 %v6126_v30  ;;  %v1604_v39 = vmul.bf16 1069105081, %v1519_v32 }
 0x363   : > { %1773 = vmatprep.subr.bf16.mxu0 %v4950_v47  ;;  %v1734_v19 = vadd.f32 %v1733_v13, %v1648_v49  ;;  %v6158_v22 = vpop.eup %4955  ;;  %4973 = vpow.bf16 %v1607_v2  ;;  %v1641_v51 = vunpack.c.l.bf16 %v6141_v8  ;;  %v1643_v54 = vunpack.c.h.bf16 %v6141_v8  ;;  %v7583_v2 = vld [vmem:[#allocation13_spill] sm:$0xff] }
 0x364   : > { %v4958_v28 = vpop.eup %4957  ;;  %v1691_v5 = vadd.f32 %v1690_v4, %v1635_v40  ;;  %4975 = vpow.bf16 %v1604_v39  ;;  %v1645_v60 = vunpack.c.l.bf16 %v6145_v59  ;;  %v1647_v27 = vunpack.c.h.bf16 %v6145_v59 }
 0x365   : > { %v1735_v18 = vadd.f32 %v1734_v19, %v1650_v44  ;;  %v6166_v58 = vpop.eup %4959  ;;  %v1658_v52 = vunpack.c.l.bf16 %v4958_v28  ;;  %v1660_v1 = vunpack.c.h.bf16 %v4958_v28  ;;  %v1649_v47 = vunpack.c.l.bf16 %v6149_v23 }
 0x366   : > { %1774 = vmatpush1.bf16.msra.mxu0 %v6149_v23  ;;  %v4962_v21 = vpop.eup %4961  ;;  %v1692_v31 = vadd.f32 %v1691_v5, %v1637_v61  ;;  %v1651_v36 = vunpack.c.h.bf16 %v6149_v23  ;;  %v1653_v59 = vunpack.c.l.bf16 %v6158_v22  ;;  %v1655_v55 = vunpack.c.h.bf16 %v6158_v22 }
 0x367   : > { %1775 = vmatprep.subr.bf16.mxu0 %v4954_v29  ;;  %v1736_v0 = vadd.f32 %v1735_v18, %v1652_v46  ;;  %v6171_v17 = vpop.eup %4963  ;;  %v1662_v37 = vunpack.c.l.bf16 %v4962_v21  ;;  %v1664_v30 = vunpack.c.h.bf16 %v4962_v21  ;;  %v1657_v23 = vunpack.c.l.bf16 %v6166_v58 }
 0x368   : > { %v1693_v20 = vadd.f32 %v1692_v31, %v1639_v26  ;;  %v4966_v48 = vpop.eup %4965  ;;  %v1659_v32 = vunpack.c.h.bf16 %v6166_v58 }
 0x369   : > { %v1737_v14 = vadd.f32 %v1736_v0, %v1654_v50  ;;  %v1666_v11 = vunpack.c.l.bf16 %v4966_v48  ;;  %v1668_v9 = vunpack.c.h.bf16 %v4966_v48 }
 0x36a   : > { %1776 = vmatpush1.bf16.msra.mxu0 %v6158_v22  ;;  %v1694_v41 = vadd.f32 %v1693_v20, %v1641_v51  ;;  %v4968_v63 = vpop.eup %4967  ;;  %v7582_v22 = vld [vmem:[#allocation14_spill] sm:$0xff] }
 0x36b   : > { %1777 = vmatprep.subr.bf16.mxu0 %v4958_v28  ;;  %v1738_v10 = vadd.f32 %v1737_v14, %v1656_v35  ;;  %v4970_v53 = vpop.eup %4969  ;;  %v1670_v56 = vunpack.c.l.bf16 %v4968_v63  ;;  %v1672_v62 = vunpack.c.h.bf16 %v4968_v63  ;;  %v1661_v28 = vunpack.c.l.bf16 %v6171_v17 }
 0x36c   : > { %v1695_v12 = vadd.f32 %v1694_v41, %v1643_v54  ;;  %v1845_v4 = vrot.slane %v7582_v22, 4  ;;  %v1844_v35 = vrot.slane %v7583_v2, 4  ;;  %v1663_v14 = vunpack.c.h.bf16 %v6171_v17 }
 0x36d   : > { %v1739_v33 = vadd.f32 %v1738_v10, %v1658_v52  ;;  %v4972_v57 = vpop.eup %4971  ;;  %v1667_v31 = vunpack.c.h.bf16 %v4970_v53 }
 0x36e   : > { %1778 = vmatpush1.bf16.msra.mxu0 %v6166_v58  ;;  %v1696_v15 = vadd.f32 %v1695_v12, %v1645_v60  ;;  %v4974_v24 = vpop.eup %4973  ;;  %v1665_v58 = vunpack.c.l.bf16 %v4970_v53  ;;  %v1895_v26 = vsel %vm1027_vm1, %v1844_v35, 0  ;;  %v1671_v20 = vunpack.c.h.bf16 %v4972_v57  ;;  %v7587_v12 = vld [vmem:[#allocation19_spill] sm:$0xff] }
 0x36f   : > { %1779 = vmatprep.subr.bf16.mxu0 %v4962_v21  ;;  %v1740_v43 = vadd.f32 %v1739_v33, %v1660_v1  ;;  %v1674_v29 = vunpack.c.l.bf16 %v4974_v24  ;;  %v4976_v38 = vpop.eup %4975  ;;  %v1676_v46 = vunpack.c.h.bf16 %v4974_v24  ;;  %v7584_v21 = vld [vmem:[#allocation15_spill] sm:$0xff]  ;;  %v7585_v1 = vmov 0  }
 0x370   : > { %v1697_v13 = vadd.f32 %v1696_v15, %v1647_v27  ;;  %v1669_v33 = vunpack.c.l.bf16 %v4972_v57  ;;  %v1675_v54 = vunpack.c.h.bf16 %v4976_v38  ;;  %v7590_v27 = vld [vmem:[#allocation25_spill] sm:$0xff]  ;;  %v7591_v15 = vld [vmem:[#allocation27_spill] sm:$0xff] }
 0x371   : > { %v1741_v45 = vadd.f32 %v1740_v43, %v1662_v37  ;;  %v1673_v37 = vunpack.c.l.bf16 %v4976_v38 }
 0x372   : > { %1780 = vmatpush1.bf16.msra.mxu0 %v6171_v17  ;;  %v1698_v6 = vadd.f32 %v1697_v13, %v1649_v47  ;;  %v7594_v47 = vld [vmem:[#allocation16_spill] sm:$0xff]  ;;  %v7595_v13 = vld [vmem:[#allocation18_spill] sm:$0xff] }
 0x373   : > { %1781 = vmatprep.subr.bf16.mxu0 %v4966_v48  ;;  %v1742_v7 = vadd.f32 %v1741_v45, %v1664_v30  ;;  %v7586_v48 = vld [vmem:[#allocation17_spill] sm:$0xff] }
 0x374   : > { %v1699_v19 = vadd.f32 %v1698_v6, %v1651_v36  ;;  %v7600_v36 = vld [vmem:[#allocation28_spill] sm:$0xff]  ;;  %v7601_v6 = vld [vmem:[#allocation30_spill] sm:$0xff] }
 0x375   : > { %v1743_v8 = vadd.f32 %v1742_v7, %v1666_v11  ;;  %v7588_v7 = vld [vmem:[#allocation21_spill] sm:$0xff] }
 0x376   : > { %1782 = vmatpush1.bf16.msra.mxu0 %v4970_v53  ;;  %v1700_v3 = vadd.f32 %v1699_v19, %v1653_v59  ;;  %v7589_v53 = vld [vmem:[#allocation23_spill] sm:$0xff] }
 0x377   : > { %1783 = vmatprep.subr.bf16.mxu0 %v4968_v63  ;;  %v1744_v49 = vadd.f32 %v1743_v8, %v1668_v9  ;;  %v7592_v9 = vld [vmem:[#allocation29_spill] sm:$0xff]  ;;  %v7593_v8 = vld [vmem:[#allocation31_spill] sm:$0xff] }
 0x378   : > { %v1701_v34 = vadd.f32 %v1700_v3, %v1655_v55 }
 0x379   : > { %v1745_v44 = vadd.f32 %v1744_v49, %v1670_v56  ;;  %v7597_v56 = vld [vmem:[#allocation22_spill] sm:$0xff]  ;;  %v7598_v49 = vld [vmem:[#allocation24_spill] sm:$0xff] }
 0x37a   : > { %1784 = vmatpush1.bf16.msra.mxu0 %v4972_v57  ;;  %v1702_v50 = vadd.f32 %v1701_v34, %v1657_v23  ;;  %v7596_v57 = vld [vmem:[#allocation20_spill] sm:$0xff] }
 0x37b   : > { %1785 = vmatprep.subr.bf16.mxu0 %v4974_v24  ;;  %v1746_v25 = vadd.f32 %v1745_v44, %v1672_v62  ;;  %v7602_v62 = vld [vmem:[#allocation58_spill] sm:$0xff] }
 0x37c   : > { %v1703_v16 = vadd.f32 %v1702_v50, %v1659_v32 }
 0x37d   : > { %v1747_v18 = vadd.f32 %v1746_v25, %v1674_v29 }
 0x37e   : > { %1786 = vmatpush1.bf16.msra.mxu0 %v4976_v38  ;;  %v1704_v61 = vadd.f32 %v1703_v16, %v1661_v28 }
 0x37f   : > { %1787 = vmatprep.subr.bf16.mxu0 %v4974_v24  ;;  %v1748_v42 = vadd.f32 %v1747_v18, %v1676_v46 }
 0x380   : > { %v1705_v52 = vadd.f32 %v1704_v61, %v1663_v14 }
 0x381   : > { %v1749_v0 = vadd.f32 %v1748_v42, %v1674_v29 }
 0x382   : > { %1788 = vmatpush1.bf16.msra.mxu0 %v4976_v38  ;;  %v1706_v39 = vadd.f32 %v1705_v52, %v1665_v58 }
 0x383   : > { %1789 = vmatprep.subr.bf16.mxu0 %v4974_v24  ;;  %v1750_v40 = vadd.f32 %v1749_v0, %v1676_v46  ;;  %v7599_v24 = vld [vmem:[#allocation26_spill] sm:$0xff] }
 0x384   : > { %v1707_v51 = vadd.f32 %v1706_v39, %v1667_v31 }
 0x385   : > { %v1751_v5 = vadd.f32 %v1750_v40, %v1674_v29 }
 0x386   : > { %1790 = vmatpush1.bf16.msra.mxu0 %v4976_v38  ;;  %v1708_v17 = vadd.f32 %v1707_v51, %v1669_v33 }
 0x387   : > { %4697 = vmatprep.subr.msk.bf16.mxu0 %vm1027_vm1, %v1845_v4  ;;  %v1752_v10 = vadd.f32 %v1751_v5, %v1676_v46 }
 0x388   : > { %v1709_v43 = vadd.f32 %v1708_v17, %v1671_v20 }
 0x389   : > { %1792 = vmatmul.mubr.bf16.vlgmr.msra.gmra.mrb[16].mxu0 %v7584_v21  ;;  %v1753_v59 = vrot.slane %v1752_v10, 4 }
 0x38a   : > { %1901 = vmatpush1.bf16.msra.mxu0 %v1895_v26  ;;  %1932 = vmatprep.mubr.bf16.mxu0 %v7585_v1  ;;  %v1710_v41 = vadd.f32 %v1709_v43, %v1673_v37 }
 0x38b   : > { %v1754_v29 = vadd.f32 %v1753_v59, %v1752_v10 }
 0x38c   : > { %v1711_v30 = vadd.f32 %v1710_v41, %v1675_v54 }
 0x38d   : > { %v1755_v38 = vrot.slane %v1754_v29, 2 }
 0x38e   : > { %v1712_v45 = vadd.f32 %v1711_v30, %v1673_v37 }
 0x38f   : > { %v1756_v3 = vadd.f32 %v1755_v38, %v1754_v29 }
 0x390   : > { %v1713_v60 = vadd.f32 %v1712_v45, %v1675_v54 }
 0x391   : > { %4698 = vmatmul.mubr.msk.bf16.vlgmr.msra.gmra.mrb[20].mxu0 %vm978_vm2, %v7586_v48  ;;  %v1757_v18 = vrot.slane %v1756_v3, 1 }
 0x392   : > { %1942 = vmatprep.mubr.bf16.mxu0 %v7585_v1  ;;  %v1714_v63 = vadd.f32 %v1713_v60, %v1673_v37 }
 0x393   : > { %v1758_v34 = vadd.f32 %v1757_v18, %v1756_v3 }
 0x394   : > { %v1715_v11 = vadd.f32 %v1714_v63, %v1675_v54 }
 0x396   : > { %v1716_v44 = vrot.slane %v1715_v11, 4 }
 0x398   : > { %v1717_v19 = vadd.f32 %v1716_v44, %v1715_v11 }
 0x399   : > { %4699 = vmatmul.mubr.msk.bf16.gmra.mrb[24].mxu0 %vm978_vm2, %v7587_v12 }
 0x39a   : > { %1952 = vmatprep.mubr.bf16.mxu0 %v7585_v1  ;;  %v1718_v25 = vrot.slane %v1717_v19, 2 }
 0x39c   : > { %v1719_v55 = vadd.f32 %v1718_v25, %v1717_v19 }
 0x39e   : > { %v1720_v46 = vrot.slane %v1719_v55, 1 }
 0x3a0   : > { %v1721_v23 = vadd.f32 %v1720_v46, %v1719_v55 }
 0x3a1   : > { %4700 = vmatmul.mubr.msk.bf16.gmra.mrb[28].mxu0 %vm978_vm2, %v7588_v7 }
 0x3a2   : > { %1962 = vmatprep.mubr.bf16.mxu0 %v7585_v1  ;;  %4977 = vrcp.f32 %v1721_v23 }
 0x3a3   : > { %4979 = vrcp.f32 %v1758_v34 }
 0x3a9   : > { %4701 = vmatmul.mubr.msk.bf16.gmra.mrb[32].mxu0 %vm978_vm2, %v7589_v53 }
 0x3aa   : > { %1972 = vmatprep.mubr.bf16.mxu0 %v7585_v1 }
 0x3ac   : > { %v4978_v42 = vpop.eup %4977 }
 0x3ad   : > { %v4980_v50 = vpop.eup %4979 }
 0x3b1   : > { %4702 = vmatmul.mubr.msk.bf16.gmra.mrb[36].mxu0 %vm978_vm2, %v7590_v27 }
 0x3b2   : > { %1982 = vmatprep.mubr.bf16.mxu0 %v7585_v1 }
 0x3b9   : > { %4703 = vmatmul.mubr.msk.bf16.gmra.mrb[40].mxu0 %vm978_vm2, %v7591_v15 }
 0x3ba   : > { %1992 = vmatprep.mubr.bf16.mxu0 %v7585_v1 }
 0x3c1   : > { %4704 = vmatmul.mubr.msk.bf16.gmra.mrb[44].mxu0 %vm978_vm2, %v7592_v9 }
 0x3c2   : > { %2002 = vmatprep.mubr.bf16.mxu0 %v7585_v1 }
 0x3c9   : > { %4705 = vmatmul.mubr.msk.bf16.gmra.mrb[48].mxu0 %vm978_vm2, %v7593_v8 }
 0x3ca   : > { %2012 = vmatprep.mubr.bf16.mxu0 %v7585_v1 }
 0x3d1   : > { %4706 = vmatmul.mubr.msk.bf16.gmra.mrb[52].mxu0 %vm978_vm2, %v7594_v47 }
 0x3d2   : > { %2022 = vmatprep.mubr.bf16.mxu0 %v7585_v1 }
 0x3d9   : > { %4707 = vmatmul.mubr.msk.bf16.gmra.mrb[56].mxu0 %vm978_vm2, %v7595_v13 }
 0x3da   : > { %2032 = vmatprep.mubr.bf16.mxu0 %v7585_v1 }
 0x3e1   : > { %4708 = vmatmul.mubr.msk.bf16.gmra.mrb[60].mxu0 %vm978_vm2, %v7596_v57 }
 0x3e2   : > { %2042 = vmatprep.mubr.bf16.mxu0 %v7585_v1 }
 0x3e9   : > { %4709 = vmatmul.mubr.msk.bf16.gmra.mrb[64].mxu0 %vm978_vm2, %v7597_v56 }
 0x3ea   : > { %2052 = vmatprep.mubr.bf16.mxu0 %v7585_v1 }
 0x3f1   : > { %4710 = vmatmul.mubr.msk.bf16.gmra.mrb[68].mxu0 %vm978_vm2, %v7598_v49 }
 0x3f2   : > { %2062 = vmatprep.mubr.bf16.mxu0 %v7585_v1 }
 0x3f9   : > { %4711 = vmatmul.mubr.msk.bf16.gmra.mrb[72].mxu0 %vm978_vm2, %v7599_v24 }
 0x3fa   : > { %2072 = vmatprep.mubr.bf16.mxu0 %v7585_v1 }
 0x401   : > { %4712 = vmatmul.mubr.msk.bf16.gmra.mrb[76].mxu0 %vm978_vm2, %v7600_v36 }
 0x402   : > { %2082 = vmatprep.mubr.bf16.mxu0 %v7585_v1 }
 0x409   : > { %4713 = vmatmul.mubr.msk.bf16.gmra.mrb[80].mxu0 %vm978_vm2, %v7601_v6 }
 0x40a   : > { %3391 = vmatprep.mubr.bf16.mxu0 %v7602_v62 }
 0x45c   : > { %v1793_v32 = vpop.f32.mrb[16].mxu0 }
 0x45d   : > { %v6239_v0 = vmul.f32 %v4978_v42, %v1793_v32  ;;  %v1795_v28 = vpop.f32.mrb[17].mxu0 }
 0x45e   : > { %v6241_v16 = vmul.f32 %v4980_v50, %v1795_v28  ;;  %v1797_v40 = vpop.f32.mrb[18].mxu0 }
 0x45f   : > { %7603 = vst [vmem:[#allocation46_spill] sm:$0xff] %v6239_v0  ;;  %v1798_v22 = vpop.f32.mrb[19].mxu0 }
 0x460   : > { %7604 = vst [vmem:[#allocation48_spill] sm:$0xff] %v6241_v16 }
 0x464   : > { %v6243_v4 = vpop.f32.mrb[20].mxu0 }
 0x465   : > { %v6245_v2 = vpop.f32.mrb[21].mxu0 }
 0x466   : > { %v6247_v35 = vpop.f32.mrb[22].mxu0 }
 0x467   : > { %v6249_v14 = vpop.f32.mrb[23].mxu0 }
 0x46c   : > { %v6251_v61 = vpop.f32.mrb[24].mxu0 }
 0x46d   : > { %v2157_v5 = vmax.f32 %v6243_v4, %v6251_v61  ;;  %v6255_v58 = vpop.f32.mrb[25].mxu0 }
 0x46e   : > { %v2194_v52 = vmax.f32 %v6245_v2, %v6255_v58  ;;  %v6259_v10 = vpop.f32.mrb[26].mxu0 }
 0x46f   : > { %v2158_v26 = vmax.f32 %v6247_v35, %v6259_v10  ;;  %v6263_v31 = vpop.f32.mrb[27].mxu0 }
 0x470   : > { %v2195_v39 = vmax.f32 %v6249_v14, %v6263_v31 }
 0x474   : > { %v6267_v33 = vpop.f32.mrb[28].mxu0 }
 0x475   : > { %v2159_v51 = vmax.f32 %v2157_v5, %v6267_v33  ;;  %v6270_v20 = vpop.f32.mrb[29].mxu0 }
 0x476   : > { %v2196_v17 = vmax.f32 %v2194_v52, %v6270_v20  ;;  %v6273_v37 = vpop.f32.mrb[30].mxu0 }
 0x477   : > { %v2160_v43 = vmax.f32 %v2158_v26, %v6273_v37  ;;  %v6276_v48 = vpop.f32.mrb[31].mxu0 }
 0x478   : > { %v2197_v54 = vmax.f32 %v2195_v39, %v6276_v48 }
 0x47c   : > { %v6279_v41 = vpop.f32.mrb[32].mxu0 }
 0x47d   : > { %v2161_v30 = vmax.f32 %v2159_v51, %v6279_v41  ;;  %v6282_v45 = vpop.f32.mrb[33].mxu0 }
 0x47e   : > { %v2198_v60 = vmax.f32 %v2196_v17, %v6282_v45  ;;  %v6285_v12 = vpop.f32.mrb[34].mxu0 }
 0x47f   : > { %v2162_v63 = vmax.f32 %v2160_v43, %v6285_v12  ;;  %v6288_v11 = vpop.f32.mrb[35].mxu0 }
 0x480   : > { %v2199_v7 = vmax.f32 %v2197_v54, %v6288_v11 }
 0x484   : > { %v6291_v53 = vpop.f32.mrb[36].mxu0 }
 0x485   : > { %v2163_v27 = vmax.f32 %v2161_v30, %v6291_v53  ;;  %v6294_v15 = vpop.f32.mrb[37].mxu0 }
 0x486   : > { %v2200_v9 = vmax.f32 %v2198_v60, %v6294_v15  ;;  %v6297_v8 = vpop.f32.mrb[38].mxu0 }
 0x487   : > { %v2164_v47 = vmax.f32 %v2162_v63, %v6297_v8  ;;  %v6300_v13 = vpop.f32.mrb[39].mxu0 }
 0x488   : > { %v2201_v57 = vmax.f32 %v2199_v7, %v6300_v13 }
 0x48c   : > { %v6303_v56 = vpop.f32.mrb[40].mxu0 }
 0x48d   : > { %v2165_v49 = vmax.f32 %v2163_v27, %v6303_v56  ;;  %v6306_v24 = vpop.f32.mrb[41].mxu0 }
 0x48e   : > { %v2202_v36 = vmax.f32 %v2200_v9, %v6306_v24  ;;  %v6309_v6 = vpop.f32.mrb[42].mxu0 }
 0x48f   : > { %v2166_v44 = vmax.f32 %v2164_v47, %v6309_v6  ;;  %v6312_v59 = vpop.f32.mrb[43].mxu0 }
 0x490   : > { %v2203_v19 = vmax.f32 %v2201_v57, %v6312_v59 }
 0x494   : > { %v6315_v29 = vpop.f32.mrb[44].mxu0 }
 0x495   : > { %v2167_v25 = vmax.f32 %v2165_v49, %v6315_v29  ;;  %v6318_v38 = vpop.f32.mrb[45].mxu0 }
 0x496   : > { %v2204_v55 = vmax.f32 %v2202_v36, %v6318_v38  ;;  %v6321_v3 = vpop.f32.mrb[46].mxu0 }
 0x497   : > { %v2168_v46 = vmax.f32 %v2166_v44, %v6321_v3  ;;  %v6324_v18 = vpop.f32.mrb[47].mxu0 }
 0x498   : > { %v2205_v23 = vmax.f32 %v2203_v19, %v6324_v18 }
 0x49c   : > { %v6327_v34 = vpop.f32.mrb[48].mxu0 }
 0x49d   : > { %v2169_v42 = vmax.f32 %v2167_v25, %v6327_v34  ;;  %v6330_v32 = vpop.f32.mrb[49].mxu0 }
 0x49e   : > { %v2206_v50 = vmax.f32 %v2204_v55, %v6330_v32  ;;  %v6333_v28 = vpop.f32.mrb[50].mxu0 }
 0x49f   : > { %v2170_v40 = vmax.f32 %v2168_v46, %v6333_v28  ;;  %v6336_v22 = vpop.f32.mrb[51].mxu0 }
 0x4a0   : > { %v2207_v5 = vmax.f32 %v2205_v23, %v6336_v22 }
 0x4a4   : > { %v6339_v52 = vpop.f32.mrb[52].mxu0 }
 0x4a5   : > { %v2171_v26 = vmax.f32 %v2169_v42, %v6339_v52  ;;  %v6342_v39 = vpop.f32.mrb[53].mxu0 }
 0x4a6   : > { %v2208_v51 = vmax.f32 %v2206_v50, %v6342_v39  ;;  %v6345_v17 = vpop.f32.mrb[54].mxu0 }
 0x4a7   : > { %v2172_v43 = vmax.f32 %v2170_v40, %v6345_v17  ;;  %v6348_v54 = vpop.f32.mrb[55].mxu0 }
 0x4a8   : > { %v2209_v30 = vmax.f32 %v2207_v5, %v6348_v54 }
 0x4ac   : > { %v6351_v60 = vpop.f32.mrb[56].mxu0 }
 0x4ad   : > { %7605 = vst [vmem:[#allocation53_spill] sm:$0xff] %v6351_v60  ;;  %v2173_v63 = vmax.f32 %v2171_v26, %v6351_v60  ;;  %v6354_v7 = vpop.f32.mrb[57].mxu0 }
 0x4ae   : > { %v2210_v27 = vmax.f32 %v2208_v51, %v6354_v7  ;;  %v6357_v9 = vpop.f32.mrb[58].mxu0 }
 0x4af   : > { %7606 = vst [vmem:[#allocation55_spill] sm:$0xff] %v6357_v9  ;;  %v2174_v47 = vmax.f32 %v2172_v43, %v6357_v9  ;;  %v6360_v57 = vpop.f32.mrb[59].mxu0 }
 0x4b0   : > { %v2211_v49 = vmax.f32 %v2209_v30, %v6360_v57 }
 0x4b4   : > { %v6363_v36 = vpop.f32.mrb[60].mxu0 }
 0x4b5   : > { %7607 = vst [vmem:[#allocation51_spill] sm:$0xff] %v6363_v36  ;;  %v2175_v44 = vmax.f32 %v2173_v63, %v6363_v36  ;;  %v6366_v19 = vpop.f32.mrb[61].mxu0 }
 0x4b6   : > { %7608 = vst [vmem:[#allocation54_spill] sm:$0xff] %v6366_v19  ;;  %v2212_v25 = vmax.f32 %v2210_v27, %v6366_v19  ;;  %v6369_v55 = vpop.f32.mrb[62].mxu0 }
 0x4b7   : > { %7609 = vst [vmem:[#allocation59_spill] sm:$0xff] %v6369_v55  ;;  %v2176_v46 = vmax.f32 %v2174_v47, %v6369_v55  ;;  %v6372_v23 = vpop.f32.mrb[63].mxu0 }
 0x4b8   : > { %7610 = vst [vmem:[#allocation62_spill] sm:$0xff] %v6372_v23  ;;  %v2213_v42 = vmax.f32 %v2211_v49, %v6372_v23 }
 0x4bc   : > { %v6375_v50 = vpop.f32.mrb[64].mxu0 }
 0x4bd   : > { %7611 = vst [vmem:[#allocation56_spill] sm:$0xff] %v6375_v50  ;;  %v2177_v40 = vmax.f32 %v2175_v44, %v6375_v50  ;;  %v6378_v5 = vpop.f32.mrb[65].mxu0 }
 0x4be   : > { %7612 = vst [vmem:[#allocation60_spill] sm:$0xff] %v6378_v5  ;;  %v2214_v26 = vmax.f32 %v2212_v25, %v6378_v5  ;;  %v6381_v51 = vpop.f32.mrb[66].mxu0 }
 0x4bf   : > { %7613 = vst [vmem:[#allocation14_spill] sm:$0xff] %v6381_v51  ;;  %v2178_v43 = vmax.f32 %v2176_v46, %v6381_v51  ;;  %v6384_v30 = vpop.f32.mrb[67].mxu0 }
 0x4c0   : > { %7614 = vst [vmem:[#allocation13_spill] sm:$0xff] %v6384_v30  ;;  %v2215_v63 = vmax.f32 %v2213_v42, %v6384_v30 }
 0x4c1   : > { %v2180_v27 = vmax.f32 %v2178_v43, -1e+30 }
 0x4c2   : > { %v2217_v47 = vmax.f32 %v2215_v63, -1e+30 }
 0x4c3   : > { %v2182_v16 = vmax.f32 %v2180_v27, -1e+30 }
 0x4c4   : > { %v2054_v49 = vpop.f32.mrb[68].mxu0  ;;  %v2219_v0 = vmax.f32 %v2217_v47, -1e+30 }
 0x4c5   : > { %v2141_v44 = vsel %vm938_vm3, %v2054_v49, -1e+30  ;;  %v2056_v1 = vpop.f32.mrb[69].mxu0  ;;  %v2184_v51 = vmax.f32 %v2182_v16, -1e+30 }
 0x4c6   : > { %v2179_v21 = vmax.f32 %v2177_v40, %v2141_v44  ;;  %v2142_v25 = vsel %vm938_vm3, %v2056_v1, -1e+30  ;;  %v2058_v50 = vpop.f32.mrb[70].mxu0  ;;  %v2221_v36 = vmax.f32 %v2219_v0, -1e+30 }
 0x4c7   : > { %v2216_v5 = vmax.f32 %v2214_v26, %v2142_v25  ;;  %v2060_v46 = vpop.f32.mrb[71].mxu0  ;;  %v2186_v27 = vmax.f32 %v2184_v51, -1e+30 }
 0x4c8   : > { %v2181_v55 = vmax.f32 %v2179_v21, -1e+30  ;;  %v2223_v23 = vmax.f32 %v2221_v36, -1e+30 }
 0x4c9   : > { %v2218_v42 = vmax.f32 %v2216_v5, -1e+30 }
 0x4ca   : > { %v2183_v43 = vmax.f32 %v2181_v55, -1e+30 }
 0x4cb   : > { %v2220_v63 = vmax.f32 %v2218_v42, -1e+30 }
 0x4cc   : > { %v2185_v30 = vmax.f32 %v2183_v43, -1e+30  ;;  %v2064_v47 = vpop.f32.mrb[72].mxu0 }
 0x4cd   : > { %v2222_v19 = vmax.f32 %v2220_v63, -1e+30  ;;  %v2066_v49 = vpop.f32.mrb[73].mxu0 }
 0x4ce   : > { %v2187_v9 = vmax.f32 %v2185_v30, %v2186_v27  ;;  %v2068_v40 = vpop.f32.mrb[74].mxu0 }
 0x4cf   : > { %v2224_v60 = vmax.f32 %v2222_v19, %v2223_v23  ;;  %v2070_v62 = vpop.f32.mrb[75].mxu0 }
 0x4d0   : > { %v2188_v1 = vrot.slane %v2187_v9, 4 }
 0x4d1   : > { %v2225_v50 = vrot.slane %v2224_v60, 4 }
 0x4d2   : > { %v2189_v26 = vmax.f32 %v2187_v9, %v2188_v1 }
 0x4d3   : > { %v2226_v46 = vmax.f32 %v2224_v60, %v2225_v50 }
 0x4d4   : > { %v2190_v16 = vrot.slane %v2189_v26, 2  ;;  %v2074_v21 = vpop.f32.mrb[76].mxu0 }
 0x4d5   : > { %v2227_v0 = vrot.slane %v2226_v46, 2  ;;  %v2076_v5 = vpop.f32.mrb[77].mxu0 }
 0x4d6   : > { %v2191_v55 = vmax.f32 %v2189_v26, %v2190_v16  ;;  %v2078_v42 = vpop.f32.mrb[78].mxu0 }
 0x4d7   : > { %v2228_v51 = vmax.f32 %v2226_v46, %v2227_v0  ;;  %v2080_v43 = vpop.f32.mrb[79].mxu0 }
 0x4d8   : > { %v2192_v47 = vrot.slane %v2191_v55, 1 }
 0x4d9   : > { %v2229_v36 = vrot.slane %v2228_v51, 1 }
 0x4da   : > { %v6391_v63 = vmax.f32 %v2191_v55, %v2192_v47 }
 0x4db   : > { %v6393_v30 = vmax.f32 %v2228_v51, %v2229_v36 }
 0x4dc   : > { %v2279_v62 = vsub.f32 %v2141_v44, %v6391_v63  ;;  %v6397_v19 = vsub.f32 -1e+30, %v6391_v63  ;;  %v2231_v60 = vsub.f32 %v6243_v4, %v6391_v63  ;;  %v2233_v9 = vsub.f32 %v6247_v35, %v6391_v63  ;;  %v2084_v23 = vpop.f32.mrb[80].mxu0 }
 0x4dd   : > { %v2280_v27 = vsub.f32 %v2142_v25, %v6393_v30  ;;  %v6405_v49 = vsub.f32 -1e+30, %v6393_v30  ;;  %v2232_v40 = vsub.f32 %v6245_v2, %v6393_v30  ;;  %v2234_v44 = vsub.f32 %v6249_v14, %v6393_v30  ;;  %v2086_v1 = vpop.f32.mrb[81].mxu0 }
 0x4de   : > { %v6412_v50 = vpack.c.bf16 %v6397_v19, %v2279_v62  ;;  %v2295_v4 = vpack.c.bf16 %v2233_v9, %v2231_v60  ;;  %v2236_v35 = vsub.f32 %v6255_v58, %v6393_v30  ;;  %v2088_v26 = vpop.f32.mrb[82].mxu0  ;;  %v2238_v16 = vsub.f32 %v6263_v31, %v6393_v30 }
 0x4df   : > { %v6417_v25 = vpack.c.bf16 %v6405_v49, %v2280_v27  ;;  %v2296_v46 = vpack.c.bf16 %v2234_v44, %v2232_v40  ;;  %v2090_v2 = vpop.f32.mrb[83].mxu0  ;;  %v2235_v14 = vsub.f32 %v6251_v61, %v6391_v63  ;;  %v2237_v5 = vsub.f32 %v6259_v10, %v6391_v63 }
 0x4e0   : > { %v2298_v21 = vpack.c.bf16 %v2238_v16, %v2236_v35  ;;  %v2240_v58 = vsub.f32 %v6270_v20, %v6393_v30  ;;  %v2242_v55 = vsub.f32 %v6276_v48, %v6393_v30  ;;  %v2328_v42 = vmul.bf16 1069105081, %v2295_v4 }
 0x4e1   : > { %v2331_v0 = vmul.bf16 1069105081, %v2296_v46  ;;  %v2239_v51 = vsub.f32 %v6267_v33, %v6391_v63  ;;  %v2241_v31 = vsub.f32 %v6273_v37, %v6391_v63  ;;  %v2297_v61 = vpack.c.bf16 %v2237_v5, %v2235_v14 }
 0x4e2   : > { %v2337_v43 = vmul.bf16 1069105081, %v2298_v21  ;;  %v2300_v47 = vpack.c.bf16 %v2242_v55, %v2240_v58  ;;  %v2244_v36 = vsub.f32 %v6282_v45, %v6393_v30  ;;  %v2246_v20 = vsub.f32 %v6288_v11, %v6393_v30 }
 0x4e3   : > { %v2299_v10 = vpack.c.bf16 %v2241_v31, %v2239_v51  ;;  %v2243_v48 = vsub.f32 %v6279_v41, %v6391_v63  ;;  %4981 = vpow.bf16 %v2331_v0  ;;  %v2245_v33 = vsub.f32 %v6285_v12, %v6391_v63 }
 0x4e4   : > { %v2343_v62 = vmul.bf16 1069105081, %v2300_v47  ;;  %4983 = vpow.bf16 %v2328_v42  ;;  %v2334_v37 = vmul.bf16 1069105081, %v2297_v61  ;;  %v2302_v60 = vpack.c.bf16 %v2246_v20, %v2244_v36 }
 0x4e5   : > { %v2248_v9 = vsub.f32 %v6294_v15, %v6393_v30  ;;  %4985 = vpow.bf16 %v2337_v43  ;;  %v2301_v45 = vpack.c.bf16 %v2245_v33, %v2243_v48  ;;  %v2250_v23 = vsub.f32 %v6300_v13, %v6393_v30 }
 0x4e6   : > { %v2247_v11 = vsub.f32 %v6291_v53, %v6391_v63  ;;  %v2340_v41 = vmul.bf16 1069105081, %v2299_v10  ;;  %v2249_v27 = vsub.f32 %v6297_v8, %v6391_v63  ;;  %v2252_v12 = vsub.f32 %v6306_v24, %v6393_v30 }
 0x4e7   : > { %4987 = vpow.bf16 %v2343_v62  ;;  %v2349_v40 = vmul.bf16 1069105081, %v2302_v60  ;;  %v2304_v44 = vpack.c.bf16 %v2250_v23, %v2248_v9  ;;  %v2254_v15 = vsub.f32 %v6312_v59, %v6393_v30 }
 0x4e8   : > { %4989 = vpow.bf16 %v2334_v37  ;;  %v2303_v1 = vpack.c.bf16 %v2249_v27, %v2247_v11  ;;  %v2251_v13 = vsub.f32 %v6303_v56, %v6391_v63  ;;  %v2253_v53 = vsub.f32 %v6309_v6, %v6391_v63  ;;  %v7616_v27 = vld [vmem:[#allocation53_spill] sm:$0xff] }
 0x4e9   : > { %v2306_v4 = vpack.c.bf16 %v2254_v15, %v2252_v12  ;;  %v2256_v8 = vsub.f32 %v6318_v38, %v6393_v30  ;;  %v2355_v35 = vmul.bf16 1069105081, %v2304_v44  ;;  %v2258_v26 = vsub.f32 %v6324_v18, %v6393_v30 }
 0x4ea   : > { %v2305_v24 = vpack.c.bf16 %v2253_v53, %v2251_v13  ;;  %4991 = vpow.bf16 %v2349_v40  ;;  %v2346_v59 = vmul.bf16 1069105081, %v2301_v45  ;;  %v2255_v16 = vsub.f32 %v6315_v29, %v6391_v63 }
 0x4eb   : > { %4993 = vpow.bf16 %v2340_v41  ;;  %v2308_v46 = vpack.c.bf16 %v2258_v26, %v2256_v8  ;;  %v2352_v56 = vmul.bf16 1069105081, %v2303_v1  ;;  %v2257_v6 = vsub.f32 %v6321_v3, %v6391_v63 }
 0x4ec   : > { %4995 = vpow.bf16 %v2355_v35  ;;  %v2361_v14 = vmul.bf16 1069105081, %v2306_v4  ;;  %v2260_v38 = vsub.f32 %v6330_v32, %v6393_v30  ;;  %v2262_v18 = vsub.f32 %v6336_v22, %v6393_v30  ;;  %v7618_v4 = vld [vmem:[#allocation54_spill] sm:$0xff] }
 0x4ed   : > { %v2307_v58 = vpack.c.bf16 %v2257_v6, %v2255_v16  ;;  %v2259_v29 = vsub.f32 %v6327_v34, %v6391_v63  ;;  %4997 = vpow.bf16 %v2346_v59  ;;  %v2367_v32 = vmul.bf16 1069105081, %v2308_v46  ;;  %v7619_v59 = vld [vmem:[#allocation62_spill] sm:$0xff] }
 0x4ee   : > { %v4982_v2 = vpop.eup %4981  ;;  %v2310_v3 = vpack.c.bf16 %v2262_v18, %v2260_v38  ;;  %4999 = vpow.bf16 %v2352_v56  ;;  %v2358_v47 = vmul.bf16 1069105081, %v2305_v24  ;;  %v2261_v34 = vsub.f32 %v6333_v28, %v6391_v63 }
 0x4ef   : > { %v6469_v21 = vpop.eup %4983  ;;  %v2424_v0 = vunpack.c.l.bf16 %v4982_v2  ;;  %v2426_v5 = vunpack.c.h.bf16 %v4982_v2  ;;  %2567 = vmatprep.subr.bf16.mxu1 %v4982_v2  ;;  %5001 = vpow.bf16 %v2361_v14  ;;  %v2264_v36 = vsub.f32 %v6342_v39, %v6393_v30 }
 0x4f0   : > { %v4986_v55 = vpop.eup %4985  ;;  %2568 = vmatpush1.bf16.msra.mxu1 %v6469_v21  ;;  %v2266_v10 = vsub.f32 %v6348_v54, %v6393_v30  ;;  %5003 = vpow.bf16 %v2367_v32  ;;  %v2263_v62 = vsub.f32 %v6339_v52, %v6391_v63  ;;  %v2309_v37 = vpack.c.bf16 %v2261_v34, %v2259_v29 }
 0x4f1   : > { %v2524_v42 = vadd.f32 %v2426_v5, %v2424_v0  ;;  %v2428_v51 = vunpack.c.l.bf16 %v4986_v55  ;;  %2569 = vmatprep.subr.bf16.mxu1 %v4986_v55  ;;  %v2430_v43 = vunpack.c.h.bf16 %v4986_v55  ;;  %v2265_v9 = vsub.f32 %v6345_v17, %v6391_v63  ;;  %v7622_v55 = vld [vmem:[#allocation60_spill] sm:$0xff] }
 0x4f2   : > { %v4988_v31 = vpop.eup %4987  ;;  %v2312_v60 = vpack.c.bf16 %v2266_v10, %v2264_v36  ;;  %v2268_v28 = vsub.f32 %v6354_v7, %v6393_v30  ;;  %v2364_v23 = vmul.bf16 1069105081, %v2307_v58  ;;  %v2270_v11 = vsub.f32 %v6360_v57, %v6393_v30  ;;  %v7617_v57 = vld [vmem:[#allocation55_spill] sm:$0xff] }
 0x4f3   : > { %v6474_v22 = vpop.eup %4989  ;;  %v2525_v61 = vadd.f32 %v2524_v42, %v2428_v51  ;;  %v2432_v48 = vunpack.c.l.bf16 %v4988_v31  ;;  %v2434_v45 = vunpack.c.h.bf16 %v4988_v31  ;;  %5005 = vpow.bf16 %v2358_v47  ;;  %v7621_v58 = vld [vmem:[#allocation59_spill] sm:$0xff]  ;;  %v7623_v42 = vld [vmem:[#allocation13_spill] sm:$0xff]  ;;  %v7625_v47 = vld [vmem:[#allocation14_spill] sm:$0xff] }
 0x4f4   : > { %2570 = vmatpush1.bf16.msra.mxu1 %v6474_v22  ;;  %v2373_v52 = vmul.bf16 1069105081, %v2310_v3  ;;  %v2311_v41 = vpack.c.bf16 %v2265_v9, %v2263_v62  ;;  %v2267_v12 = vsub.f32 %v7616_v27, %v6391_v63  ;;  %v2423_v40 = vunpack.c.l.bf16 %v6469_v21 }
 0x4f5   : > { %v2526_v20 = vadd.f32 %v2525_v61, %v2430_v43  ;;  %2571 = vmatprep.subr.bf16.mxu1 %v4988_v31  ;;  %v4992_v33 = vpop.eup %4991  ;;  %v2314_v15 = vpack.c.bf16 %v2270_v11, %v2268_v28  ;;  %v2425_v1 = vunpack.c.h.bf16 %v6469_v21  ;;  %v2370_v13 = vmul.bf16 1069105081, %v2309_v37  ;;  %v7620_v21 = vld [vmem:[#allocation51_spill] sm:$0xff]  ;;  %v7624_v43 = vld [vmem:[#allocation56_spill] sm:$0xff] }
 0x4f6   : > { %v6489_v39 = vpop.eup %4993  ;;  %v2436_v44 = vunpack.c.l.bf16 %v4992_v33  ;;  %v2269_v53 = vsub.f32 %v7617_v57, %v6391_v63  ;;  %v2272_v8 = vsub.f32 %v7618_v4, %v6393_v30  ;;  %v2438_v24 = vunpack.c.h.bf16 %v4992_v33 }
 0x4f7   : > { %v2527_v54 = vadd.f32 %v2526_v20, %v2432_v48  ;;  %v4996_v17 = vpop.eup %4995  ;;  %5007 = vpow.bf16 %v2364_v23  ;;  %v2274_v46 = vsub.f32 %v7619_v59, %v6393_v30  ;;  %v2379_v56 = vmul.bf16 1069105081, %v2312_v60 }
 0x4f8   : > { %2572 = vmatpush1.bf16.msra.mxu1 %v6489_v39  ;;  %v6502_v35 = vpop.eup %4997  ;;  %v2440_v16 = vunpack.c.l.bf16 %v4996_v17  ;;  %5009 = vpow.bf16 %v2373_v52  ;;  %v2313_v6 = vpack.c.bf16 %v2269_v53, %v2267_v12  ;;  %v2442_v38 = vunpack.c.h.bf16 %v4996_v17 }
 0x4f9   : > { %v2528_v7 = vadd.f32 %v2527_v54, %v2434_v45  ;;  %2573 = vmatprep.subr.bf16.mxu1 %v4992_v33  ;;  %v6507_v2 = vpop.eup %4999  ;;  %v2316_v18 = vpack.c.bf16 %v2274_v46, %v2272_v8  ;;  %v2271_v0 = vsub.f32 %v7620_v21, %v6391_v63  ;;  %5011 = vpow.bf16 %v2370_v13 }
 0x4fa   : > { %v5002_v5 = vpop.eup %5001  ;;  %v2273_v29 = vsub.f32 %v7621_v58, %v6391_v63  ;;  %v2276_v3 = vsub.f32 %v7622_v55, %v6393_v30  ;;  %v2278_v51 = vsub.f32 %v7623_v42, %v6393_v30  ;;  %v2376_v31 = vmul.bf16 1069105081, %v2311_v41 }
 0x4fb   : > { %v2529_v26 = vadd.f32 %v2528_v7, %v2436_v44  ;;  %v2275_v61 = vsub.f32 %v7624_v43, %v6391_v63  ;;  %v2277_v34 = vsub.f32 %v7625_v47, %v6391_v63  ;;  %v5004_v36 = vpop.eup %5003  ;;  %5013 = vpow.bf16 %v2379_v56 }
 0x4fc   : > { %2574 = vmatpush1.bf16.msra.mxu1 %v6502_v35  ;;  %v2385_v10 = vmul.bf16 1069105081, %v2314_v15  ;;  %v2315_v20 = vpack.c.bf16 %v2273_v29, %v2271_v0  ;;  %v2318_v48 = vpack.c.bf16 %v2278_v51, %v2276_v3  ;;  %v2444_v33 = vunpack.c.l.bf16 %v5002_v5 }
 0x4fd   : > { %v2530_v14 = vadd.f32 %v2529_v26, %v2438_v24  ;;  %2575 = vmatprep.subr.bf16.mxu1 %v4996_v17  ;;  %v2317_v37 = vpack.c.bf16 %v2277_v34, %v2275_v61  ;;  %v2487_v30 = vadd.f32 %v2425_v1, %v2423_v40  ;;  %v2446_v9 = vunpack.c.h.bf16 %v5002_v5 }
 0x4fe   : > { %v6522_v60 = vpop.eup %5005  ;;  %5015 = vpow.bf16 %v2376_v31  ;;  %v2382_v45 = vmul.bf16 1069105081, %v2313_v6  ;;  %v2391_v63 = vmul.bf16 1069105081, %v2316_v18  ;;  %v2427_v54 = vunpack.c.l.bf16 %v6474_v22 }
 0x4ff   : > { %v2531_v32 = vadd.f32 %v2530_v14, %v2440_v16  ;;  %5017 = vpow.bf16 %v2385_v10  ;;  %v2448_v11 = vunpack.c.l.bf16 %v5004_v36  ;;  %v2429_v41 = vunpack.c.h.bf16 %v6474_v22 }
 0x500   : > { %2576 = vmatpush1.bf16.msra.mxu1 %v6507_v2  ;;  %5019 = vpow.bf16 %v2382_v45  ;;  %v2388_v17 = vmul.bf16 1069105081, %v2315_v20  ;;  %v2488_v40 = vadd.f32 %v2487_v30, %v2427_v54  ;;  %v2450_v7 = vunpack.c.h.bf16 %v5004_v36 }
 0x501   : > { %v2532_v62 = vadd.f32 %v2531_v32, %v2442_v38  ;;  %2577 = vmatprep.subr.bf16.mxu1 %v5002_v5  ;;  %5021 = vpow.bf16 %v2391_v63  ;;  %v2397_v44 = vmul.bf16 1069105081, %v2318_v48  ;;  %v2431_v1 = vunpack.c.l.bf16 %v6489_v39 }
 0x502   : > { %v6526_v52 = vpop.eup %5007  ;;  %v2489_v13 = vadd.f32 %v2488_v40, %v2429_v41  ;;  %v2322_v57 = vpack.c.bf16 %v6405_v49, %v6405_v49  ;;  %v2403_v8 = vmul.bf16 1069105081, %v6417_v25  ;;  %5023 = vpow.bf16 %v2388_v17 }
 0x503   : > { %v2533_v28 = vadd.f32 %v2532_v62, %v2444_v33  ;;  %v5010_v27 = vpop.eup %5009  ;;  %v2433_v24 = vunpack.c.h.bf16 %v6489_v39  ;;  %5025 = vpow.bf16 %v2397_v44  ;;  %v2394_v59 = vmul.bf16 1069105081, %v2317_v37 }
 0x504   : > { %2578 = vmatpush1.bf16.msra.mxu1 %v6522_v60  ;;  %v6530_v15 = vpop.eup %5011  ;;  %v2452_v22 = vunpack.c.l.bf16 %v5010_v27  ;;  %v2490_v26 = vadd.f32 %v2489_v13, %v2431_v1  ;;  %v2454_v46 = vunpack.c.h.bf16 %v5010_v27  ;;  %v2435_v56 = vunpack.c.l.bf16 %v6502_v35 }
 0x505   : > { %v2534_v23 = vadd.f32 %v2533_v28, %v2446_v9  ;;  %2579 = vmatprep.subr.bf16.mxu1 %v5004_v36  ;;  %v2321_v14 = vpack.c.bf16 %v6397_v19, %v6397_v19  ;;  %v2400_v39 = vmul.bf16 1069105081, %v6412_v50  ;;  %5027 = vpow.bf16 %v2403_v8 }
 0x506   : > { %v5014_v4 = vpop.eup %5013  ;;  %v2491_v6 = vadd.f32 %v2490_v26, %v2433_v24  ;;  %v2437_v21 = vunpack.c.h.bf16 %v6502_v35  ;;  %v2409_v5 = vmul.bf16 1069105081, %v2322_v57  ;;  %5029 = vpow.bf16 %v2394_v59 }
 0x507   : > { %v2535_v12 = vadd.f32 %v2534_v23, %v2448_v11  ;;  %v2456_v25 = vunpack.c.l.bf16 %v5014_v4  ;;  %v2458_v58 = vunpack.c.h.bf16 %v5014_v4  ;;  %v2439_v55 = vunpack.c.l.bf16 %v6507_v2 }
 0x508   : > { %2580 = vmatpush1.bf16.msra.mxu1 %v6526_v52  ;;  %v2492_v0 = vadd.f32 %v2491_v6, %v2435_v56  ;;  %5031 = vpow.bf16 %v2400_v39  ;;  %v2441_v50 = vunpack.c.h.bf16 %v6507_v2  ;;  %v2406_v31 = vmul.bf16 1069105081, %v2321_v14 }
 0x509   : > { %2581 = vmatprep.subr.bf16.mxu1 %v5010_v27  ;;  %v2536_v53 = vadd.f32 %v2535_v12, %v2450_v7  ;;  %v6539_v49 = vpop.eup %5015  ;;  %5033 = vpow.bf16 %v2409_v5  ;;  %v2443_v47 = vunpack.c.l.bf16 %v6522_v60  ;;  %v2445_v62 = vunpack.c.h.bf16 %v6522_v60 }
 0x50a   : > { %v5018_v18 = vpop.eup %5017  ;;  %v2493_v3 = vadd.f32 %v2492_v0, %v2437_v21  ;;  %5035 = vpow.bf16 %v2406_v31  ;;  %v2447_v30 = vunpack.c.l.bf16 %v6526_v52  ;;  %v2449_v23 = vunpack.c.h.bf16 %v6526_v52 }
 0x50b   : > { %v2537_v16 = vadd.f32 %v2536_v53, %v2452_v22  ;;  %v6547_v19 = vpop.eup %5019  ;;  %v2460_v42 = vunpack.c.l.bf16 %v5018_v18  ;;  %v2462_v43 = vunpack.c.h.bf16 %v5018_v18  ;;  %v2451_v27 = vunpack.c.l.bf16 %v6530_v15 }
 0x50c   : > { %2582 = vmatpush1.bf16.msra.mxu1 %v6530_v15  ;;  %v5022_v32 = vpop.eup %5021  ;;  %v2494_v35 = vadd.f32 %v2493_v3, %v2439_v55  ;;  %v2453_v1 = vunpack.c.h.bf16 %v6530_v15  ;;  %v2455_v52 = vunpack.c.l.bf16 %v6539_v49  ;;  %v2457_v26 = vunpack.c.h.bf16 %v6539_v49  ;;  %v7627_v55 = vld [vmem:[#allocation33_spill] sm:$0xff] }
 0x50d   : > { %2583 = vmatprep.subr.bf16.mxu1 %v5014_v4  ;;  %v2538_v38 = vadd.f32 %v2537_v16, %v2454_v46  ;;  %v6552_v36 = vpop.eup %5023  ;;  %v2464_v10 = vunpack.c.l.bf16 %v5022_v32  ;;  %v2466_v2 = vunpack.c.h.bf16 %v5022_v32  ;;  %v2459_v15 = vunpack.c.l.bf16 %v6547_v19 }
 0x50e   : > { %v2495_v34 = vadd.f32 %v2494_v35, %v2441_v50  ;;  %v5026_v48 = vpop.eup %5025  ;;  %v2461_v14 = vunpack.c.h.bf16 %v6547_v19  ;;  %v7629_v31 = vmov 0  }
 0x50f   : > { %v2539_v29 = vadd.f32 %v2538_v38, %v2456_v25  ;;  %v2468_v45 = vunpack.c.l.bf16 %v5026_v48  ;;  %v2470_v41 = vunpack.c.h.bf16 %v5026_v48 }
 0x510   : > { %2584 = vmatpush1.bf16.msra.mxu1 %v6539_v49  ;;  %v2496_v33 = vadd.f32 %v2495_v34, %v2443_v47  ;;  %v5028_v28 = vpop.eup %5027  ;;  %v2465_v49 = vunpack.c.h.bf16 %v6552_v36 }
 0x511   : > { %2585 = vmatprep.subr.bf16.mxu1 %v5018_v18  ;;  %v2540_v51 = vadd.f32 %v2539_v29, %v2458_v58  ;;  %v5030_v54 = vpop.eup %5029  ;;  %v2472_v40 = vunpack.c.l.bf16 %v5028_v28  ;;  %v2474_v57 = vunpack.c.h.bf16 %v5028_v28  ;;  %v2463_v18 = vunpack.c.l.bf16 %v6552_v36  ;;  %v7626_v58 = vld [vmem:[#allocation15_spill] sm:$0xff] }
 0x512   : > { %v2497_v9 = vadd.f32 %v2496_v33, %v2445_v62  ;;  %v2563_v29 = vrot.slane %v7626_v58, 4  ;;  %v2467_v3 = vunpack.c.l.bf16 %v5030_v54  ;;  %v2469_v50 = vunpack.c.h.bf16 %v5030_v54  ;;  %v7648_v58 = vld [vmem:[#allocation48_spill] sm:$0xff] }
 0x513   : > { %v2541_v61 = vadd.f32 %v2540_v51, %v2460_v42  ;;  %v5032_v17 = vpop.eup %5031  ;;  %v7628_v51 = vld [vmem:[#allocation32_spill] sm:$0xff] }
 0x514   : > { %2586 = vmatpush1.bf16.msra.mxu1 %v6547_v19  ;;  %v2498_v11 = vadd.f32 %v2497_v9, %v2447_v30  ;;  %v5034_v44 = vpop.eup %5033  ;;  %v2473_v47 = vunpack.c.h.bf16 %v5032_v17  ;;  %v7631_v30 = vld [vmem:[#allocation37_spill] sm:$0xff] }
 0x515   : > { %2587 = vmatprep.subr.bf16.mxu1 %v5022_v32  ;;  %v2542_v20 = vadd.f32 %v2541_v61, %v2462_v43  ;;  %v2476_v4 = vunpack.c.l.bf16 %v5034_v44  ;;  %v5036_v24 = vpop.eup %5035  ;;  %v2478_v46 = vunpack.c.h.bf16 %v5034_v44  ;;  %v2693_v32 = vsel %vm1027_vm1, %v7628_v51, 0 }
 0x516   : > { %v2499_v12 = vadd.f32 %v2498_v11, %v2449_v23  ;;  %v2471_v43 = vunpack.c.l.bf16 %v5032_v17  ;;  %v7635_v23 = vld [vmem:[#allocation45_spill] sm:$0xff] }
 0x517   : > { %v2543_v37 = vadd.f32 %v2542_v20, %v2464_v10  ;;  %v7630_v20 = vld [vmem:[#allocation35_spill] sm:$0xff]  ;;  %v7636_v11 = vld [vmem:[#allocation49_spill] sm:$0xff] }
 0x518   : > { %2588 = vmatpush1.bf16.msra.mxu1 %v6552_v36  ;;  %v2500_v13 = vadd.f32 %v2499_v12, %v2451_v27  ;;  %v2475_v36 = vunpack.c.l.bf16 %v5036_v24  ;;  %v7639_v27 = vld [vmem:[#allocation36_spill] sm:$0xff]  ;;  %v7640_v12 = vld [vmem:[#allocation38_spill] sm:$0xff] }
 0x519   : > { %2589 = vmatprep.subr.bf16.mxu1 %v5026_v48  ;;  %v2544_v63 = vadd.f32 %v2543_v37, %v2466_v2  ;;  %v2477_v48 = vunpack.c.h.bf16 %v5036_v24 }
 0x51a   : > { %v2501_v53 = vadd.f32 %v2500_v13, %v2453_v1  ;;  %v7645_v1 = vld [vmem:[#allocation58_spill] sm:$0xff] }
 0x51b   : > { %v2545_v60 = vadd.f32 %v2544_v63, %v2468_v45  ;;  %v7632_v45 = vld [vmem:[#allocation39_spill] sm:$0xff]  ;;  %v7633_v63 = vld [vmem:[#allocation41_spill] sm:$0xff]  ;;  %v4164_v13 = vrot.slane %v7645_v1, 4 }
 0x51c   : > { %2590 = vmatpush1.bf16.msra.mxu1 %v5030_v54  ;;  %v2502_v59 = vadd.f32 %v2501_v53, %v2455_v52  ;;  %v7634_v54 = vld [vmem:[#allocation43_spill] sm:$0xff] }
 0x51d   : > { %2591 = vmatprep.subr.bf16.mxu1 %v5028_v28  ;;  %v2546_v7 = vadd.f32 %v2545_v60, %v2470_v41  ;;  %v7637_v41 = vld [vmem:[#allocation52_spill] sm:$0xff]  ;;  %v7638_v60 = vld [vmem:[#allocation34_spill] sm:$0xff] }
 0x51e   : > { %v2503_v56 = vadd.f32 %v2502_v59, %v2457_v26 }
 0x51f   : > { %v2547_v22 = vadd.f32 %v2546_v7, %v2472_v40  ;;  %v7642_v40 = vld [vmem:[#allocation42_spill] sm:$0xff]  ;;  %v7643_v7 = vld [vmem:[#allocation44_spill] sm:$0xff] }
 0x520   : > { %2592 = vmatpush1.bf16.msra.mxu1 %v5032_v17  ;;  %v2504_v25 = vadd.f32 %v2503_v56, %v2459_v15  ;;  %v7641_v17 = vld [vmem:[#allocation40_spill] sm:$0xff] }
 0x521   : > { %2593 = vmatprep.subr.bf16.mxu1 %v5034_v44  ;;  %v2548_v8 = vadd.f32 %v2547_v22, %v2474_v57  ;;  %v7646_v57 = vld [vmem:[#allocation50_spill] sm:$0xff] }
 0x522   : > { %v2505_v39 = vadd.f32 %v2504_v25, %v2461_v14 }
 0x523   : > { %v2549_v16 = vadd.f32 %v2548_v8, %v2476_v4 }
 0x524   : > { %2594 = vmatpush1.bf16.msra.mxu1 %v5036_v24  ;;  %v2506_v0 = vadd.f32 %v2505_v39, %v2463_v18 }
 0x525   : > { %2595 = vmatprep.subr.bf16.mxu1 %v5034_v44  ;;  %v2550_v6 = vadd.f32 %v2549_v16, %v2478_v46 }
 0x526   : > { %v2507_v19 = vadd.f32 %v2506_v0, %v2465_v49  ;;  %v7647_v49 = vld [vmem:[#allocation46_spill] sm:$0xff] }
 0x527   : > { %v2551_v38 = vadd.f32 %v2550_v6, %v2476_v4 }
 0x528   : > { %2596 = vmatpush1.bf16.msra.mxu1 %v5036_v24  ;;  %v2508_v35 = vadd.f32 %v2507_v19, %v2467_v3 }
 0x529   : > { %2597 = vmatprep.subr.bf16.mxu1 %v5034_v44  ;;  %v2552_v21 = vadd.f32 %v2551_v38, %v2478_v46  ;;  %v7644_v44 = vld [vmem:[#allocation47_spill] sm:$0xff] }
 0x52a   : > { %v2509_v61 = vadd.f32 %v2508_v35, %v2469_v50 }
 0x52b   : > { %v2553_v5 = vadd.f32 %v2552_v21, %v2476_v4 }
 0x52c   : > { %2598 = vmatpush1.bf16.msra.mxu1 %v5036_v24  ;;  %v2510_v34 = vadd.f32 %v2509_v61, %v2471_v43 }
 0x52d   : > { %4714 = vmatprep.subr.msk.bf16.mxu1 %vm1027_vm1, %v7627_v55  ;;  %v2554_v42 = vadd.f32 %v2553_v5, %v2478_v46 }
 0x52e   : > { %v2511_v10 = vadd.f32 %v2510_v34, %v2473_v47 }
 0x52f   : > { %2600 = vmatmul.mubr.bf16.vlgmr.msra.gmra.mrb[72].mxu1 %v2563_v29  ;;  %v2555_v52 = vrot.slane %v2554_v42, 4 }
 0x530   : > { %2699 = vmatpush1.bf16.msra.mxu1 %v2693_v32  ;;  %2730 = vmatprep.mubr.bf16.mxu1 %v7629_v31  ;;  %v2512_v62 = vadd.f32 %v2511_v10, %v2475_v36 }
 0x531   : > { %v2556_v4 = vadd.f32 %v2555_v52, %v2554_v42 }
 0x532   : > { %v2513_v33 = vadd.f32 %v2512_v62, %v2477_v48 }
 0x533   : > { %v2557_v24 = vrot.slane %v2556_v4, 2 }
 0x534   : > { %v2514_v2 = vadd.f32 %v2513_v33, %v2475_v36 }
 0x535   : > { %v2558_v59 = vadd.f32 %v2557_v24, %v2556_v4 }
 0x536   : > { %v2515_v37 = vadd.f32 %v2514_v2, %v2477_v48 }
 0x537   : > { %4715 = vmatmul.mubr.msk.bf16.vlgmr.msra.gmra.mrb[76].mxu1 %vm978_vm2, %v7630_v20  ;;  %v2559_v16 = vrot.slane %v2558_v59, 1 }
 0x538   : > { %2740 = vmatprep.mubr.bf16.mxu1 %v7629_v31  ;;  %v2516_v9 = vadd.f32 %v2515_v37, %v2475_v36 }
 0x539   : > { %v2560_v56 = vadd.f32 %v2559_v16, %v2558_v59 }
 0x53a   : > { %v2517_v28 = vadd.f32 %v2516_v9, %v2477_v48 }
 0x53c   : > { %v2518_v22 = vrot.slane %v2517_v28, 4 }
 0x53e   : > { %v2519_v53 = vadd.f32 %v2518_v22, %v2517_v28 }
 0x53f   : > { %4716 = vmatmul.mubr.msk.bf16.gmra.mrb[80].mxu1 %vm978_vm2, %v7631_v30 }
 0x540   : > { %2750 = vmatprep.mubr.bf16.mxu1 %v7629_v31  ;;  %v2520_v8 = vrot.slane %v2519_v53, 2 }
 0x542   : > { %v2521_v26 = vadd.f32 %v2520_v8, %v2519_v53 }
 0x544   : > { %v2522_v46 = vrot.slane %v2521_v26, 1 }
 0x546   : > { %v2523_v15 = vadd.f32 %v2522_v46, %v2521_v26 }
 0x547   : > { %4717 = vmatmul.mubr.msk.bf16.gmra.mrb[84].mxu1 %vm978_vm2, %v7632_v45 }
 0x548   : > { %2760 = vmatprep.mubr.bf16.mxu1 %v7629_v31  ;;  %5037 = vrcp.f32 %v2523_v15 }
 0x549   : > { %5039 = vrcp.f32 %v2560_v56 }
 0x54f   : > { %4718 = vmatmul.mubr.msk.bf16.gmra.mrb[88].mxu1 %vm978_vm2, %v7633_v63 }
 0x550   : > { %2770 = vmatprep.mubr.bf16.mxu1 %v7629_v31 }
 0x552   : > { %v5038_v6 = vpop.eup %5037 }
 0x553   : > { %v5040_v25 = vpop.eup %5039 }
 0x557   : > { %4719 = vmatmul.mubr.msk.bf16.gmra.mrb[92].mxu1 %vm978_vm2, %v7634_v54 }
 0x558   : > { %2780 = vmatprep.mubr.bf16.mxu1 %v7629_v31 }
 0x55f   : > { %4720 = vmatmul.mubr.msk.bf16.gmra.mrb[96].mxu1 %vm978_vm2, %v7635_v23 }
 0x560   : > { %2790 = vmatprep.mubr.bf16.mxu1 %v7629_v31 }
 0x567   : > { %4721 = vmatmul.mubr.msk.bf16.gmra.mrb[100].mxu1 %vm978_vm2, %v7636_v11 }
 0x568   : > { %2800 = vmatprep.mubr.bf16.mxu1 %v7629_v31 }
 0x56f   : > { %4722 = vmatmul.mubr.msk.bf16.gmra.mrb[104].mxu1 %vm978_vm2, %v7637_v41 }
 0x570   : > { %2810 = vmatprep.mubr.bf16.mxu1 %v7629_v31 }
 0x577   : > { %4723 = vmatmul.mubr.msk.bf16.gmra.mrb[108].mxu1 %vm978_vm2, %v7638_v60 }
 0x578   : > { %2820 = vmatprep.mubr.bf16.mxu1 %v7629_v31 }
 0x57f   : > { %4724 = vmatmul.mubr.msk.bf16.gmra.mrb[112].mxu1 %vm978_vm2, %v7639_v27 }
 0x580   : > { %2830 = vmatprep.mubr.bf16.mxu1 %v7629_v31 }
 0x587   : > { %4725 = vmatmul.mubr.msk.bf16.gmra.mrb[116].mxu1 %vm978_vm2, %v7640_v12 }
 0x588   : > { %2840 = vmatprep.mubr.bf16.mxu1 %v7629_v31 }
 0x58f   : > { %4726 = vmatmul.mubr.msk.bf16.gmra.mrb[120].mxu1 %vm978_vm2, %v7641_v17 }
 0x590   : > { %2850 = vmatprep.mubr.bf16.mxu1 %v7629_v31 }
 0x597   : > { %4727 = vmatmul.mubr.msk.bf16.gmra.mrb[124].mxu1 %vm978_vm2, %v7642_v40 }
 0x598   : > { %2860 = vmatprep.mubr.bf16.mxu1 %v7629_v31 }
 0x59f   : > { %4728 = vmatmul.mubr.msk.bf16.gmra.mrb[128].mxu1 %vm978_vm2, %v7643_v7 }
 0x5a0   : > { %2870 = vmatprep.mubr.bf16.mxu1 %v7629_v31 }
 0x5a7   : > { %4729 = vmatmul.mubr.msk.bf16.gmra.mrb[132].mxu1 %vm978_vm2, %v7644_v44 }
 0x5a8   : > { %2880 = vmatprep.mubr.bf16.mxu1 %v7629_v31 }
 0x5af   : > { %4730 = vmatmul.mubr.msk.bf16.gmra.mrb[136].mxu1 %vm978_vm2, %v7646_v57 }
 0x5b0   : > { %4199 = vmatprep.mubr.bf16.mxu1 %v4164_v13 }
 0x602   : > { %v2601_v14 = vpop.f32.mrb[72].mxu1 }
 0x603   : > { %v2610_v38 = vmul.f32 %v5038_v6, %v2601_v14  ;;  %v2603_v18 = vpop.f32.mrb[73].mxu1 }
 0x604   : > { %v2611_v39 = vmul.f32 %v5040_v25, %v2603_v18  ;;  %v2605_v21 = vpop.f32.mrb[74].mxu1 }
 0x605   : > { %v4212_v0 = vpack.c.bf16 %v2610_v38, %v7647_v49  ;;  %v2606_v5 = vpop.f32.mrb[75].mxu1 }
 0x606   : > { %v4213_v29 = vpack.c.bf16 %v2611_v39, %v7648_v58 }
 0x607   : > { %4220 = vxpose.xlu0.c.b16.start [1/2] (short) %v4212_v0, 128 }
 0x608   : > { %4236 = vxpose.xlu1.c.b16.start [1/2] (short) %v4213_v29, 128 }
 0x60a   : > { %v6622_v3 = vpop.f32.mrb[76].mxu1 }
 0x60b   : > { %v6624_v19 = vpop.f32.mrb[77].mxu1 }
 0x60c   : > { %v6626_v42 = vpop.f32.mrb[78].mxu1 }
 0x60d   : > { %v6628_v32 = vpop.f32.mrb[79].mxu1 }
 0x612   : > { %v6630_v50 = vpop.f32.mrb[80].mxu1 }
 0x613   : > { %v2955_v35 = vmax.f32 %v6622_v3, %v6630_v50  ;;  %v6634_v43 = vpop.f32.mrb[81].mxu1 }
 0x614   : > { %v2992_v61 = vmax.f32 %v6624_v19, %v6634_v43  ;;  %v6638_v47 = vpop.f32.mrb[82].mxu1 }
 0x615   : > { %v2956_v34 = vmax.f32 %v6626_v42, %v6638_v47  ;;  %v6642_v36 = vpop.f32.mrb[83].mxu1 }
 0x616   : > { %v2993_v10 = vmax.f32 %v6628_v32, %v6642_v36 }
 0x61a   : > { %v6646_v20 = vpop.f32.mrb[84].mxu1 }
 0x61b   : > { %v2957_v48 = vmax.f32 %v2955_v35, %v6646_v20  ;;  %v6649_v62 = vpop.f32.mrb[85].mxu1 }
 0x61c   : > { %v2994_v33 = vmax.f32 %v2992_v61, %v6649_v62  ;;  %v6652_v2 = vpop.f32.mrb[86].mxu1 }
 0x61d   : > { %v2958_v37 = vmax.f32 %v2956_v34, %v6652_v2  ;;  %v6655_v30 = vpop.f32.mrb[87].mxu1 }
 0x61e   : > { %v2995_v9 = vmax.f32 %v2993_v10, %v6655_v30 }
 0x622   : > { %v6658_v28 = vpop.f32.mrb[88].mxu1 }
 0x623   : > { %v2959_v45 = vmax.f32 %v2957_v48, %v6658_v28  ;;  %v6661_v63 = vpop.f32.mrb[89].mxu1 }
 0x624   : > { %v2996_v54 = vmax.f32 %v2994_v33, %v6661_v63  ;;  %v6664_v23 = vpop.f32.mrb[90].mxu1 }
 0x625   : > { %v2960_v11 = vmax.f32 %v2958_v37, %v6664_v23  ;;  %v6667_v41 = vpop.f32.mrb[91].mxu1 }
 0x626   : > { %v2997_v60 = vmax.f32 %v2995_v9, %v6667_v41 }
 0x62a   : > { %v6670_v27 = vpop.f32.mrb[92].mxu1 }
 0x62b   : > { %v2961_v12 = vmax.f32 %v2959_v45, %v6670_v27  ;;  %v6673_v17 = vpop.f32.mrb[93].mxu1 }
 0x62c   : > { %v2998_v40 = vmax.f32 %v2996_v54, %v6673_v17  ;;  %v6676_v7 = vpop.f32.mrb[94].mxu1 }
 0x62d   : > { %v2962_v44 = vmax.f32 %v2960_v11, %v6676_v7  ;;  %v6679_v1 = vpop.f32.mrb[95].mxu1 }
 0x62e   : > { %v2999_v13 = vmax.f32 %v2997_v60, %v6679_v1 }
 0x632   : > { %v6682_v57 = vpop.f32.mrb[96].mxu1 }
 0x633   : > { %v2963_v22 = vmax.f32 %v2961_v12, %v6682_v57  ;;  %v6685_v52 = vpop.f32.mrb[97].mxu1 }
 0x634   : > { %v3000_v53 = vmax.f32 %v2998_v40, %v6685_v52  ;;  %v6688_v4 = vpop.f32.mrb[98].mxu1 }
 0x635   : > { %v2964_v8 = vmax.f32 %v2962_v44, %v6688_v4  ;;  %v6691_v24 = vpop.f32.mrb[99].mxu1 }
 0x636   : > { %v3001_v26 = vmax.f32 %v2999_v13, %v6691_v24 }
 0x63a   : > { %v6694_v59 = vpop.f32.mrb[100].mxu1 }
 0x63b   : > { %v2965_v46 = vmax.f32 %v2963_v22, %v6694_v59  ;;  %v6697_v16 = vpop.f32.mrb[101].mxu1 }
 0x63c   : > { %v3002_v15 = vmax.f32 %v3000_v53, %v6697_v16  ;;  %v6700_v56 = vpop.f32.mrb[102].mxu1 }
 0x63d   : > { %v2966_v6 = vmax.f32 %v2964_v8, %v6700_v56  ;;  %v6703_v14 = vpop.f32.mrb[103].mxu1 }
 0x63e   : > { %v3003_v25 = vmax.f32 %v3001_v26, %v6703_v14 }
 0x642   : > { %v6706_v38 = vpop.f32.mrb[104].mxu1 }
 0x643   : > { %v2967_v18 = vmax.f32 %v2965_v46, %v6706_v38  ;;  %v6709_v39 = vpop.f32.mrb[105].mxu1 }
 0x644   : > { %v3004_v21 = vmax.f32 %v3002_v15, %v6709_v39  ;;  %v6712_v49 = vpop.f32.mrb[106].mxu1 }
 0x645   : > { %v2968_v0 = vmax.f32 %v2966_v6, %v6712_v49  ;;  %v6715_v5 = vpop.f32.mrb[107].mxu1 }
 0x646   : > { %v3005_v58 = vmax.f32 %v3003_v25, %v6715_v5 }
 0x64a   : > { %v6718_v29 = vpop.f32.mrb[108].mxu1 }
 0x64b   : > { %v2969_v35 = vmax.f32 %v2967_v18, %v6718_v29  ;;  %v6721_v61 = vpop.f32.mrb[109].mxu1 }
 0x64c   : > { %v3006_v34 = vmax.f32 %v3004_v21, %v6721_v61  ;;  %v6724_v10 = vpop.f32.mrb[110].mxu1 }
 0x64d   : > { %v2970_v48 = vmax.f32 %v2968_v0, %v6724_v10  ;;  %v6727_v33 = vpop.f32.mrb[111].mxu1 }
 0x64e   : > { %v3007_v37 = vmax.f32 %v3005_v58, %v6727_v33 }
 0x652   : > { %v6730_v9 = vpop.f32.mrb[112].mxu1 }
 0x653   : > { %7649 = vst [vmem:[#allocation17_spill] sm:$0xff] %v6730_v9  ;;  %v2971_v45 = vmax.f32 %v2969_v35, %v6730_v9  ;;  %v6733_v54 = vpop.f32.mrb[113].mxu1 }
 0x654   : > { %v3008_v11 = vmax.f32 %v3006_v34, %v6733_v54  ;;  %v6736_v60 = vpop.f32.mrb[114].mxu1 }
 0x655   : > { %7650 = vst [vmem:[#allocation19_spill] sm:$0xff] %v6736_v60  ;;  %v2972_v12 = vmax.f32 %v2970_v48, %v6736_v60  ;;  %v6739_v40 = vpop.f32.mrb[115].mxu1 }
 0x656   : > { %v3009_v44 = vmax.f32 %v3007_v37, %v6739_v40 }
 0x65a   : > { %v6742_v13 = vpop.f32.mrb[116].mxu1 }
 0x65b   : > { %7651 = vst [vmem:[#allocation21_spill] sm:$0xff] %v6742_v13  ;;  %v2973_v22 = vmax.f32 %v2971_v45, %v6742_v13  ;;  %v6745_v53 = vpop.f32.mrb[117].mxu1 }
 0x65c   : > { %7652 = vst [vmem:[#allocation23_spill] sm:$0xff] %v6745_v53  ;;  %v3010_v8 = vmax.f32 %v3008_v11, %v6745_v53  ;;  %v6748_v26 = vpop.f32.mrb[118].mxu1 }
 0x65d   : > { %7653 = vst [vmem:[#allocation25_spill] sm:$0xff] %v6748_v26  ;;  %v2974_v46 = vmax.f32 %v2972_v12, %v6748_v26  ;;  %v6751_v15 = vpop.f32.mrb[119].mxu1 }
 0x65e   : > { %7654 = vst [vmem:[#allocation27_spill] sm:$0xff] %v6751_v15  ;;  %v3011_v6 = vmax.f32 %v3009_v44, %v6751_v15 }
 0x662   : > { %v6754_v25 = vpop.f32.mrb[120].mxu1 }
 0x663   : > { %7655 = vst [vmem:[#allocation29_spill] sm:$0xff] %v6754_v25  ;;  %v2975_v18 = vmax.f32 %v2973_v22, %v6754_v25  ;;  %v6757_v21 = vpop.f32.mrb[121].mxu1 }
 0x664   : > { %7656 = vst [vmem:[#allocation31_spill] sm:$0xff] %v6757_v21  ;;  %v3012_v0 = vmax.f32 %v3010_v8, %v6757_v21  ;;  %v6760_v58 = vpop.f32.mrb[122].mxu1 }
 0x665   : > { %7657 = vst [vmem:[#allocation16_spill] sm:$0xff] %v6760_v58  ;;  %v2976_v35 = vmax.f32 %v2974_v46, %v6760_v58  ;;  %v6763_v34 = vpop.f32.mrb[123].mxu1 }
 0x666   : > { %7658 = vst [vmem:[#allocation18_spill] sm:$0xff] %v6763_v34  ;;  %v3013_v48 = vmax.f32 %v3011_v6, %v6763_v34 }
 0x667   : > { %v2978_v37 = vmax.f32 %v2976_v35, -1e+30 }
 0x668   : > { %v3015_v45 = vmax.f32 %v3013_v48, -1e+30 }
 0x669   : > { %v2980_v11 = vmax.f32 %v2978_v37, -1e+30 }
 0x66a   : > { %v2852_v12 = vpop.f32.mrb[124].mxu1  ;;  %v3017_v44 = vmax.f32 %v3015_v45, -1e+30 }
 0x66b   : > { %v2939_v22 = vsel %vm938_vm3, %v2852_v12, -1e+30  ;;  %v2854_v51 = vpop.f32.mrb[125].mxu1  ;;  %v2982_v58 = vmax.f32 %v2980_v11, -1e+30 }
 0x66c   : > { %v2977_v55 = vmax.f32 %v2975_v18, %v2939_v22  ;;  %v2940_v8 = vsel %vm938_vm3, %v2854_v51, -1e+30  ;;  %v2856_v25 = vpop.f32.mrb[126].mxu1  ;;  %v3019_v13 = vmax.f32 %v3017_v44, -1e+30 }
 0x66d   : > { %v3014_v21 = vmax.f32 %v3012_v0, %v2940_v8  ;;  %v2858_v46 = vpop.f32.mrb[127].mxu1  ;;  %v2984_v37 = vmax.f32 %v2982_v58, -1e+30 }
 0x66e   : > { %v2979_v26 = vmax.f32 %v2977_v55, -1e+30  ;;  %v3021_v15 = vmax.f32 %v3019_v13, -1e+30 }
 0x66f   : > { %v3016_v6 = vmax.f32 %v3014_v21, -1e+30 }
 0x670   : > { %v2981_v35 = vmax.f32 %v2979_v26, -1e+30 }
 0x671   : > { %v3018_v48 = vmax.f32 %v3016_v6, -1e+30 }
 0x672   : > { %v2983_v34 = vmax.f32 %v2981_v35, -1e+30  ;;  %v2862_v45 = vpop.f32.mrb[128].mxu1 }
 0x673   : > { %v3020_v53 = vmax.f32 %v3018_v48, -1e+30  ;;  %v2864_v12 = vpop.f32.mrb[129].mxu1 }
 0x674   : > { %v2985_v60 = vmax.f32 %v2983_v34, %v2984_v37  ;;  %v2866_v18 = vpop.f32.mrb[130].mxu1 }
 0x675   : > { %v3022_v9 = vmax.f32 %v3020_v53, %v3021_v15  ;;  %v2868_v31 = vpop.f32.mrb[131].mxu1 }
 0x676   : > { %v2986_v51 = vrot.slane %v2985_v60, 4 }
 0x677   : > { %v3023_v25 = vrot.slane %v3022_v9, 4 }
 0x678   : > { %v2987_v0 = vmax.f32 %v2985_v60, %v2986_v51 }
 0x679   : > { %v3024_v46 = vmax.f32 %v3022_v9, %v3023_v25 }
 0x67a   : > { %v2988_v11 = vrot.slane %v2987_v0, 2  ;;  %v2872_v55 = vpop.f32.mrb[132].mxu1 }
 0x67b   : > { %v3025_v44 = vrot.slane %v3024_v46, 2  ;;  %v2874_v21 = vpop.f32.mrb[133].mxu1 }
 0x67c   : > { %v2989_v26 = vmax.f32 %v2987_v0, %v2988_v11  ;;  %v2876_v6 = vpop.f32.mrb[134].mxu1 }
 0x67d   : > { %v3026_v58 = vmax.f32 %v3024_v46, %v3025_v44  ;;  %v2878_v35 = vpop.f32.mrb[135].mxu1 }
 0x67e   : > { %v2990_v45 = vrot.slane %v2989_v26, 1 }
 0x67f   : > { %v3027_v13 = vrot.slane %v3026_v58, 1 }
 0x680   : > { %v6770_v48 = vmax.f32 %v2989_v26, %v2990_v45 }
 0x681   : > { %v6772_v34 = vmax.f32 %v3026_v58, %v3027_v13 }
 0x682   : > { %v3077_v31 = vsub.f32 %v2939_v22, %v6770_v48  ;;  %v6776_v53 = vsub.f32 -1e+30, %v6770_v48  ;;  %v3029_v9 = vsub.f32 %v6622_v3, %v6770_v48  ;;  %v3031_v60 = vsub.f32 %v6626_v42, %v6770_v48  ;;  %v2882_v15 = vpop.f32.mrb[136].mxu1 }
 0x683   : > { %v3078_v37 = vsub.f32 %v2940_v8, %v6772_v34  ;;  %v6784_v12 = vsub.f32 -1e+30, %v6772_v34  ;;  %v3030_v18 = vsub.f32 %v6624_v19, %v6772_v34  ;;  %v3032_v22 = vsub.f32 %v6628_v32, %v6772_v34  ;;  %v2884_v51 = vpop.f32.mrb[137].mxu1 }
 0x684   : > { %v6791_v25 = vpack.c.bf16 %v6776_v53, %v3077_v31  ;;  %v3093_v3 = vpack.c.bf16 %v3031_v60, %v3029_v9  ;;  %v3034_v42 = vsub.f32 %v6634_v43, %v6772_v34  ;;  %v2886_v0 = vpop.f32.mrb[138].mxu1  ;;  %v3036_v11 = vsub.f32 %v6642_v36, %v6772_v34 }
 0x685   : > { %v6796_v8 = vpack.c.bf16 %v6784_v12, %v3078_v37  ;;  %v3094_v46 = vpack.c.bf16 %v3032_v22, %v3030_v18  ;;  %v2888_v19 = vpop.f32.mrb[139].mxu1  ;;  %v3033_v32 = vsub.f32 %v6630_v50, %v6770_v48  ;;  %v3035_v21 = vsub.f32 %v6638_v47, %v6770_v48 }
 0x686   : > { %v3096_v55 = vpack.c.bf16 %v3036_v11, %v3034_v42  ;;  %v3038_v43 = vsub.f32 %v6649_v62, %v6772_v34  ;;  %v3040_v26 = vsub.f32 %v6655_v30, %v6772_v34  ;;  %v3126_v6 = vmul.bf16 1069105081, %v3093_v3 }
 0x687   : > { %v3129_v44 = vmul.bf16 1069105081, %v3094_v46  ;;  %v3037_v58 = vsub.f32 %v6646_v20, %v6770_v48  ;;  %v3039_v36 = vsub.f32 %v6652_v2, %v6770_v48  ;;  %v3095_v50 = vpack.c.bf16 %v3035_v21, %v3033_v32 }
 0x688   : > { %v3135_v35 = vmul.bf16 1069105081, %v3096_v55  ;;  %v3098_v45 = vpack.c.bf16 %v3040_v26, %v3038_v43  ;;  %v3042_v13 = vsub.f32 %v6661_v63, %v6772_v34  ;;  %v3044_v62 = vsub.f32 %v6667_v41, %v6772_v34 }
 0x689   : > { %v3097_v47 = vpack.c.bf16 %v3039_v36, %v3037_v58  ;;  %v3041_v30 = vsub.f32 %v6658_v28, %v6770_v48  ;;  %5041 = vpow.bf16 %v3129_v44  ;;  %v3043_v20 = vsub.f32 %v6664_v23, %v6770_v48 }
 0x68a   : > { %v3141_v31 = vmul.bf16 1069105081, %v3098_v45  ;;  %5043 = vpow.bf16 %v3126_v6  ;;  %v3132_v2 = vmul.bf16 1069105081, %v3095_v50  ;;  %v3100_v9 = vpack.c.bf16 %v3044_v62, %v3042_v13 }
 0x68b   : > { %v3046_v60 = vsub.f32 %v6673_v17, %v6772_v34  ;;  %5045 = vpow.bf16 %v3135_v35  ;;  %v3099_v63 = vpack.c.bf16 %v3043_v20, %v3041_v30  ;;  %v3048_v15 = vsub.f32 %v6679_v1, %v6772_v34 }
 0x68c   : > { %v3045_v41 = vsub.f32 %v6670_v27, %v6770_v48  ;;  %v3138_v28 = vmul.bf16 1069105081, %v3097_v47  ;;  %v3047_v37 = vsub.f32 %v6676_v7, %v6770_v48  ;;  %v3050_v23 = vsub.f32 %v6685_v52, %v6772_v34 }
 0x68d   : > { %5047 = vpow.bf16 %v3141_v31  ;;  %v3147_v18 = vmul.bf16 1069105081, %v3100_v9  ;;  %v3102_v22 = vpack.c.bf16 %v3048_v15, %v3046_v60  ;;  %v3052_v17 = vsub.f32 %v6691_v24, %v6772_v34 }
 0x68e   : > { %5049 = vpow.bf16 %v3132_v2  ;;  %v3101_v51 = vpack.c.bf16 %v3047_v37, %v3045_v41  ;;  %v3049_v1 = vsub.f32 %v6682_v57, %v6770_v48  ;;  %v3051_v27 = vsub.f32 %v6688_v4, %v6770_v48  ;;  %v7660_v37 = vld [vmem:[#allocation17_spill] sm:$0xff] }
 0x68f   : > { %v3104_v3 = vpack.c.bf16 %v3052_v17, %v3050_v23  ;;  %v3054_v7 = vsub.f32 %v6697_v16, %v6772_v34  ;;  %v3153_v42 = vmul.bf16 1069105081, %v3102_v22  ;;  %v3056_v0 = vsub.f32 %v6703_v14, %v6772_v34 }
 0x690   : > { %v3103_v52 = vpack.c.bf16 %v3051_v27, %v3049_v1  ;;  %5051 = vpow.bf16 %v3147_v18  ;;  %v3144_v24 = vmul.bf16 1069105081, %v3099_v63  ;;  %v3053_v11 = vsub.f32 %v6694_v59, %v6770_v48 }
 0x691   : > { %5053 = vpow.bf16 %v3138_v28  ;;  %v3106_v46 = vpack.c.bf16 %v3056_v0, %v3054_v7  ;;  %v3150_v57 = vmul.bf16 1069105081, %v3101_v51  ;;  %v3055_v4 = vsub.f32 %v6700_v56, %v6770_v48 }
 0x692   : > { %5055 = vpow.bf16 %v3153_v42  ;;  %v3159_v32 = vmul.bf16 1069105081, %v3104_v3  ;;  %v3058_v16 = vsub.f32 %v6709_v39, %v6772_v34  ;;  %v3060_v14 = vsub.f32 %v6715_v5, %v6772_v34  ;;  %v7662_v3 = vld [vmem:[#allocation23_spill] sm:$0xff] }
 0x693   : > { %v3105_v43 = vpack.c.bf16 %v3055_v4, %v3053_v11  ;;  %v3057_v59 = vsub.f32 %v6706_v38, %v6770_v48  ;;  %5057 = vpow.bf16 %v3144_v24  ;;  %v3165_v39 = vmul.bf16 1069105081, %v3106_v46  ;;  %v7663_v24 = vld [vmem:[#allocation27_spill] sm:$0xff] }
 0x694   : > { %v5042_v19 = vpop.eup %5041  ;;  %v3108_v56 = vpack.c.bf16 %v3060_v14, %v3058_v16  ;;  %5059 = vpow.bf16 %v3150_v57  ;;  %v3156_v45 = vmul.bf16 1069105081, %v3103_v52  ;;  %v3059_v38 = vsub.f32 %v6712_v49, %v6770_v48 }
 0x695   : > { %v6848_v55 = vpop.eup %5043  ;;  %v3222_v44 = vunpack.c.l.bf16 %v5042_v19  ;;  %v3224_v21 = vunpack.c.h.bf16 %v5042_v19  ;;  %3359 = vmatprep.subr.bf16.mxu0 %v5042_v19  ;;  %5061 = vpow.bf16 %v3159_v32  ;;  %v3062_v13 = vsub.f32 %v6721_v61, %v6772_v34 }
 0x696   : > { %v5046_v26 = vpop.eup %5045  ;;  %3360 = vmatpush1.bf16.msra.mxu0 %v6848_v55  ;;  %v3064_v47 = vsub.f32 %v6727_v33, %v6772_v34  ;;  %5063 = vpow.bf16 %v3165_v39  ;;  %v3061_v31 = vsub.f32 %v6718_v29, %v6770_v48  ;;  %v3107_v2 = vpack.c.bf16 %v3059_v38, %v3057_v59 }
 0x697   : > { %v3322_v6 = vadd.f32 %v3224_v21, %v3222_v44  ;;  %v3226_v58 = vunpack.c.l.bf16 %v5046_v26  ;;  %3361 = vmatprep.subr.bf16.mxu0 %v5046_v26  ;;  %v3228_v35 = vunpack.c.h.bf16 %v5046_v26  ;;  %v3063_v60 = vsub.f32 %v6724_v10, %v6770_v48  ;;  %v7666_v26 = vld [vmem:[#allocation31_spill] sm:$0xff] }
 0x698   : > { %v5048_v36 = vpop.eup %5047  ;;  %v3110_v9 = vpack.c.bf16 %v3064_v47, %v3062_v13  ;;  %v3066_v49 = vsub.f32 %v6733_v54, %v6772_v34  ;;  %v3162_v15 = vmul.bf16 1069105081, %v3105_v43  ;;  %v3068_v41 = vsub.f32 %v6739_v40, %v6772_v34  ;;  %v7661_v40 = vld [vmem:[#allocation19_spill] sm:$0xff]  ;;  %v7665_v43 = vld [vmem:[#allocation25_spill] sm:$0xff] }
 0x699   : > { %v6853_v5 = vpop.eup %5049  ;;  %v3323_v50 = vadd.f32 %v3322_v6, %v3226_v58  ;;  %v3230_v30 = vunpack.c.l.bf16 %v5048_v36  ;;  %v3232_v63 = vunpack.c.h.bf16 %v5048_v36  ;;  %5065 = vpow.bf16 %v3156_v45  ;;  %v7667_v6 = vld [vmem:[#allocation18_spill] sm:$0xff]  ;;  %v7669_v45 = vld [vmem:[#allocation16_spill] sm:$0xff] }
 0x69a   : > { %3362 = vmatpush1.bf16.msra.mxu0 %v6853_v5  ;;  %v3171_v29 = vmul.bf16 1069105081, %v3108_v56  ;;  %v3109_v28 = vpack.c.bf16 %v3063_v60, %v3061_v31  ;;  %v3065_v23 = vsub.f32 %v7660_v37, %v6770_v48  ;;  %v3221_v18 = vunpack.c.l.bf16 %v6848_v55 }
 0x69b   : > { %v3324_v62 = vadd.f32 %v3323_v50, %v3228_v35  ;;  %3363 = vmatprep.subr.bf16.mxu0 %v5048_v36  ;;  %v5052_v20 = vpop.eup %5051  ;;  %v3112_v17 = vpack.c.bf16 %v3068_v41, %v3066_v49  ;;  %v3223_v51 = vunpack.c.h.bf16 %v6848_v55  ;;  %v3168_v1 = vmul.bf16 1069105081, %v3107_v2  ;;  %v7664_v55 = vld [vmem:[#allocation21_spill] sm:$0xff] }
 0x69c   : > { %v6868_v61 = vpop.eup %5053  ;;  %v3234_v22 = vunpack.c.l.bf16 %v5052_v20  ;;  %v3067_v27 = vsub.f32 %v7661_v40, %v6770_v48  ;;  %v3070_v7 = vsub.f32 %v7662_v3, %v6772_v34  ;;  %v3236_v52 = vunpack.c.h.bf16 %v5052_v20  ;;  %v7668_v35 = vld [vmem:[#allocation29_spill] sm:$0xff] }
 0x69d   : > { %v3325_v33 = vadd.f32 %v3324_v62, %v3230_v30  ;;  %v5056_v10 = vpop.eup %5055  ;;  %5067 = vpow.bf16 %v3162_v15  ;;  %v3072_v46 = vsub.f32 %v7663_v24, %v6772_v34  ;;  %v3177_v57 = vmul.bf16 1069105081, %v3110_v9 }
 0x69e   : > { %3364 = vmatpush1.bf16.msra.mxu0 %v6868_v61  ;;  %v6881_v42 = vpop.eup %5057  ;;  %v3238_v11 = vunpack.c.l.bf16 %v5056_v10  ;;  %5069 = vpow.bf16 %v3171_v29  ;;  %v3111_v4 = vpack.c.bf16 %v3067_v27, %v3065_v23  ;;  %v3240_v16 = vunpack.c.h.bf16 %v5056_v10 }
 0x69f   : > { %v3326_v54 = vadd.f32 %v3325_v33, %v3232_v63  ;;  %3365 = vmatprep.subr.bf16.mxu0 %v5052_v20  ;;  %v6886_v19 = vpop.eup %5059  ;;  %v3114_v14 = vpack.c.bf16 %v3072_v46, %v3070_v7  ;;  %v3069_v44 = vsub.f32 %v7664_v55, %v6770_v48  ;;  %5071 = vpow.bf16 %v3168_v1 }
 0x6a0   : > { %v5062_v21 = vpop.eup %5061  ;;  %v3071_v59 = vsub.f32 %v7665_v43, %v6770_v48  ;;  %v3074_v56 = vsub.f32 %v7666_v26, %v6772_v34  ;;  %v3076_v58 = vsub.f32 %v7667_v6, %v6772_v34  ;;  %v3174_v36 = vmul.bf16 1069105081, %v3109_v28 }
 0x6a1   : > { %v3327_v0 = vadd.f32 %v3326_v54, %v3234_v22  ;;  %v3073_v50 = vsub.f32 %v7668_v35, %v6770_v48  ;;  %v3075_v38 = vsub.f32 %v7669_v45, %v6770_v48  ;;  %v5064_v13 = vpop.eup %5063  ;;  %5073 = vpow.bf16 %v3177_v57 }
 0x6a2   : > { %3366 = vmatpush1.bf16.msra.mxu0 %v6881_v42  ;;  %v3183_v47 = vmul.bf16 1069105081, %v3112_v17  ;;  %v3113_v62 = vpack.c.bf16 %v3071_v59, %v3069_v44  ;;  %v3116_v30 = vpack.c.bf16 %v3076_v58, %v3074_v56  ;;  %v3242_v20 = vunpack.c.l.bf16 %v5062_v21 }
 0x6a3   : > { %v3328_v32 = vadd.f32 %v3327_v0, %v3236_v52  ;;  %3367 = vmatprep.subr.bf16.mxu0 %v5056_v10  ;;  %v3115_v2 = vpack.c.bf16 %v3075_v38, %v3073_v50  ;;  %v3285_v34 = vadd.f32 %v3223_v51, %v3221_v18  ;;  %v3244_v60 = vunpack.c.h.bf16 %v5062_v21 }
 0x6a4   : > { %v6901_v9 = vpop.eup %5065  ;;  %5075 = vpow.bf16 %v3174_v36  ;;  %v3180_v63 = vmul.bf16 1069105081, %v3111_v4  ;;  %v3189_v48 = vmul.bf16 1069105081, %v3114_v14  ;;  %v3225_v33 = vunpack.c.l.bf16 %v6853_v5 }
 0x6a5   : > { %v3329_v39 = vadd.f32 %v3328_v32, %v3238_v11  ;;  %5077 = vpow.bf16 %v3183_v47  ;;  %v3246_v41 = vunpack.c.l.bf16 %v5064_v13  ;;  %v3227_v28 = vunpack.c.h.bf16 %v6853_v5 }
 0x6a6   : > { %3368 = vmatpush1.bf16.msra.mxu0 %v6886_v19  ;;  %5079 = vpow.bf16 %v3180_v63  ;;  %v3186_v10 = vmul.bf16 1069105081, %v3113_v62  ;;  %v3286_v18 = vadd.f32 %v3285_v34, %v3225_v33  ;;  %v3248_v54 = vunpack.c.h.bf16 %v5064_v13 }
 0x6a7   : > { %v3330_v31 = vadd.f32 %v3329_v39, %v3240_v16  ;;  %3369 = vmatprep.subr.bf16.mxu0 %v5062_v21  ;;  %5081 = vpow.bf16 %v3189_v48  ;;  %v3195_v22 = vmul.bf16 1069105081, %v3116_v30  ;;  %v3229_v51 = vunpack.c.l.bf16 %v6868_v61 }
 0x6a8   : > { %v6905_v29 = vpop.eup %5067  ;;  %v3287_v1 = vadd.f32 %v3286_v18, %v3227_v28  ;;  %v3120_v40 = vpack.c.bf16 %v6784_v12, %v6784_v12  ;;  %v3201_v7 = vmul.bf16 1069105081, %v6796_v8  ;;  %5083 = vpow.bf16 %v3186_v10 }
 0x6a9   : > { %v3331_v49 = vadd.f32 %v3330_v31, %v3242_v20  ;;  %v5070_v37 = vpop.eup %5069  ;;  %v3231_v52 = vunpack.c.h.bf16 %v6868_v61  ;;  %5085 = vpow.bf16 %v3195_v22  ;;  %v3192_v24 = vmul.bf16 1069105081, %v3115_v2 }
 0x6aa   : > { %3370 = vmatpush1.bf16.msra.mxu0 %v6901_v9  ;;  %v6909_v17 = vpop.eup %5071  ;;  %v3250_v5 = vunpack.c.l.bf16 %v5070_v37  ;;  %v3288_v0 = vadd.f32 %v3287_v1, %v3229_v51  ;;  %v3252_v46 = vunpack.c.h.bf16 %v5070_v37  ;;  %v3233_v57 = vunpack.c.l.bf16 %v6881_v42 }
 0x6ab   : > { %v3332_v15 = vadd.f32 %v3331_v49, %v3244_v60  ;;  %3371 = vmatprep.subr.bf16.mxu0 %v5064_v13  ;;  %v3119_v32 = vpack.c.bf16 %v6776_v53, %v6776_v53  ;;  %v3198_v61 = vmul.bf16 1069105081, %v6791_v25  ;;  %5087 = vpow.bf16 %v3201_v7 }
 0x6ac   : > { %v5074_v3 = vpop.eup %5073  ;;  %v3289_v4 = vadd.f32 %v3288_v0, %v3231_v52  ;;  %v3235_v55 = vunpack.c.h.bf16 %v6881_v42  ;;  %v3207_v21 = vmul.bf16 1069105081, %v3120_v40  ;;  %5089 = vpow.bf16 %v3192_v24 }
 0x6ad   : > { %v3333_v23 = vadd.f32 %v3332_v15, %v3246_v41  ;;  %v3254_v8 = vunpack.c.l.bf16 %v5074_v3  ;;  %v3256_v43 = vunpack.c.h.bf16 %v5074_v3  ;;  %v3237_v26 = vunpack.c.l.bf16 %v6886_v19 }
 0x6ae   : > { %3372 = vmatpush1.bf16.msra.mxu0 %v6905_v29  ;;  %v3290_v44 = vadd.f32 %v3289_v4, %v3233_v57  ;;  %5091 = vpow.bf16 %v3198_v61  ;;  %v3239_v25 = vunpack.c.h.bf16 %v6886_v19  ;;  %v3204_v36 = vmul.bf16 1069105081, %v3119_v32 }
 0x6af   : > { %3373 = vmatprep.subr.bf16.mxu0 %v5070_v37  ;;  %v3334_v27 = vadd.f32 %v3333_v23, %v3248_v54  ;;  %v6918_v12 = vpop.eup %5075  ;;  %5093 = vpow.bf16 %v3207_v21  ;;  %v3241_v45 = vunpack.c.l.bf16 %v6901_v9  ;;  %v3243_v31 = vunpack.c.h.bf16 %v6901_v9  ;;  %v7671_v21 = vld [vmem:[#allocation32_spill] sm:$0xff] }
 0x6b0   : > { %v5078_v14 = vpop.eup %5077  ;;  %v3291_v56 = vadd.f32 %v3290_v44, %v3235_v55  ;;  %5095 = vpow.bf16 %v3204_v36  ;;  %v3245_v34 = vunpack.c.l.bf16 %v6905_v29  ;;  %v3247_v15 = vunpack.c.h.bf16 %v6905_v29 }
 0x6b1   : > { %v3335_v11 = vadd.f32 %v3334_v27, %v3250_v5  ;;  %v6926_v53 = vpop.eup %5079  ;;  %v3258_v6 = vunpack.c.l.bf16 %v5078_v14  ;;  %v3260_v35 = vunpack.c.h.bf16 %v5078_v14  ;;  %v3249_v37 = vunpack.c.l.bf16 %v6909_v17 }
 0x6b2   : > { %3374 = vmatpush1.bf16.msra.mxu0 %v6909_v17  ;;  %v5082_v39 = vpop.eup %5081  ;;  %v3292_v42 = vadd.f32 %v3291_v56, %v3237_v26  ;;  %v3251_v51 = vunpack.c.h.bf16 %v6909_v17  ;;  %v3253_v29 = vunpack.c.l.bf16 %v6918_v12  ;;  %v3255_v0 = vunpack.c.h.bf16 %v6918_v12 }
 0x6b3   : > { %3375 = vmatprep.subr.bf16.mxu0 %v5074_v3  ;;  %v3336_v16 = vadd.f32 %v3335_v11, %v3252_v46  ;;  %v6931_v13 = vpop.eup %5083  ;;  %v3262_v47 = vunpack.c.l.bf16 %v5082_v39  ;;  %v3264_v19 = vunpack.c.h.bf16 %v5082_v39  ;;  %v3257_v17 = vunpack.c.l.bf16 %v6926_v53 }
 0x6b4   : > { %v3293_v38 = vadd.f32 %v3292_v42, %v3239_v25  ;;  %v5086_v30 = vpop.eup %5085  ;;  %v3259_v32 = vunpack.c.h.bf16 %v6926_v53 }
 0x6b5   : > { %v3337_v59 = vadd.f32 %v3336_v16, %v3254_v8  ;;  %v3266_v63 = vunpack.c.l.bf16 %v5086_v30  ;;  %v3268_v28 = vunpack.c.h.bf16 %v5086_v30 }
 0x6b6   : > { %3376 = vmatpush1.bf16.msra.mxu0 %v6918_v12  ;;  %v3294_v20 = vadd.f32 %v3293_v38, %v3241_v45  ;;  %v5088_v49 = vpop.eup %5087  ;;  %v7670_v12 = vld [vmem:[#allocation33_spill] sm:$0xff] }
 0x6b7   : > { %3377 = vmatprep.subr.bf16.mxu0 %v5078_v14  ;;  %v3338_v58 = vadd.f32 %v3337_v59, %v3256_v43  ;;  %v5090_v33 = vpop.eup %5089  ;;  %v3270_v18 = vunpack.c.l.bf16 %v5088_v49  ;;  %v3272_v40 = vunpack.c.h.bf16 %v5088_v49  ;;  %v3261_v14 = vunpack.c.l.bf16 %v6931_v13 }
 0x6b8   : > { %v3295_v60 = vadd.f32 %v3294_v20, %v3243_v31  ;;  %v3445_v44 = vrot.slane %v7670_v12, 4  ;;  %v3444_v43 = vrot.slane %v7671_v21, 4  ;;  %v3263_v59 = vunpack.c.h.bf16 %v6931_v13 }
 0x6b9   : > { %v3339_v50 = vadd.f32 %v3338_v58, %v3258_v6  ;;  %v5092_v10 = vpop.eup %5091  ;;  %v3267_v42 = vunpack.c.h.bf16 %v5090_v33 }
 0x6ba   : > { %3378 = vmatpush1.bf16.msra.mxu0 %v6926_v53  ;;  %v3296_v41 = vadd.f32 %v3295_v60, %v3245_v34  ;;  %v5094_v22 = vpop.eup %5093  ;;  %v3265_v53 = vunpack.c.l.bf16 %v5090_v33  ;;  %v3495_v25 = vsel %vm1027_vm1, %v3444_v43, 0  ;;  %v3271_v38 = vunpack.c.h.bf16 %v5092_v10 }
 0x6bb   : > { %3379 = vmatprep.subr.bf16.mxu0 %v5082_v39  ;;  %v3340_v62 = vadd.f32 %v3339_v50, %v3260_v35  ;;  %v3274_v3 = vunpack.c.l.bf16 %v5094_v22  ;;  %v5096_v52 = vpop.eup %5095  ;;  %v3276_v46 = vunpack.c.h.bf16 %v5094_v22  ;;  %v7672_v39 = vld [vmem:[#allocation57_spill] sm:$0xff]  ;;  %v7673_v35 = vmov 0  }
 0x6bc   : > { %v3297_v23 = vadd.f32 %v3296_v41, %v3247_v15  ;;  %v3269_v50 = vunpack.c.l.bf16 %v5092_v10  ;;  %v3275_v31 = vunpack.c.h.bf16 %v5096_v52 }
 0x6bd   : > { %v3341_v2 = vadd.f32 %v3340_v62, %v3262_v47  ;;  %v3418_v47 = vpop.trf.xlu0  ;;  %v3273_v62 = vunpack.c.l.bf16 %v5096_v52 }
 0x6be   : > { %3380 = vmatpush1.bf16.msra.mxu0 %v6931_v13  ;;  %v3298_v1 = vadd.f32 %v3297_v23, %v3249_v37  ;;  %v3434_v37 = vpop.trf.xlu1 }
 0x6bf   : > { %3381 = vmatprep.subr.bf16.mxu0 %v5086_v30  ;;  %v3342_v48 = vadd.f32 %v3341_v2, %v3264_v19 }
 0x6c0   : > { %v3299_v27 = vadd.f32 %v3298_v1, %v3251_v51 }
 0x6c1   : > { %v3343_v9 = vadd.f32 %v3342_v48, %v3266_v63  ;;  %v3419_v34 = vpop.trf.xlu0 }
 0x6c2   : > { %3382 = vmatpush1.bf16.msra.mxu0 %v5090_v33  ;;  %v3300_v24 = vadd.f32 %v3299_v27, %v3253_v29  ;;  %v3435_v23 = vpop.trf.xlu1 }
 0x6c3   : > { %3383 = vmatprep.subr.bf16.mxu0 %v5088_v49  ;;  %v3344_v54 = vadd.f32 %v3343_v9, %v3268_v28 }
 0x6c4   : > { %v3301_v57 = vadd.f32 %v3300_v24, %v3255_v0 }
 0x6c5   : > { %v3345_v5 = vadd.f32 %v3344_v54, %v3270_v18  ;;  %v3420_v48 = vpop.trf.xlu0 }
 0x6c6   : > { %3384 = vmatpush1.bf16.msra.mxu0 %v5092_v10  ;;  %v3302_v8 = vadd.f32 %v3301_v57, %v3257_v17  ;;  %v3436_v10 = vpop.trf.xlu1 }
 0x6c7   : > { %3385 = vmatprep.subr.bf16.mxu0 %v5094_v22  ;;  %v3346_v7 = vadd.f32 %v3345_v5, %v3272_v40 }
 0x6c8   : > { %v3303_v61 = vadd.f32 %v3302_v8, %v3259_v32 }
 0x6c9   : > { %v3347_v11 = vadd.f32 %v3346_v7, %v3274_v3  ;;  %v3421_v33 = vpop.trf.xlu0 }
 0x6ca   : > { %3386 = vmatpush1.bf16.msra.mxu0 %v5096_v52  ;;  %v3304_v26 = vadd.f32 %v3303_v61, %v3261_v14  ;;  %v3437_v18 = vpop.trf.xlu1 }
 0x6cb   : > { %3387 = vmatprep.subr.bf16.mxu0 %v5094_v22  ;;  %v3348_v4 = vadd.f32 %v3347_v11, %v3276_v46 }
 0x6cc   : > { %v3305_v6 = vadd.f32 %v3304_v26, %v3263_v59 }
 0x6cd   : > { %v3349_v16 = vadd.f32 %v3348_v4, %v3274_v3  ;;  %v3422_v15 = vpop.trf.xlu0 }
 0x6ce   : > { %3388 = vmatpush1.bf16.msra.mxu0 %v5096_v52  ;;  %v3306_v36 = vadd.f32 %v3305_v6, %v3265_v53  ;;  %v3438_v54 = vpop.trf.xlu1 }
 0x6cf   : > { %3389 = vmatprep.subr.bf16.mxu0 %v5094_v22  ;;  %v3350_v55 = vadd.f32 %v3349_v16, %v3276_v46 }
 0x6d0   : > { %v3307_v45 = vadd.f32 %v3306_v36, %v3267_v42 }
 0x6d1   : > { %v3351_v56 = vadd.f32 %v3350_v55, %v3274_v3  ;;  %v3423_v41 = vpop.trf.xlu0 }
 0x6d2   : > { %3390 = vmatpush1.bf16.msra.mxu0 %v5096_v52  ;;  %v3308_v13 = vadd.f32 %v3307_v45, %v3269_v50 }
 0x6d3   : > { %4731 = vmatprep.subr.msk.bf16.mxu0 %vm1027_vm1, %v3445_v44  ;;  %v3352_v58 = vadd.f32 %v3351_v56, %v3276_v46 }
 0x6d4   : > { %v3309_v30 = vadd.f32 %v3308_v13, %v3271_v38 }
 0x6d5   : > { %3392 = vmatmul.mubr.bf16.vlgmr.msra.gmra.mrb[84].mxu0 %v7672_v39  ;;  %v3424_v28 = vpop.trf.xlu0  ;;  %v3353_v51 = vrot.slane %v3352_v58, 4 }
 0x6d6   : > { %3501 = vmatpush1.bf16.msra.mxu0 %v3495_v25  ;;  %3532 = vmatprep.mubr.bf16.mxu0 %v7673_v35  ;;  %v3310_v20 = vadd.f32 %v3309_v30, %v3273_v62 }
 0x6d7   : > { %v3354_v40 = vadd.f32 %v3353_v51, %v3352_v58 }
 0x6d8   : > { %v3311_v19 = vadd.f32 %v3310_v20, %v3275_v31 }
 0x6d9   : > { %v3425_v9 = vpop.trf.xlu0  ;;  %v3355_v29 = vrot.slane %v3354_v40, 2 }
 0x6da   : > { %v3312_v2 = vadd.f32 %v3311_v19, %v3273_v62 }
 0x6db   : > { %v3356_v3 = vadd.f32 %v3355_v29, %v3354_v40 }
 0x6dc   : > { %v3313_v60 = vadd.f32 %v3312_v2, %v3275_v31 }
 0x6dd   : > { %4732 = vmatmul.mubr.msk.bf16.vlgmr.msra.gmra.mrb[88].mxu0 %vm978_vm2, %v3418_v47  ;;  %v3357_v52 = vrot.slane %v3356_v3, 1 }
 0x6de   : > { %3542 = vmatprep.mubr.bf16.mxu0 %v7673_v35  ;;  %v3314_v49 = vadd.f32 %v3313_v60, %v3273_v62 }
 0x6df   : > { %v3358_v24 = vadd.f32 %v3357_v52, %v3356_v3 }
 0x6e0   : > { %v3315_v63 = vadd.f32 %v3314_v49, %v3275_v31 }
 0x6e2   : > { %v3316_v22 = vrot.slane %v3315_v63, 4 }
 0x6e4   : > { %v3317_v1 = vadd.f32 %v3316_v22, %v3315_v63 }
 0x6e5   : > { %4733 = vmatmul.mubr.msk.bf16.gmra.mrb[92].mxu0 %vm978_vm2, %v3419_v34 }
 0x6e6   : > { %3552 = vmatprep.mubr.bf16.mxu0 %v7673_v35  ;;  %v3318_v5 = vrot.slane %v3317_v1, 2 }
 0x6e8   : > { %v3319_v27 = vadd.f32 %v3318_v5, %v3317_v1 }
 0x6ea   : > { %v3320_v7 = vrot.slane %v3319_v27, 1 }
 0x6ec   : > { %v3321_v0 = vadd.f32 %v3320_v7, %v3319_v27 }
 0x6ed   : > { %4734 = vmatmul.mubr.msk.bf16.gmra.mrb[96].mxu0 %vm978_vm2, %v3420_v48 }
 0x6ee   : > { %3562 = vmatprep.mubr.bf16.mxu0 %v7673_v35  ;;  %5097 = vrcp.f32 %v3321_v0 }
 0x6ef   : > { %5099 = vrcp.f32 %v3358_v24 }
 0x6f5   : > { %4735 = vmatmul.mubr.msk.bf16.gmra.mrb[100].mxu0 %vm978_vm2, %v3421_v33 }
 0x6f6   : > { %3572 = vmatprep.mubr.bf16.mxu0 %v7673_v35 }
 0x6f8   : > { %v5098_v46 = vpop.eup %5097 }
 0x6f9   : > { %v5100_v17 = vpop.eup %5099 }
 0x6fd   : > { %4736 = vmatmul.mubr.msk.bf16.gmra.mrb[104].mxu0 %vm978_vm2, %v3422_v15 }
 0x6fe   : > { %3582 = vmatprep.mubr.bf16.mxu0 %v7673_v35 }
 0x705   : > { %4737 = vmatmul.mubr.msk.bf16.gmra.mrb[108].mxu0 %vm978_vm2, %v3423_v41 }
 0x706   : > { %3592 = vmatprep.mubr.bf16.mxu0 %v7673_v35 }
 0x70d   : > { %4738 = vmatmul.mubr.msk.bf16.gmra.mrb[112].mxu0 %vm978_vm2, %v3424_v28 }
 0x70e   : > { %3602 = vmatprep.mubr.bf16.mxu0 %v7673_v35 }
 0x715   : > { %4739 = vmatmul.mubr.msk.bf16.gmra.mrb[116].mxu0 %vm978_vm2, %v3425_v9 }
 0x716   : > { %3612 = vmatprep.mubr.bf16.mxu0 %v7673_v35 }
 0x71d   : > { %4740 = vmatmul.mubr.msk.bf16.gmra.mrb[120].mxu0 %vm978_vm2, %v3434_v37 }
 0x71e   : > { %3622 = vmatprep.mubr.bf16.mxu0 %v7673_v35 }
 0x725   : > { %4741 = vmatmul.mubr.msk.bf16.gmra.mrb[124].mxu0 %vm978_vm2, %v3435_v23 }
 0x726   : > { %3632 = vmatprep.mubr.bf16.mxu0 %v7673_v35 }
 0x72d   : > { %4742 = vmatmul.mubr.msk.bf16.gmra.mrb[128].mxu0 %vm978_vm2, %v3436_v10 }
 0x72e   : > { %3642 = vmatprep.mubr.bf16.mxu0 %v7673_v35 }
 0x735   : > { %4743 = vmatmul.mubr.msk.bf16.gmra.mrb[132].mxu0 %vm978_vm2, %v3437_v18 }
 0x736   : > { %3652 = vmatprep.mubr.bf16.mxu0 %v7673_v35 }
 0x73d   : > { %4744 = vmatmul.mubr.msk.bf16.gmra.mrb[136].mxu0 %vm978_vm2, %v3438_v54 }
 0x73e   : > { %3662 = vmatprep.mubr.bf16.mxu0 %v7673_v35 }
 0x7a8   : > { %v3393_v11 = vpop.f32.mrb[84].mxu0 }
 0x7a9   : > { %v6977_v57 = vmul.f32 %v5098_v46, %v3393_v11  ;;  %v3395_v4 = vpop.f32.mrb[85].mxu0 }
 0x7aa   : > { %v6979_v32 = vmul.f32 %v5100_v17, %v3395_v4  ;;  %v3397_v8 = vpop.f32.mrb[86].mxu0 }
 0x7ab   : > { %7674 = vst [vmem:[#allocation20_spill] sm:$0xff] %v6977_v57  ;;  %v3398_v16 = vpop.f32.mrb[87].mxu0 }
 0x7ac   : > { %7675 = vst [vmem:[#allocation22_spill] sm:$0xff] %v6979_v32 }
 0x7b0   : > { %v6981_v14 = vpop.f32.mrb[88].mxu0 }
 0x7b1   : > { %v6983_v61 = vpop.f32.mrb[89].mxu0 }
 0x7b2   : > { %v6985_v55 = vpop.f32.mrb[90].mxu0 }
 0x7b3   : > { %v6987_v12 = vpop.f32.mrb[91].mxu0 }
 0x7b8   : > { %v6989_v44 = vpop.f32.mrb[92].mxu0 }
 0x7b9   : > { %v3757_v21 = vmax.f32 %v6981_v14, %v6989_v44  ;;  %v6993_v43 = vpop.f32.mrb[93].mxu0 }
 0x7ba   : > { %v3794_v59 = vmax.f32 %v6983_v61, %v6993_v43  ;;  %v6997_v26 = vpop.f32.mrb[94].mxu0 }
 0x7bb   : > { %v3758_v56 = vmax.f32 %v6985_v55, %v6997_v26  ;;  %v7001_v53 = vpop.f32.mrb[95].mxu0 }
 0x7bc   : > { %v3795_v6 = vmax.f32 %v6987_v12, %v7001_v53 }
 0x7c0   : > { %v7005_v58 = vpop.f32.mrb[96].mxu0 }
 0x7c1   : > { %v3759_v25 = vmax.f32 %v3757_v21, %v7005_v58  ;;  %v7008_v42 = vpop.f32.mrb[97].mxu0 }
 0x7c2   : > { %v3796_v36 = vmax.f32 %v3794_v59, %v7008_v42  ;;  %v7011_v50 = vpop.f32.mrb[98].mxu0 }
 0x7c3   : > { %v3760_v45 = vmax.f32 %v3758_v56, %v7011_v50  ;;  %v7014_v38 = vpop.f32.mrb[99].mxu0 }
 0x7c4   : > { %v3797_v13 = vmax.f32 %v3795_v6, %v7014_v38 }
 0x7c8   : > { %v7017_v47 = vpop.f32.mrb[100].mxu0 }
 0x7c9   : > { %v3761_v62 = vmax.f32 %v3759_v25, %v7017_v47  ;;  %v7020_v30 = vpop.f32.mrb[101].mxu0 }
 0x7ca   : > { %v3798_v31 = vmax.f32 %v3796_v36, %v7020_v30  ;;  %v7023_v20 = vpop.f32.mrb[102].mxu0 }
 0x7cb   : > { %v3762_v19 = vmax.f32 %v3760_v45, %v7023_v20  ;;  %v7026_v2 = vpop.f32.mrb[103].mxu0 }
 0x7cc   : > { %v3799_v34 = vmax.f32 %v3797_v13, %v7026_v2 }
 0x7d0   : > { %v7029_v60 = vpop.f32.mrb[104].mxu0 }
 0x7d1   : > { %v3763_v49 = vmax.f32 %v3761_v62, %v7029_v60  ;;  %v7032_v63 = vpop.f32.mrb[105].mxu0 }
 0x7d2   : > { %v3800_v48 = vmax.f32 %v3798_v31, %v7032_v63  ;;  %v7035_v33 = vpop.f32.mrb[106].mxu0 }
 0x7d3   : > { %v3764_v15 = vmax.f32 %v3762_v19, %v7035_v33  ;;  %v7038_v41 = vpop.f32.mrb[107].mxu0 }
 0x7d4   : > { %v3801_v28 = vmax.f32 %v3799_v34, %v7038_v41 }
 0x7d8   : > { %v7041_v9 = vpop.f32.mrb[108].mxu0 }
 0x7d9   : > { %v3765_v37 = vmax.f32 %v3763_v49, %v7041_v9  ;;  %v7044_v23 = vpop.f32.mrb[109].mxu0 }
 0x7da   : > { %v3802_v10 = vmax.f32 %v3800_v48, %v7044_v23  ;;  %v7047_v18 = vpop.f32.mrb[110].mxu0 }
 0x7db   : > { %v3766_v54 = vmax.f32 %v3764_v15, %v7047_v18  ;;  %v7050_v22 = vpop.f32.mrb[111].mxu0 }
 0x7dc   : > { %v3803_v51 = vmax.f32 %v3801_v28, %v7050_v22 }
 0x7e0   : > { %v7053_v1 = vpop.f32.mrb[112].mxu0 }
 0x7e1   : > { %v3767_v40 = vmax.f32 %v3765_v37, %v7053_v1  ;;  %v7056_v5 = vpop.f32.mrb[113].mxu0 }
 0x7e2   : > { %v3804_v29 = vmax.f32 %v3802_v10, %v7056_v5  ;;  %v7059_v27 = vpop.f32.mrb[114].mxu0 }
 0x7e3   : > { %v3768_v3 = vmax.f32 %v3766_v54, %v7059_v27  ;;  %v7062_v7 = vpop.f32.mrb[115].mxu0 }
 0x7e4   : > { %v3805_v52 = vmax.f32 %v3803_v51, %v7062_v7 }
 0x7e8   : > { %v7065_v0 = vpop.f32.mrb[116].mxu0 }
 0x7e9   : > { %v3769_v24 = vmax.f32 %v3767_v40, %v7065_v0  ;;  %v7068_v46 = vpop.f32.mrb[117].mxu0 }
 0x7ea   : > { %v3806_v11 = vmax.f32 %v3804_v29, %v7068_v46  ;;  %v7071_v17 = vpop.f32.mrb[118].mxu0 }
 0x7eb   : > { %v3770_v4 = vmax.f32 %v3768_v3, %v7071_v17  ;;  %v7074_v8 = vpop.f32.mrb[119].mxu0 }
 0x7ec   : > { %v3807_v16 = vmax.f32 %v3805_v52, %v7074_v8 }
 0x7f0   : > { %v7077_v21 = vpop.f32.mrb[120].mxu0 }
 0x7f1   : > { %v3771_v59 = vmax.f32 %v3769_v24, %v7077_v21  ;;  %v7080_v56 = vpop.f32.mrb[121].mxu0 }
 0x7f2   : > { %v3808_v6 = vmax.f32 %v3806_v11, %v7080_v56  ;;  %v7083_v25 = vpop.f32.mrb[122].mxu0 }
 0x7f3   : > { %v3772_v36 = vmax.f32 %v3770_v4, %v7083_v25  ;;  %v7086_v45 = vpop.f32.mrb[123].mxu0 }
 0x7f4   : > { %v3809_v13 = vmax.f32 %v3807_v16, %v7086_v45 }
 0x7f8   : > { %v7089_v62 = vpop.f32.mrb[124].mxu0 }
 0x7f9   : > { %7676 = vst [vmem:[#allocation24_spill] sm:$0xff] %v7089_v62  ;;  %v3773_v31 = vmax.f32 %v3771_v59, %v7089_v62  ;;  %v7092_v19 = vpop.f32.mrb[125].mxu0 }
 0x7fa   : > { %v3810_v34 = vmax.f32 %v3808_v6, %v7092_v19  ;;  %v7095_v49 = vpop.f32.mrb[126].mxu0 }
 0x7fb   : > { %7677 = vst [vmem:[#allocation26_spill] sm:$0xff] %v7095_v49  ;;  %v3774_v48 = vmax.f32 %v3772_v36, %v7095_v49  ;;  %v7098_v15 = vpop.f32.mrb[127].mxu0 }
 0x7fc   : > { %v3811_v28 = vmax.f32 %v3809_v13, %v7098_v15 }
 0x800   : > { %v7101_v37 = vpop.f32.mrb[128].mxu0 }
 0x801   : > { %7678 = vst [vmem:[#allocation28_spill] sm:$0xff] %v7101_v37  ;;  %v3775_v10 = vmax.f32 %v3773_v31, %v7101_v37  ;;  %v7104_v54 = vpop.f32.mrb[129].mxu0 }
 0x802   : > { %7679 = vst [vmem:[#allocation30_spill] sm:$0xff] %v7104_v54  ;;  %v3812_v51 = vmax.f32 %v3810_v34, %v7104_v54  ;;  %v7107_v40 = vpop.f32.mrb[130].mxu0 }
 0x803   : > { %7680 = vst [vmem:[#allocation53_spill] sm:$0xff] %v7107_v40  ;;  %v3776_v29 = vmax.f32 %v3774_v48, %v7107_v40  ;;  %v7110_v3 = vpop.f32.mrb[131].mxu0 }
 0x804   : > { %7681 = vst [vmem:[#allocation55_spill] sm:$0xff] %v7110_v3  ;;  %v3813_v52 = vmax.f32 %v3811_v28, %v7110_v3 }
 0x808   : > { %v7113_v24 = vpop.f32.mrb[132].mxu0 }
 0x809   : > { %7682 = vst [vmem:[#allocation54_spill] sm:$0xff] %v7113_v24  ;;  %v3777_v11 = vmax.f32 %v3775_v10, %v7113_v24  ;;  %v7116_v4 = vpop.f32.mrb[133].mxu0 }
 0x80a   : > { %7683 = vst [vmem:[#allocation62_spill] sm:$0xff] %v7116_v4  ;;  %v3814_v16 = vmax.f32 %v3812_v51, %v7116_v4  ;;  %v7119_v59 = vpop.f32.mrb[134].mxu0 }
 0x80b   : > { %7684 = vst [vmem:[#allocation51_spill] sm:$0xff] %v7119_v59  ;;  %v3778_v6 = vmax.f32 %v3776_v29, %v7119_v59  ;;  %v7122_v36 = vpop.f32.mrb[135].mxu0 }
 0x80c   : > { %7685 = vst [vmem:[#allocation59_spill] sm:$0xff] %v7122_v36  ;;  %v3815_v13 = vmax.f32 %v3813_v52, %v7122_v36 }
 0x80d   : > { %v3780_v31 = vmax.f32 %v3778_v6, -1e+30 }
 0x80e   : > { %v3817_v34 = vmax.f32 %v3815_v13, -1e+30 }
 0x80f   : > { %v3782_v48 = vmax.f32 %v3780_v31, -1e+30 }
 0x810   : > { %v3654_v28 = vpop.f32.mrb[136].mxu0  ;;  %v3819_v32 = vmax.f32 %v3817_v34, -1e+30 }
 0x811   : > { %v3741_v10 = vsel %vm938_vm3, %v3654_v28, -1e+30  ;;  %v3656_v35 = vpop.f32.mrb[137].mxu0  ;;  %v3784_v59 = vmax.f32 %v3782_v48, -1e+30 }
 0x812   : > { %v3779_v39 = vmax.f32 %v3777_v11, %v3741_v10  ;;  %v3742_v51 = vsel %vm938_vm3, %v3656_v35, -1e+30  ;;  %v3658_v24 = vpop.f32.mrb[138].mxu0  ;;  %v3821_v37 = vmax.f32 %v3819_v32, -1e+30 }
 0x813   : > { %v3816_v4 = vmax.f32 %v3814_v16, %v3742_v51  ;;  %v3660_v29 = vpop.f32.mrb[139].mxu0  ;;  %v3786_v31 = vmax.f32 %v3784_v59, -1e+30 }
 0x814   : > { %v3781_v40 = vmax.f32 %v3779_v39, -1e+30  ;;  %v3823_v34 = vmax.f32 %v3821_v37, -1e+30 }
 0x815   : > { %v3818_v52 = vmax.f32 %v3816_v4, -1e+30 }
 0x816   : > { %v3783_v6 = vmax.f32 %v3781_v40, -1e+30 }
 0x817   : > { %v3820_v13 = vmax.f32 %v3818_v52, -1e+30 }
 0x818   : > { %v3785_v36 = vmax.f32 %v3783_v6, -1e+30 }
 0x819   : > { %v3822_v3 = vmax.f32 %v3820_v13, -1e+30 }
 0x81a   : > { %v3787_v54 = vmax.f32 %v3785_v36, %v3786_v31 }
 0x81b   : > { %v3824_v28 = vmax.f32 %v3822_v3, %v3823_v34 }
 0x81c   : > { %v3788_v49 = vrot.slane %v3787_v54, 4 }
 0x81d   : > { %v3825_v11 = vrot.slane %v3824_v28, 4 }
 0x81e   : > { %v3789_v62 = vmax.f32 %v3787_v54, %v3788_v49 }
 0x81f   : > { %v3826_v57 = vmax.f32 %v3824_v28, %v3825_v11 }
 0x820   : > { %v3790_v35 = vrot.slane %v3789_v62, 2 }
 0x821   : > { %v3827_v24 = vrot.slane %v3826_v57, 2 }
 0x822   : > { %v3791_v16 = vmax.f32 %v3789_v62, %v3790_v35 }
 0x823   : > { %v3828_v29 = vmax.f32 %v3826_v57, %v3827_v24 }
 0x824   : > { %v3792_v48 = vrot.slane %v3791_v16, 1 }
 0x825   : > { %v3829_v39 = vrot.slane %v3828_v29, 1 }
 0x826   : > { %v7129_v32 = vmax.f32 %v3791_v16, %v3792_v48 }
 0x827   : > { %v7131_v40 = vmax.f32 %v3828_v29, %v3829_v39 }
 0x828   : > { %v3879_v4 = vsub.f32 %v3741_v10, %v7129_v32  ;;  %v7135_v37 = vsub.f32 -1e+30, %v7129_v32  ;;  %v3831_v3 = vsub.f32 %v6981_v14, %v7129_v32  ;;  %v3833_v49 = vsub.f32 %v6985_v55, %v7129_v32 }
 0x829   : > { %v3880_v62 = vsub.f32 %v3742_v51, %v7131_v40  ;;  %v7143_v54 = vsub.f32 -1e+30, %v7131_v40  ;;  %v3832_v59 = vsub.f32 %v6983_v61, %v7131_v40  ;;  %v3834_v36 = vsub.f32 %v6987_v12, %v7131_v40 }
 0x82a   : > { %v7150_v10 = vpack.c.bf16 %v7135_v37, %v3879_v4  ;;  %v3895_v52 = vpack.c.bf16 %v3833_v49, %v3831_v3  ;;  %v3836_v14 = vsub.f32 %v6993_v43, %v7131_v40  ;;  %v3838_v6 = vsub.f32 %v7001_v53, %v7131_v40 }
 0x82b   : > { %v7155_v55 = vpack.c.bf16 %v7143_v54, %v3880_v62  ;;  %v3896_v51 = vpack.c.bf16 %v3834_v36, %v3832_v59  ;;  %v3835_v61 = vsub.f32 %v6989_v44, %v7129_v32  ;;  %v3837_v12 = vsub.f32 %v6997_v26, %v7129_v32 }
 0x82c   : > { %v3898_v13 = vpack.c.bf16 %v3838_v6, %v3836_v14  ;;  %v3840_v34 = vsub.f32 %v7008_v42, %v7131_v40  ;;  %v3842_v43 = vsub.f32 %v7014_v38, %v7131_v40  ;;  %v3928_v28 = vmul.bf16 1069105081, %v3895_v52 }
 0x82d   : > { %v3931_v31 = vmul.bf16 1069105081, %v3896_v51  ;;  %v3839_v11 = vsub.f32 %v7005_v58, %v7129_v32  ;;  %v3841_v53 = vsub.f32 %v7011_v50, %v7129_v32  ;;  %v3897_v44 = vpack.c.bf16 %v3837_v12, %v3835_v61 }
 0x82e   : > { %v3937_v57 = vmul.bf16 1069105081, %v3898_v13  ;;  %v3900_v35 = vpack.c.bf16 %v3842_v43, %v3840_v34  ;;  %v3844_v24 = vsub.f32 %v7020_v30, %v7131_v40  ;;  %v3846_v42 = vsub.f32 %v7026_v2, %v7131_v40 }
 0x82f   : > { %v3899_v26 = vpack.c.bf16 %v3841_v53, %v3839_v11  ;;  %v3843_v38 = vsub.f32 %v7017_v47, %v7129_v32  ;;  %5101 = vpow.bf16 %v3931_v31  ;;  %v3845_v58 = vsub.f32 %v7023_v20, %v7129_v32 }
 0x830   : > { %v3943_v16 = vmul.bf16 1069105081, %v3900_v35  ;;  %5103 = vpow.bf16 %v3928_v28  ;;  %v3934_v50 = vmul.bf16 1069105081, %v3897_v44  ;;  %v3902_v29 = vpack.c.bf16 %v3846_v42, %v3844_v24 }
 0x831   : > { %v3848_v48 = vsub.f32 %v7032_v63, %v7131_v40  ;;  %5105 = vpow.bf16 %v3937_v57  ;;  %v3901_v30 = vpack.c.bf16 %v3845_v58, %v3843_v38  ;;  %v3850_v39 = vsub.f32 %v7038_v41, %v7131_v40 }
 0x832   : > { %v3847_v2 = vsub.f32 %v7029_v60, %v7129_v32  ;;  %v3940_v47 = vmul.bf16 1069105081, %v3899_v26  ;;  %v3849_v4 = vsub.f32 %v7035_v33, %v7129_v32  ;;  %v3852_v20 = vsub.f32 %v7044_v23, %v7131_v40 }
 0x833   : > { %5107 = vpow.bf16 %v3943_v16  ;;  %v3949_v3 = vmul.bf16 1069105081, %v3902_v29  ;;  %v3904_v49 = vpack.c.bf16 %v3850_v39, %v3848_v48  ;;  %v3854_v63 = vsub.f32 %v7050_v22, %v7131_v40 }
 0x834   : > { %5109 = vpow.bf16 %v3934_v50  ;;  %v3903_v62 = vpack.c.bf16 %v3849_v4, %v3847_v2  ;;  %v3851_v41 = vsub.f32 %v7041_v9, %v7129_v32  ;;  %v3853_v60 = vsub.f32 %v7047_v18, %v7129_v32  ;;  %v7687_v4 = vld [vmem:[#allocation24_spill] sm:$0xff] }
 0x835   : > { %v3906_v59 = vpack.c.bf16 %v3854_v63, %v3852_v20  ;;  %v3856_v33 = vsub.f32 %v7056_v5, %v7131_v40  ;;  %v3955_v36 = vmul.bf16 1069105081, %v3904_v49  ;;  %v3858_v52 = vsub.f32 %v7062_v7, %v7131_v40 }
 0x836   : > { %v3905_v23 = vpack.c.bf16 %v3853_v60, %v3851_v41  ;;  %5111 = vpow.bf16 %v3949_v3  ;;  %v3946_v22 = vmul.bf16 1069105081, %v3901_v30  ;;  %v3855_v51 = vsub.f32 %v7053_v1, %v7129_v32 }
 0x837   : > { %5113 = vpow.bf16 %v3940_v47  ;;  %v3908_v14 = vpack.c.bf16 %v3858_v52, %v3856_v33  ;;  %v3952_v9 = vmul.bf16 1069105081, %v3903_v62  ;;  %v3857_v18 = vsub.f32 %v7059_v27, %v7129_v32 }
 0x838   : > { %5115 = vpow.bf16 %v3955_v36  ;;  %v3961_v61 = vmul.bf16 1069105081, %v3906_v59  ;;  %v3860_v5 = vsub.f32 %v7068_v46, %v7131_v40  ;;  %v3862_v7 = vsub.f32 %v7074_v8, %v7131_v40  ;;  %v7689_v59 = vld [vmem:[#allocation30_spill] sm:$0xff] }
 0x839   : > { %v3907_v34 = vpack.c.bf16 %v3857_v18, %v3855_v51  ;;  %v3859_v1 = vsub.f32 %v7065_v0, %v7129_v32  ;;  %5117 = vpow.bf16 %v3946_v22  ;;  %v3967_v46 = vmul.bf16 1069105081, %v3908_v14  ;;  %v7690_v22 = vld [vmem:[#allocation55_spill] sm:$0xff] }
 0x83a   : > { %v5102_v6 = vpop.eup %5101  ;;  %v3910_v27 = vpack.c.bf16 %v3862_v7, %v3860_v5  ;;  %5119 = vpow.bf16 %v3952_v9  ;;  %v3958_v35 = vmul.bf16 1069105081, %v3905_v23  ;;  %v3861_v0 = vsub.f32 %v7071_v17, %v7129_v32 }
 0x83b   : > { %v7207_v13 = vpop.eup %5103  ;;  %v4024_v31 = vunpack.c.l.bf16 %v5102_v6  ;;  %v4026_v12 = vunpack.c.h.bf16 %v5102_v6  ;;  %4167 = vmatprep.subr.bf16.mxu1 %v5102_v6  ;;  %5121 = vpow.bf16 %v3961_v61  ;;  %v3864_v24 = vsub.f32 %v7080_v56, %v7131_v40 }
 0x83c   : > { %v5106_v43 = vpop.eup %5105  ;;  %4168 = vmatpush1.bf16.msra.mxu1 %v7207_v13  ;;  %v3866_v26 = vsub.f32 %v7086_v45, %v7131_v40  ;;  %5123 = vpow.bf16 %v3967_v46  ;;  %v3863_v16 = vsub.f32 %v7077_v21, %v7129_v32  ;;  %v3909_v50 = vpack.c.bf16 %v3861_v0, %v3859_v1 }
 0x83d   : > { %v4124_v28 = vadd.f32 %v4026_v12, %v4024_v31  ;;  %v4028_v11 = vunpack.c.l.bf16 %v5106_v43  ;;  %4169 = vmatprep.subr.bf16.mxu1 %v5106_v43  ;;  %v4030_v57 = vunpack.c.h.bf16 %v5106_v43  ;;  %v3865_v48 = vsub.f32 %v7083_v25, %v7129_v32  ;;  %v7693_v43 = vld [vmem:[#allocation62_spill] sm:$0xff] }
 0x83e   : > { %v5108_v53 = vpop.eup %5107  ;;  %v3912_v29 = vpack.c.bf16 %v3866_v26, %v3864_v24  ;;  %v3868_v17 = vsub.f32 %v7092_v19, %v7131_v40  ;;  %v3964_v39 = vmul.bf16 1069105081, %v3907_v34  ;;  %v3870_v2 = vsub.f32 %v7098_v15, %v7131_v40  ;;  %v7688_v15 = vld [vmem:[#allocation26_spill] sm:$0xff]  ;;  %v7692_v34 = vld [vmem:[#allocation53_spill] sm:$0xff] }
 0x83f   : > { %v7212_v8 = vpop.eup %5109  ;;  %v4125_v44 = vadd.f32 %v4124_v28, %v4028_v11  ;;  %v4032_v38 = vunpack.c.l.bf16 %v5108_v53  ;;  %v4034_v30 = vunpack.c.h.bf16 %v5108_v53  ;;  %5125 = vpow.bf16 %v3958_v35  ;;  %v7694_v28 = vld [vmem:[#allocation59_spill] sm:$0xff] }
 0x840   : > { %4170 = vmatpush1.bf16.msra.mxu1 %v7212_v8  ;;  %v3973_v21 = vmul.bf16 1069105081, %v3910_v27  ;;  %v3911_v47 = vpack.c.bf16 %v3865_v48, %v3863_v16  ;;  %v3867_v20 = vsub.f32 %v7687_v4, %v7129_v32  ;;  %v4023_v3 = vunpack.c.l.bf16 %v7207_v13  ;;  %v7696_v35 = vld [vmem:[#allocation51_spill] sm:$0xff] }
 0x841   : > { %v4126_v42 = vadd.f32 %v4125_v44, %v4030_v57  ;;  %4171 = vmatprep.subr.bf16.mxu1 %v5108_v53  ;;  %v5112_v58 = vpop.eup %5111  ;;  %v3914_v63 = vpack.c.bf16 %v3870_v2, %v3868_v17  ;;  %v4025_v62 = vunpack.c.h.bf16 %v7207_v13  ;;  %v3970_v41 = vmul.bf16 1069105081, %v3909_v50  ;;  %v7691_v13 = vld [vmem:[#allocation28_spill] sm:$0xff]  ;;  %v7695_v57 = vld [vmem:[#allocation54_spill] sm:$0xff] }
 0x842   : > { %v7227_v56 = vpop.eup %5113  ;;  %v4036_v49 = vunpack.c.l.bf16 %v5112_v58  ;;  %v3869_v60 = vsub.f32 %v7688_v15, %v7129_v32  ;;  %v3872_v33 = vsub.f32 %v7689_v59, %v7131_v40  ;;  %v4038_v23 = vunpack.c.h.bf16 %v5112_v58 }
 0x843   : > { %v4127_v45 = vadd.f32 %v4126_v42, %v4032_v38  ;;  %v5116_v25 = vpop.eup %5115  ;;  %5127 = vpow.bf16 %v3964_v39  ;;  %v3874_v14 = vsub.f32 %v7690_v22, %v7131_v40  ;;  %v3979_v9 = vmul.bf16 1069105081, %v3912_v29 }
 0x844   : > { %4172 = vmatpush1.bf16.msra.mxu1 %v7227_v56  ;;  %v7240_v36 = vpop.eup %5117  ;;  %v4040_v51 = vunpack.c.l.bf16 %v5116_v25  ;;  %5129 = vpow.bf16 %v3973_v21  ;;  %v3913_v18 = vpack.c.bf16 %v3869_v60, %v3867_v20  ;;  %v4042_v5 = vunpack.c.h.bf16 %v5116_v25 }
 0x845   : > { %v4128_v19 = vadd.f32 %v4127_v45, %v4034_v30  ;;  %4173 = vmatprep.subr.bf16.mxu1 %v5112_v58  ;;  %v7245_v6 = vpop.eup %5119  ;;  %v3916_v7 = vpack.c.bf16 %v3874_v14, %v3872_v33  ;;  %v3871_v31 = vsub.f32 %v7691_v13, %v7129_v32  ;;  %5131 = vpow.bf16 %v3970_v41 }
 0x846   : > { %v5122_v12 = vpop.eup %5121  ;;  %v3873_v1 = vsub.f32 %v7692_v34, %v7129_v32  ;;  %v3876_v27 = vsub.f32 %v7693_v43, %v7131_v40  ;;  %v3878_v11 = vsub.f32 %v7694_v28, %v7131_v40  ;;  %v3976_v53 = vmul.bf16 1069105081, %v3911_v47 }
 0x847   : > { %v4129_v52 = vadd.f32 %v4128_v19, %v4036_v49  ;;  %v3875_v44 = vsub.f32 %v7695_v57, %v7129_v32  ;;  %v3877_v0 = vsub.f32 %v7696_v35, %v7129_v32  ;;  %v5124_v24 = vpop.eup %5123  ;;  %5133 = vpow.bf16 %v3979_v9 }
 0x848   : > { %4174 = vmatpush1.bf16.msra.mxu1 %v7240_v36  ;;  %v3985_v26 = vmul.bf16 1069105081, %v3914_v63  ;;  %v3915_v42 = vpack.c.bf16 %v3873_v1, %v3871_v31  ;;  %v3918_v38 = vpack.c.bf16 %v3878_v11, %v3876_v27  ;;  %v4044_v58 = vunpack.c.l.bf16 %v5122_v12 }
 0x849   : > { %v4130_v61 = vadd.f32 %v4129_v52, %v4038_v23  ;;  %4175 = vmatprep.subr.bf16.mxu1 %v5116_v25  ;;  %v3917_v50 = vpack.c.bf16 %v3877_v0, %v3875_v44  ;;  %v4087_v40 = vadd.f32 %v4025_v62, %v4023_v3  ;;  %v4046_v48 = vunpack.c.h.bf16 %v5122_v12 }
 0x84a   : > { %v7260_v29 = vpop.eup %5125  ;;  %5135 = vpow.bf16 %v3976_v53  ;;  %v3982_v30 = vmul.bf16 1069105081, %v3913_v18  ;;  %v3991_v32 = vmul.bf16 1069105081, %v3916_v7  ;;  %v4027_v45 = vunpack.c.l.bf16 %v7212_v8 }
 0x84b   : > { %v4131_v46 = vadd.f32 %v4130_v61, %v4040_v51  ;;  %5137 = vpow.bf16 %v3985_v26  ;;  %v4048_v2 = vunpack.c.l.bf16 %v5124_v24  ;;  %v4029_v47 = vunpack.c.h.bf16 %v7212_v8 }
 0x84c   : > { %4176 = vmatpush1.bf16.msra.mxu1 %v7245_v6  ;;  %5139 = vpow.bf16 %v3982_v30  ;;  %v3988_v25 = vmul.bf16 1069105081, %v3915_v42  ;;  %v4088_v3 = vadd.f32 %v4087_v40, %v4027_v45  ;;  %v4050_v19 = vunpack.c.h.bf16 %v5124_v24 }
 0x84d   : > { %v4132_v16 = vadd.f32 %v4131_v46, %v4042_v5  ;;  %4177 = vmatprep.subr.bf16.mxu1 %v5122_v12  ;;  %5141 = vpow.bf16 %v3991_v32  ;;  %v3997_v49 = vmul.bf16 1069105081, %v3918_v38  ;;  %v4031_v62 = vunpack.c.l.bf16 %v7227_v56 }
 0x84e   : > { %v7264_v21 = vpop.eup %5127  ;;  %v4089_v41 = vadd.f32 %v4088_v3, %v4029_v47  ;;  %v3922_v15 = vpack.c.bf16 %v7143_v54, %v7143_v54  ;;  %v4003_v33 = vmul.bf16 1069105081, %v7155_v55  ;;  %5143 = vpow.bf16 %v3988_v25 }
 0x84f   : > { %v4133_v17 = vadd.f32 %v4132_v16, %v4044_v58  ;;  %v5130_v4 = vpop.eup %5129  ;;  %v4033_v23 = vunpack.c.h.bf16 %v7227_v56  ;;  %5145 = vpow.bf16 %v3997_v49  ;;  %v3994_v22 = vmul.bf16 1069105081, %v3917_v50 }
 0x850   : > { %4178 = vmatpush1.bf16.msra.mxu1 %v7260_v29  ;;  %v7268_v63 = vpop.eup %5131  ;;  %v4052_v8 = vunpack.c.l.bf16 %v5130_v4  ;;  %v4090_v52 = vadd.f32 %v4089_v41, %v4031_v62  ;;  %v4054_v14 = vunpack.c.h.bf16 %v5130_v4  ;;  %v4035_v9 = vunpack.c.l.bf16 %v7240_v36 }
 0x851   : > { %v4134_v39 = vadd.f32 %v4133_v17, %v4046_v48  ;;  %4179 = vmatprep.subr.bf16.mxu1 %v5124_v24  ;;  %v3921_v61 = vpack.c.bf16 %v7135_v37, %v7135_v37  ;;  %v4000_v56 = vmul.bf16 1069105081, %v7150_v10  ;;  %5147 = vpow.bf16 %v4003_v33 }
 0x852   : > { %v5134_v59 = vpop.eup %5133  ;;  %v4091_v18 = vadd.f32 %v4090_v52, %v4033_v23  ;;  %v4037_v13 = vunpack.c.h.bf16 %v7240_v36  ;;  %v4009_v12 = vmul.bf16 1069105081, %v3922_v15  ;;  %5149 = vpow.bf16 %v3994_v22 }
 0x853   : > { %v4135_v20 = vadd.f32 %v4134_v39, %v4048_v2  ;;  %v4056_v55 = vunpack.c.l.bf16 %v5134_v59  ;;  %v4058_v34 = vunpack.c.h.bf16 %v5134_v59  ;;  %v4039_v43 = vunpack.c.l.bf16 %v7245_v6 }
 0x854   : > { %4180 = vmatpush1.bf16.msra.mxu1 %v7264_v21  ;;  %v4092_v31 = vadd.f32 %v4091_v18, %v4035_v9  ;;  %5151 = vpow.bf16 %v4000_v56  ;;  %v4041_v10 = vunpack.c.h.bf16 %v7245_v6  ;;  %v4006_v53 = vmul.bf16 1069105081, %v3921_v61 }
 0x855   : > { %4181 = vmatprep.subr.bf16.mxu1 %v5130_v4  ;;  %v4136_v60 = vadd.f32 %v4135_v20, %v4050_v19  ;;  %v7277_v54 = vpop.eup %5135  ;;  %5153 = vpow.bf16 %v4009_v12  ;;  %v4043_v35 = vunpack.c.l.bf16 %v7260_v29  ;;  %v4045_v16 = vunpack.c.h.bf16 %v7260_v29 }
 0x856   : > { %v5138_v7 = vpop.eup %5137  ;;  %v4093_v27 = vadd.f32 %v4092_v31, %v4037_v13  ;;  %5155 = vpow.bf16 %v4006_v53  ;;  %v4047_v40 = vunpack.c.l.bf16 %v7264_v21  ;;  %v4049_v39 = vunpack.c.h.bf16 %v7264_v21 }
 0x857   : > { %v4137_v51 = vadd.f32 %v4136_v60, %v4052_v8  ;;  %v7285_v37 = vpop.eup %5139  ;;  %v4060_v28 = vunpack.c.l.bf16 %v5138_v7  ;;  %v4062_v57 = vunpack.c.h.bf16 %v5138_v7  ;;  %v4051_v4 = vunpack.c.l.bf16 %v7268_v63 }
 0x858   : > { %4182 = vmatpush1.bf16.msra.mxu1 %v7268_v63  ;;  %v5142_v46 = vpop.eup %5141  ;;  %v4094_v36 = vadd.f32 %v4093_v27, %v4039_v43  ;;  %v4053_v62 = vunpack.c.h.bf16 %v7268_v63  ;;  %v4055_v21 = vunpack.c.l.bf16 %v7277_v54  ;;  %v4057_v52 = vunpack.c.h.bf16 %v7277_v54 }
 0x859   : > { %4183 = vmatprep.subr.bf16.mxu1 %v5134_v59  ;;  %v4138_v5 = vadd.f32 %v4137_v51, %v4054_v14  ;;  %v7290_v24 = vpop.eup %5143  ;;  %v4064_v26 = vunpack.c.l.bf16 %v5142_v46  ;;  %v4066_v6 = vunpack.c.h.bf16 %v5142_v46  ;;  %v4059_v63 = vunpack.c.l.bf16 %v7285_v37 }
 0x85a   : > { %v4095_v0 = vadd.f32 %v4094_v36, %v4041_v10  ;;  %v5146_v38 = vpop.eup %5145  ;;  %v4061_v61 = vunpack.c.h.bf16 %v7285_v37 }
 0x85b   : > { %v4139_v1 = vadd.f32 %v4138_v5, %v4056_v55  ;;  %v4068_v30 = vunpack.c.l.bf16 %v5146_v38  ;;  %v4070_v47 = vunpack.c.h.bf16 %v5146_v38 }
 0x85c   : > { %4184 = vmatpush1.bf16.msra.mxu1 %v7277_v54  ;;  %v4096_v58 = vadd.f32 %v4095_v0, %v4043_v35  ;;  %v5148_v17 = vpop.eup %5147  ;;  %v4065_v54 = vunpack.c.h.bf16 %v7290_v24 }
 0x85d   : > { %4185 = vmatprep.subr.bf16.mxu1 %v5138_v7  ;;  %v4140_v11 = vadd.f32 %v4139_v1, %v4058_v34  ;;  %v5150_v45 = vpop.eup %5149  ;;  %v4072_v3 = vunpack.c.l.bf16 %v5148_v17  ;;  %v4074_v15 = vunpack.c.h.bf16 %v5148_v17  ;;  %v4063_v7 = vunpack.c.l.bf16 %v7290_v24  ;;  %v7697_v34 = vld [vmem:[#allocation57_spill] sm:$0xff] }
 0x85e   : > { %v4097_v48 = vadd.f32 %v4096_v58, %v4045_v16  ;;  %v4163_v1 = vrot.slane %v7697_v34, 4  ;;  %v4067_v43 = vunpack.c.l.bf16 %v5150_v45  ;;  %v4919_v58 = vld [vmem:[#allocation9] sm:$0xff]  }
 0x85f   : > { %v4141_v44 = vadd.f32 %v4140_v11, %v4060_v28  ;;  %v5152_v25 = vpop.eup %5151 }
 0x860   : > { %4186 = vmatpush1.bf16.msra.mxu1 %v7285_v37  ;;  %v4098_v2 = vadd.f32 %v4097_v48, %v4047_v40  ;;  %v5154_v49 = vpop.eup %5153  ;;  %v4069_v37 = vunpack.c.h.bf16 %v5150_v45  ;;  %v4073_v36 = vunpack.c.h.bf16 %v5152_v25 }
 0x861   : > { %4187 = vmatprep.subr.bf16.mxu1 %v5142_v46  ;;  %v4142_v42 = vadd.f32 %v4141_v44, %v4062_v57  ;;  %v4076_v59 = vunpack.c.l.bf16 %v5154_v49  ;;  %v5156_v23 = vpop.eup %5155  ;;  %v4078_v14 = vunpack.c.h.bf16 %v5154_v49  ;;  %v4071_v46 = vunpack.c.l.bf16 %v5152_v25 }
 0x862   : > { %v4099_v20 = vadd.f32 %v4098_v2, %v4049_v39  ;;  %v4075_v57 = vunpack.c.l.bf16 %v5156_v23  ;;  %v4077_v35 = vunpack.c.h.bf16 %v5156_v23 }
 0x863   : > { %v4143_v50 = vadd.f32 %v4142_v42, %v4064_v26 }
 0x864   : > { %4188 = vmatpush1.bf16.msra.mxu1 %v7290_v24  ;;  %v4100_v41 = vadd.f32 %v4099_v20, %v4051_v4  ;;  %v7698_v4 = vmov 0  }
 0x865   : > { %4189 = vmatprep.subr.bf16.mxu1 %v5146_v38  ;;  %v4144_v32 = vadd.f32 %v4143_v50, %v4066_v6 }
 0x866   : > { %v4101_v60 = vadd.f32 %v4100_v41, %v4053_v62 }
 0x867   : > { %v4145_v29 = vadd.f32 %v4144_v32, %v4068_v30  ;;  %v4920_v32 = vld [vmem:[#allocation9 + $0x8] sm:$0xff]  }
 0x868   : > { %4190 = vmatpush1.bf16.msra.mxu1 %v5150_v45  ;;  %v4102_v22 = vadd.f32 %v4101_v60, %v4055_v21 }
 0x869   : > { %4191 = vmatprep.subr.bf16.mxu1 %v5148_v17  ;;  %v4146_v19 = vadd.f32 %v4145_v29, %v4070_v47  ;;  %v3439_v29 = vpop.trf.xlu1 }
 0x86a   : > { %v4103_v9 = vadd.f32 %v4102_v22, %v4057_v52  ;;  %4745 = vmatmul.mubr.msk.bf16.gmra.mrb[140].mxu0 %vm978_vm2, %v3439_v29  ;;  %v7700_v52 = vld [vmem:[#allocation22_spill] sm:$0xff] }
 0x86b   : > { %v4147_v8 = vadd.f32 %v4146_v19, %v4072_v3  ;;  %3672 = vmatprep.mubr.bf16.mxu0 %v7698_v4 }
 0x86c   : > { %4192 = vmatpush1.bf16.msra.mxu1 %v5152_v25  ;;  %v4104_v55 = vadd.f32 %v4103_v9, %v4059_v63 }
 0x86d   : > { %4193 = vmatprep.subr.bf16.mxu1 %v5154_v49  ;;  %v4148_v33 = vadd.f32 %v4147_v8, %v4074_v15  ;;  %v3440_v3 = vpop.trf.xlu1 }
 0x86e   : > { %v4105_v56 = vadd.f32 %v4104_v55, %v4061_v61 }
 0x86f   : > { %v4149_v51 = vadd.f32 %v4148_v33, %v4076_v59 }
 0x870   : > { %4194 = vmatpush1.bf16.msra.mxu1 %v5156_v23  ;;  %v4106_v31 = vadd.f32 %v4105_v56, %v4063_v7 }
 0x871   : > { %4195 = vmatprep.subr.bf16.mxu1 %v5154_v49  ;;  %v4150_v18 = vadd.f32 %v4149_v51, %v4078_v14  ;;  %v3441_v19 = vpop.trf.xlu1 }
 0x872   : > { %v4107_v27 = vadd.f32 %v4106_v31, %v4065_v54  ;;  %4746 = vmatmul.mubr.msk.bf16.gmra.mrb[144].mxu0 %vm978_vm2, %v3440_v3 }
 0x873   : > { %v4151_v5 = vadd.f32 %v4150_v18, %v4076_v59  ;;  %3682 = vmatprep.mubr.bf16.mxu0 %v7698_v4 }
 0x874   : > { %4196 = vmatpush1.bf16.msra.mxu1 %v5156_v23  ;;  %v4108_v11 = vadd.f32 %v4107_v27, %v4067_v43 }
 0x875   : > { %4197 = vmatprep.subr.bf16.mxu1 %v5154_v49  ;;  %v4152_v13 = vadd.f32 %v4151_v5, %v4078_v14 }
 0x876   : > { %v4109_v10 = vadd.f32 %v4108_v11, %v4069_v37 }
 0x877   : > { %v4153_v12 = vadd.f32 %v4152_v13, %v4076_v59  ;;  %v7699_v59 = vld [vmem:[#allocation20_spill] sm:$0xff] }
 0x878   : > { %4198 = vmatpush1.bf16.msra.mxu1 %v5156_v23  ;;  %v4110_v53 = vadd.f32 %v4109_v10, %v4071_v46 }
 0x879   : > { %v4154_v28 = vadd.f32 %v4153_v12, %v4078_v14  ;;  %4789 = vmatprep.subr.bf16.mxu1 %v4919_v58 }
 0x87a   : > { %v4111_v44 = vadd.f32 %v4110_v53, %v4073_v36  ;;  %4747 = vmatmul.mubr.msk.bf16.gmra.mrb[148].mxu0 %vm978_vm2, %v3441_v19 }
 0x87b   : > { %4200 = vmatmul.mubr.bf16.vlgmr.msra.gmra.mrb[140].mxu1 %v4163_v1  ;;  %v4155_v50 = vrot.slane %v4154_v28, 4 }
 0x87c   : > { %v4112_v0 = vadd.f32 %v4111_v44, %v4075_v57  ;;  %4790 = vmatpush3.bf16.msra.mxu1 %v4919_v58 }
 0x87d   : > { %v4156_v48 = vadd.f32 %v4155_v50, %v4154_v28  ;;  %4791 = vmatprep.subr.bf16.mxu1 %v4920_v32 }
 0x87e   : > { %v4113_v24 = vadd.f32 %v4112_v0, %v4077_v35  ;;  %v7332_v0 = vld [vmem:[%s7701_s10] ss:$0 sm:$0xff] }
 0x87f   : > { %v4157_v30 = vrot.slane %v4156_v48, 2 }
 0x880   : > { %v4114_v26 = vadd.f32 %v4113_v24, %v4075_v57  ;;  %4792 = vmatpush3.bf16.msra.mxu1 %v4920_v32 }
 0x881   : > { %v4158_v39 = vadd.f32 %v4157_v30, %v4156_v48 }
 0x882   : > { %v4115_v42 = vadd.f32 %v4114_v26, %v4077_v35 }
 0x883   : > { %v4159_v47 = vrot.slane %v4158_v39, 1 }
 0x884   : > { %v4116_v38 = vadd.f32 %v4115_v42, %v4075_v57 }
 0x885   : > { %v4160_v25 = vadd.f32 %v4159_v47, %v4158_v39 }
 0x886   : > { %v4117_v16 = vadd.f32 %v4116_v38, %v4077_v35 }
 0x888   : > { %v4118_v6 = vrot.slane %v4117_v16, 4 }
 0x88a   : > { %v4119_v40 = vadd.f32 %v4118_v6, %v4117_v16 }
 0x88c   : > { %v4120_v17 = vrot.slane %v4119_v40, 2 }
 0x88e   : > { %v4121_v45 = vadd.f32 %v4120_v17, %v4119_v40 }
 0x890   : > { %v4122_v2 = vrot.slane %v4121_v45, 1 }
 0x892   : > { %v4123_v20 = vadd.f32 %v4122_v2, %v4121_v45 }
 0x894   : > { %5157 = vrcp.f32 %v4123_v20 }
 0x895   : > { %5159 = vrcp.f32 %v4160_v25 }
 0x89e   : > { %v5158_v49 = vpop.eup %5157 }
 0x89f   : > { %v5160_v41 = vpop.eup %5159 }
 0x93d   : > { %v3664_v43 = vpop.f32.mrb[140].mxu0 }
 0x93e   : > { %v3666_v27 = vpop.f32.mrb[141].mxu0 }
 0x93f   : > { %v3668_v28 = vpop.f32.mrb[142].mxu0 }
 0x940   : > { %v3670_v37 = vpop.f32.mrb[143].mxu0 }
 0x945   : > { %v3674_v11 = vpop.f32.mrb[144].mxu0 }
 0x946   : > { %v3676_v46 = vpop.f32.mrb[145].mxu0 }
 0x947   : > { %v3678_v10 = vpop.f32.mrb[146].mxu0 }
 0x948   : > { %v3680_v36 = vpop.f32.mrb[147].mxu0 }
 0x94d   : > { %v3684_v53 = vpop.f32.mrb[148].mxu0 }
 0x94e   : > { %v4201_v62 = vpop.f32.mrb[140].mxu1  ;;  %v3686_v57 = vpop.f32.mrb[149].mxu0 }
 0x94f   : > { %v4210_v15 = vmul.f32 %v5158_v49, %v4201_v62  ;;  %v4203_v8 = vpop.f32.mrb[141].mxu1  ;;  %v3688_v44 = vpop.f32.mrb[150].mxu0 }
 0x950   : > { %v4211_v21 = vmul.f32 %v5160_v41, %v4203_v8  ;;  %v4205_v60 = vpop.f32.mrb[142].mxu1  ;;  %v3690_v35 = vpop.f32.mrb[151].mxu0 }
 0x951   : > { %v4214_v33 = vpack.c.bf16 %v4210_v15, %v7699_v59  ;;  %v4206_v23 = vpop.f32.mrb[143].mxu1 }
 0x952   : > { %v4215_v22 = vpack.c.bf16 %v4211_v21, %v7700_v52 }
 0x953   : > { %4221 = vxpose.xlu0.c.b16.end [2/2] (short) %v4214_v33, 128 }
 0x954   : > { %4237 = vxpose.xlu1.c.b16.end [2/2] (short) %v4215_v22, 128 }
 0x9b5   : > { %v4228_v14 = vpop.trf.xlu0 }
 0x9b6   : > { %4793 = vmatprep.mubr.msk.bf16.mxu1 %vm595_vm0, %v4228_v14  ;;  %v4244_v18 = vpop.trf.xlu1 }
 0x9b9   : > { %v4229_v51 = vpop.trf.xlu0 }
 0x9ba   : > { %4794 = vmatmul.mubr.msk.bf16.vlgmr.msra.gmra.mrb[144].mxu1 %vm595_vm0, %v4229_v51  ;;  %v4245_v5 = vpop.trf.xlu1 }
 0x9bd   : > { %v4230_v63 = vpop.trf.xlu0 }
 0x9be   : > { %4797 = vmatprep.mubr.msk.bf16.mxu1 %vm595_vm0, %v4230_v63  ;;  %v4246_v56 = vpop.trf.xlu1 }
 0x9c1   : > { %v4231_v9 = vpop.trf.xlu0 }
 0x9c2   : > { %4798 = vmatmul.mubr.msk.bf16.gmra.mrb[148].mxu1 %vm595_vm0, %v4231_v9  ;;  %v4247_v54 = vpop.trf.xlu1 }
 0x9c5   : > { %v4232_v61 = vpop.trf.xlu0 }
 0x9c6   : > { %4801 = vmatprep.mubr.msk.bf16.mxu1 %vm595_vm0, %v4232_v61  ;;  %v4248_v31 = vpop.trf.xlu1 }
 0x9c9   : > { %v4233_v55 = vpop.trf.xlu0 }
 0x9ca   : > { %4802 = vmatmul.mubr.msk.bf16.gmra.mrb[152].mxu1 %vm595_vm0, %v4233_v55  ;;  %v4249_v12 = vpop.trf.xlu1 }
 0x9cd   : > { %v4234_v7 = vpop.trf.xlu0 }
 0x9ce   : > { %4805 = vmatprep.mubr.msk.bf16.mxu1 %vm595_vm0, %v4234_v7  ;;  %v4250_v34 = vpop.trf.xlu1 }
 0x9d1   : > { %v4235_v13 = vpop.trf.xlu0 }
 0x9d2   : > { %4806 = vmatmul.mubr.msk.bf16.gmra.mrb[156].mxu1 %vm595_vm0, %v4235_v13  ;;  %v4251_v1 = vpop.trf.xlu1 }
 0x9d3   : > { %4809 = vmatprep.mubr.msk.bf16.mxu1 %vm595_vm0, %v4244_v18 }
 0x9da   : > { %4810 = vmatmul.mubr.msk.bf16.gmra.mrb[160].mxu1 %vm595_vm0, %v4245_v5 }
 0x9db   : > { %4813 = vmatprep.mubr.msk.bf16.mxu1 %vm595_vm0, %v4246_v56 }
 0x9e2   : > { %4814 = vmatmul.mubr.msk.bf16.gmra.mrb[164].mxu1 %vm595_vm0, %v4247_v54 }
 0x9e3   : > { %4817 = vmatprep.mubr.msk.bf16.mxu1 %vm595_vm0, %v4248_v31 }
 0x9ea   : > { %4818 = vmatmul.mubr.msk.bf16.gmra.mrb[168].mxu1 %vm595_vm0, %v4249_v12 }
 0x9eb   : > { %4821 = vmatprep.mubr.msk.bf16.mxu1 %vm595_vm0, %v4250_v34 }
 0x9f2   : > { %4822 = vmatmul.mubr.msk.bf16.gmra.mrb[172].mxu1 %vm595_vm0, %v4251_v1 }
 0xa8d   : > { %v4795_v24 = vpop.f32.mrb[144].mxu1 }
 0xa8e   : > { %v4475_v26 = vadd.f32 %v4795_v24, %v7332_v0  ;;  %v4346_v42 = vpop.f32.mrb[145].mxu1 }
 0xa8f   : > { %v4473_v38 = vadd.f32 %v7332_v0, %v4346_v42  ;;  %v4796_v16 = vpop.f32.mrb[146].mxu1 }
 0xa90   : > { %4500 = vst.msk [vmem:[%s7337_s30 + $0x10] sm:$0xff] %vm595_vm0, %v4475_v26  ;;  %v4476_v58 = vadd.f32 %v4796_v16, %v7332_v0  ;;  %v4349_v6 = vpop.f32.mrb[147].mxu1 }
 0xa91   : > { %4498 = vst.msk [vmem:[%s7337_s30] sm:$0xff] %vm595_vm0, %v4473_v38  ;;  %v4474_v50 = vadd.f32 %v7332_v0, %v4349_v6 }
 0xa92   : > { %4501 = vst.msk [vmem:[%s7337_s30 + $0x18] sm:$0xff] %vm595_vm0, %v4476_v58 }
 0xa93   : > { %4499 = vst.msk [vmem:[%s7337_s30 + $0x8] sm:$0xff] %vm595_vm0, %v4474_v50 }
 0xa95   : > { %v4799_v40 = vpop.f32.mrb[148].mxu1 }
 0xa96   : > { %v4479_v48 = vadd.f32 %v4799_v40, %v7332_v0  ;;  %v4362_v17 = vpop.f32.mrb[149].mxu1 }
 0xa97   : > { %v4477_v30 = vadd.f32 %v7332_v0, %v4362_v17  ;;  %v4800_v32 = vpop.f32.mrb[150].mxu1 }
 0xa98   : > { %4504 = vst.msk [vmem:[%s7337_s30 + $0x30] sm:$0xff] %vm595_vm0, %v4479_v48  ;;  %v4480_v45 = vadd.f32 %v4800_v32, %v7332_v0  ;;  %v4365_v39 = vpop.f32.mrb[151].mxu1 }
 0xa99   : > { %4502 = vst.msk [vmem:[%s7337_s30 + $0x20] sm:$0xff] %vm595_vm0, %v4477_v30  ;;  %v4478_v2 = vadd.f32 %v7332_v0, %v4365_v39 }
 0xa9a   : > { %4505 = vst.msk [vmem:[%s7337_s30 + $0x38] sm:$0xff] %vm595_vm0, %v4480_v45 }
 0xa9b   : > { %4503 = vst.msk [vmem:[%s7337_s30 + $0x28] sm:$0xff] %vm595_vm0, %v4478_v2 }
 0xa9d   : > { %v4803_v47 = vpop.f32.mrb[152].mxu1 }
 0xa9e   : > { %v4483_v29 = vadd.f32 %v4803_v47, %v7332_v0  ;;  %v4378_v4 = vpop.f32.mrb[153].mxu1 }
 0xa9f   : > { %v4481_v20 = vadd.f32 %v7332_v0, %v4378_v4  ;;  %v4804_v25 = vpop.f32.mrb[154].mxu1 }
 0xaa0   : > { %4508 = vst.msk [vmem:[%s7337_s30 + $0x50] sm:$0xff] %vm595_vm0, %v4483_v29  ;;  %v4484_v3 = vadd.f32 %v4804_v25, %v7332_v0  ;;  %v4381_v19 = vpop.f32.mrb[155].mxu1 }
 0xaa1   : > { %4506 = vst.msk [vmem:[%s7337_s30 + $0x40] sm:$0xff] %vm595_vm0, %v4481_v20  ;;  %v4482_v49 = vadd.f32 %v7332_v0, %v4381_v19 }
 0xaa2   : > { %4509 = vst.msk [vmem:[%s7337_s30 + $0x58] sm:$0xff] %vm595_vm0, %v4484_v3 }
 0xaa3   : > { %4507 = vst.msk [vmem:[%s7337_s30 + $0x48] sm:$0xff] %vm595_vm0, %v4482_v49 }
 0xaa5   : > { %v4807_v62 = vpop.f32.mrb[156].mxu1 }
 0xaa6   : > { %v4487_v41 = vadd.f32 %v4807_v62, %v7332_v0  ;;  %v4394_v15 = vpop.f32.mrb[157].mxu1 }
 0xaa7   : > { %v4485_v8 = vadd.f32 %v7332_v0, %v4394_v15  ;;  %v4808_v21 = vpop.f32.mrb[158].mxu1 }
 0xaa8   : > { %4512 = vst.msk [vmem:[%s7337_s30 + $0x70] sm:$0xff] %vm595_vm0, %v4487_v41  ;;  %v4488_v60 = vadd.f32 %v4808_v21, %v7332_v0  ;;  %v4397_v59 = vpop.f32.mrb[159].mxu1 }
 0xaa9   : > { %4510 = vst.msk [vmem:[%s7337_s30 + $0x60] sm:$0xff] %vm595_vm0, %v4485_v8  ;;  %v4486_v33 = vadd.f32 %v7332_v0, %v4397_v59 }
 0xaaa   : > { %4513 = vst.msk [vmem:[%s7337_s30 + $0x78] sm:$0xff] %vm595_vm0, %v4488_v60 }
 0xaab   : > { %4511 = vst.msk [vmem:[%s7337_s30 + $0x68] sm:$0xff] %vm595_vm0, %v4486_v33 }
 0xaad   : > { %v4811_v23 = vpop.f32.mrb[160].mxu1 }
 0xaae   : > { %v4491_v52 = vadd.f32 %v4811_v23, %v7332_v0  ;;  %v4410_v22 = vpop.f32.mrb[161].mxu1 }
 0xaaf   : > { %v4489_v14 = vadd.f32 %v7332_v0, %v4410_v22  ;;  %v4812_v51 = vpop.f32.mrb[162].mxu1 }
 0xab0   : > { %4516 = vst.msk [vmem:[%s7337_s30 + $0x90] sm:$0xff] %vm595_vm0, %v4491_v52  ;;  %v4492_v63 = vadd.f32 %v4812_v51, %v7332_v0  ;;  %v4413_v9 = vpop.f32.mrb[163].mxu1 }
 0xab1   : > { %4514 = vst.msk [vmem:[%s7337_s30 + $0x80] sm:$0xff] %vm595_vm0, %v4489_v14  ;;  %v4490_v18 = vadd.f32 %v7332_v0, %v4413_v9 }
 0xab2   : > { %4517 = vst.msk [vmem:[%s7337_s30 + $0x98] sm:$0xff] %vm595_vm0, %v4492_v63 }
 0xab3   : > { %4515 = vst.msk [vmem:[%s7337_s30 + $0x88] sm:$0xff] %vm595_vm0, %v4490_v18 }
 0xab5   : > { %v4815_v61 = vpop.f32.mrb[164].mxu1 }
 0xab6   : > { %v4495_v55 = vadd.f32 %v4815_v61, %v7332_v0  ;;  %v4426_v5 = vpop.f32.mrb[165].mxu1 }
 0xab7   : > { %v4493_v7 = vadd.f32 %v7332_v0, %v4426_v5  ;;  %v4816_v56 = vpop.f32.mrb[166].mxu1 }
 0xab8   : > { %4520 = vst.msk [vmem:[%s7337_s30 + $0xb0] sm:$0xff] %vm595_vm0, %v4495_v55  ;;  %v4496_v13 = vadd.f32 %v4816_v56, %v7332_v0  ;;  %v4429_v54 = vpop.f32.mrb[167].mxu1 }
 0xab9   : > { %4518 = vst.msk [vmem:[%s7337_s30 + $0xa0] sm:$0xff] %vm595_vm0, %v4493_v7  ;;  %v4494_v31 = vadd.f32 %v7332_v0, %v4429_v54 }
 0xaba   : > { %4521 = vst.msk [vmem:[%s7337_s30 + $0xb8] sm:$0xff] %vm595_vm0, %v4496_v13 }
 0xabb   : > { %4519 = vst.msk [vmem:[%s7337_s30 + $0xa8] sm:$0xff] %vm595_vm0, %v4494_v31 }
 0xabd   : > { %v4819_v12 = vpop.f32.mrb[168].mxu1 }
 0xabe   : > { %v4442_v34 = vpop.f32.mrb[169].mxu1 }
 0xabf   : > { %v4497_v1 = vadd.f32 %v7332_v0, %v4442_v34  ;;  %v4820_v43 = vpop.f32.mrb[170].mxu1 }
 0xac0   : > { %v4445_v27 = vpop.f32.mrb[171].mxu1 }
 0xac1   : > { %4523 = vst.msk [vmem:[%s7337_s30 + $0xc0] sm:$0xf] %vm4522_vm4, %v4497_v1 }
 0xac5   : > { %v4823_v28 = vpop.f32.mrb[172].mxu1 }
 0xac6   : > { %v4455_v37 = vpop.f32.mrb[173].mxu1 }
 0xac7   : > { %v4824_v11 = vpop.f32.mrb[174].mxu1 }
 0xac8   : > { %v4457_v46 = vpop.f32.mrb[175].mxu1 }
 0xac9 PF: > { %p24_p4 = scmp.ge.s32.totalorder %s5556_s20, 4   ;;  %s7703_s21 = smov %s5337_s22 }
 0xaca   : > { %s7704_s22 = smov %s5341_s23  ;;  %s7705_s23 = smov %s5567_s18 }
 0xacb   : > { %s7706_s24 = smov %s5556_s20  ;;  %26 = sbr.rel (!%p24_p4) target bundleno = 11 (0xb), region = 127 }
 0xad2   :  { %4545 = vsyncpa [#allocation3], 1 }
 0xad3   :  { %4547 = vsyncpa [#allocation3 + $0x1], 1 }
 0xad4   :  { %4548 = vsyncpa [#allocation5], 1 }
 0xad5   :  { %4549 = vsyncpa [#allocation8], 1 }

</bundles_post_ra>
